<compile_context>
chip_gen: v7x
topology: tpu7x:2x2x1
jax: 0.10.0
libtpu: 0.0.40
codegen_flags: <defaults>
</compile_context>

<pallas_src>
import functools

import jax
import jax.numpy as jnp
from jax.experimental import pallas as pl
from jax.experimental.pallas import tpu as pltpu

BIG = 1e30  # "+inf" sentinel so padded cells never enter a sublevel set


def _largest_divisor(n, cap):
    t = min(n, cap)
    while n % t:
        t -= 1
    return t


# --------------------------------------------------------------------------
# Fused linear: out = relu?(x @ w + b), tiled along M (weights stay resident).
# --------------------------------------------------------------------------
def _linear_kernel(x_ref, w_ref, b_ref, o_ref, *, relu):
    y = jnp.dot(x_ref[...], w_ref[...], preferred_element_type=jnp.float32)
    y = y + b_ref[...]
    if relu:
        y = jnp.maximum(y, 0.0)
    o_ref[...] = y.astype(o_ref.dtype)


def linear(x, w, b, relu=False, tm=1024):
    M, K = x.shape
    N = w.shape[1]
    tm = min(tm, M)
    return pl.pallas_call(
        functools.partial(_linear_kernel, relu=relu),
        out_shape=jax.ShapeDtypeStruct((M, N), jnp.float32),
        grid=(pl.cdiv(M, tm),),
        in_specs=[
            pl.BlockSpec((tm, K), lambda i: (i, 0)),
            pl.BlockSpec((K, N), lambda i: (0, 0)),   # resident across M tiles
            pl.BlockSpec((1, N), lambda i: (0, 0)),
        ],
        out_specs=pl.BlockSpec((tm, N), lambda i: (i, 0)),
        compiler_params=pltpu.CompilerParams(
            dimension_semantics=("parallel",),
            vmem_limit_bytes=32 * 1024 * 1024),
    )(x, w, b.reshape(1, N))


# --------------------------------------------------------------------------
# Conv2 (32 -> 1, 3x3, SAME) as 9 shifted weighted-accumulates on the padded
# feature map, with the per-sample min / max fused into the epilogue.
# --------------------------------------------------------------------------
def _conv2_kernel(xp_ref, w_ref, b_ref, o_ref, mn_ref, mx_ref, *, H, W):
    acc = jnp.zeros((H, W), jnp.float32) + b_ref[0]
    for i in range(3):
        for j in range(3):
            patch = xp_ref[0, i:i + H, j:j + W, :]            # (H, W, Cin) shifted window
            acc = acc + jnp.sum(patch * w_ref[3 * i + j, :], axis=-1)
    o_ref[0] = acc
    mn_ref[0] = jnp.min(acc, keepdims=True)
    mx_ref[0] = jnp.max(acc, keepdims=True)


def conv2_with_minmax(c1, w2, b2):
    """c1: (B, H, W, Cin) -> conv output (B, H, W), per-sample min (B,1,1), max (B,1,1)."""
    B, H, W, C = c1.shape
    c1p = jnp.pad(c1, ((0, 0), (1, 1), (1, 1), (0, 0)))
    return pl.pallas_call(
        functools.partial(_conv2_kernel, H=H, W=W),
        out_shape=(
            jax.ShapeDtypeStruct((B, H, W), jnp.float32),
            jax.ShapeDtypeStruct((B, 1, 1), jnp.float32),
            jax.ShapeDtypeStruct((B, 1, 1), jnp.float32),
        ),
        grid=(B,),
        in_specs=[
            pl.BlockSpec((1, H + 2, W + 2, C), lambda b: (b, 0, 0, 0)),
            pl.BlockSpec((9, C), lambda b: (0, 0)),
            pl.BlockSpec(memory_space=pltpu.MemorySpace.SMEM),
        ],
        out_specs=(
            pl.BlockSpec((1, H, W), lambda b: (b, 0, 0)),
            pl.BlockSpec((1, 1, 1), lambda b: (b, 0, 0)),
            pl.BlockSpec((1, 1, 1), lambda b: (b, 0, 0)),
        ),
        compiler_params=pltpu.CompilerParams(dimension_semantics=("parallel",)),
    )(c1p, w2, b2)


# --------------------------------------------------------------------------
# Euler characteristic curve (ECLayr core): chi(t) = #V - #E_h - #E_v + #F
# over sublevel sets of the 2D cubical filtration.  Edge / square filtration
# values are built in-kernel from one lane-dense BIG-padded image block.
# --------------------------------------------------------------------------
def _ecc_kernel(img_ref, t_ref, o_ref, *, H, W, T):
    v = img_ref[0, :H, :W]
    vr = img_ref[0, :H, 1:]          # right neighbor (BIG on the last column)
    vd = img_ref[0, 1:, :W]          # below neighbor (BIG on the last row)
    vrd = img_ref[0, 1:, 1:]
    eh = jnp.maximum(v, vr)          # horizontal edges
    ev = jnp.maximum(v, vd)          # vertical edges
    sq = jnp.maximum(eh, jnp.maximum(vd, vrd))   # 2x2 squares
    vals = jnp.concatenate([v, eh, ev, sq], axis=0)                    # (4H, W) lane-dense
    rows = jax.lax.broadcasted_iota(jnp.int32, (4 * H, W), 0)
    signs = jnp.where((rows < H) | (rows >= 3 * H), 1.0, -1.0)         # +1, -1, -1, +1
    lane = jax.lax.broadcasted_iota(jnp.int32, (1, T), 1)
    acc = jnp.zeros((1, T), jnp.float32)
    for k in range(T):                                                 # T scalar thresholds (SMEM)
        chi = jnp.sum(jnp.where(vals <= t_ref[k], signs, 0.0), keepdims=True)  # (1, 1)
        acc = acc + jnp.where(lane == k, chi, 0.0)
    o_ref[0] = acc


def ecc_curve(img, tseq):
    """img: (B, H, W) filtration values -> (B, T) Euler characteristic curve."""
    B, H, W = img.shape
    T = tseq.shape[0]
    img_p = jnp.pad(img, ((0, 0), (0, 1), (0, 1)), constant_values=BIG)
    out = pl.pallas_call(
        functools.partial(_ecc_kernel, H=H, W=W, T=T),
        out_shape=jax.ShapeDtypeStruct((B, 1, T), jnp.float32),
        grid=(B,),
        in_specs=[
            pl.BlockSpec((1, H + 1, W + 1), lambda b: (b, 0, 0)),
            pl.BlockSpec(memory_space=pltpu.MemorySpace.SMEM),
        ],
        out_specs=pl.BlockSpec((1, 1, T), lambda b: (b, 0, 0)),
        compiler_params=pltpu.CompilerParams(dimension_semantics=("parallel",)),
    )(img_p, tseq)
    return out[:, 0, :]


# --------------------------------------------------------------------------
# Weighted distance-to-measure (WeightedDTMLayer core).
# DTM(y)^2 = sum_j clip(bound - cum_{j-1}, 0, w_(j)) * d_(j)^2 / bound
# Row-tiled over queries; the cumulative sum is computed in-kernel.
# --------------------------------------------------------------------------
def _dtm_kernel(w_ref, d2_ref, bnd_ref, o_ref, *, n):
    b = pl.program_id(0)
    w = w_ref[0]                      # (TN, N): TN query rows, N distance-sorted neighbors
    d2 = d2_ref[...]                  # (TN, N): matching sorted squared distances
    bnd = bnd_ref[b]                  # scalar: m0 * total weight of this sample
    # Inclusive prefix sum of the sorted weights along the lane axis (Hillis-Steele:
    # ceil(log2 N) roll + mask + add steps) -- replaces the materialized (B, N, N) cumsum.
    lane = jax.lax.broadcasted_iota(jnp.int32, w.shape, 1)
    cum = w
    s = 1
    while s < n:
        rolled = pltpu.roll(cum, shift=s, axis=1)
        cum = cum + jnp.where(lane >= s, rolled, 0.0)
        s *= 2
    prev = cum - w
    wsel = jnp.minimum(jnp.maximum(bnd - prev, 0.0), w)
    # Row-sum on the (otherwise idle) MXU via a ones-column matmul.
    ones = jnp.ones((n, 1), jnp.float32)
    dtm2 = jnp.dot(wsel * d2, ones, preferred_element_type=jnp.float32)  # (TN, 1)
    o_ref[0] = jnp.sqrt(dtm2 * (1.0 / bnd))


def weighted_dtm(weight_flat, d2_sorted, order, m0, tn_cap=256):
    """weight_flat: (B, N) nonnegative grid weights -> (B, N) DTM values on the grid."""
    B, N = weight_flat.shape
    bound = jnp.maximum(m0 * jnp.sum(weight_flat, axis=1), 1e-12)        # (B,) guard /0
    # TODO(synk): the static kNN argsort-gather stays in XLA (sort order is fixed by the
    # grid geometry); the O(B*N^2) scan/select/reduce runs in Pallas, row-tiled.
    w_sorted = weight_flat[:, order]                                     # (B, N, N)
    TN = _largest_divisor(N, tn_cap)
    out = pl.pallas_call(
        functools.partial(_dtm_kernel, n=N),
        out_shape=jax.ShapeDtypeStruct((B, N, 1), jnp.float32),
        grid=(B, N // TN),
        in_specs=[
            pl.BlockSpec((1, TN, N), lambda b, r: (b, r, 0)),
            pl.BlockSpec((TN, N), lambda b, r: (r, 0)),
            pl.BlockSpec(memory_space=pltpu.MemorySpace.SMEM),
        ],
        out_specs=pl.BlockSpec((1, TN, 1), lambda b, r: (b, r, 0)),
        compiler_params=pltpu.CompilerParams(
            dimension_semantics=("parallel", "parallel"),
            vmem_limit_bytes=32 * 1024 * 1024),
    )(w_sorted, d2_sorted, bound)
    return out[:, :, 0]


# --------------------------------------------------------------------------
# Glue: im2col for the 1-channel conv1, parameter init, static DTM tables.
# --------------------------------------------------------------------------
def _im2col_3x3(x):
    # x: (B, H, W, C) -> (B*H*W, 9*C); zero padding 1; patch order (kh, kw, c)
    B, H, W, C = x.shape
    xp = jnp.pad(x, ((0, 0), (1, 1), (1, 1), (0, 0)))
    cols = [xp[:, i:i + H, j:j + W, :] for i in range(3) for j in range(3)]
    return jnp.stack(cols, axis=3).reshape(B * H * W, 9 * C)


def init_params(key, H, W, T, gdim=32, num_classes=5):
    keys = jax.random.split(key, 8)
    w = lambda k, s: (0.1 * jax.random.normal(k, s)).astype(jnp.float32)
    z = lambda n: jnp.zeros((n,), jnp.float32)
    HW = H * W
    return dict(
        conv1_w=w(keys[0], (9 * 1, 32)), conv1_b=z(32),     # Conv2d(1->32, 3x3, pad 1)
        conv2_w=w(keys[1], (9, 32)), conv2_b=z(1),          # Conv2d(32->1, 3x3, pad 1), tap-major
        g1_w1=w(keys[2], (T, gdim)), g1_b1=z(gdim),         # ecc_1.gtheta
        g1_w2=w(keys[3], (gdim, gdim)), g1_b2=z(gdim),
        g2_w1=w(keys[4], (T, gdim)), g2_b1=z(gdim),         # ecc_2.gtheta
        g2_w2=w(keys[5], (gdim, gdim)), g2_b2=z(gdim),
        fc1_w=w(keys[6], (HW + 2 * gdim, 64)), fc1_b=z(64),  # Linear(H*W + 2*32, 64)
        fc2_w=w(keys[7], (64, num_classes)), fc2_b=z(num_classes),
    )


def dtm_tables(H, W):
    ys, xs = jnp.meshgrid(
        jnp.linspace(0.0, 1.0, H), jnp.linspace(0.0, 1.0, W), indexing="ij")
    pts = jnp.stack([ys.reshape(-1), xs.reshape(-1)], axis=1)           # (N, 2)
    d2 = jnp.sum((pts[:, None, :] - pts[None, :, :]) ** 2, axis=-1)     # (N, N)
    order = jnp.argsort(d2, axis=1)
    d2_sorted = jnp.take_along_axis(d2, order, axis=1)
    return order, d2_sorted.astype(jnp.float32)


# --------------------------------------------------------------------------
# EcCnnDTM.forward
# --------------------------------------------------------------------------
def ec_cnn_dtm_forward(params, x_pc, x_img, x_dtm, tseq, order, d2_sorted, m0=0.01):
    del x_pc  # unused in the reference forward
    B, _, H, W = x_img.shape
    HW = H * W

    # x_1 = relu(ecc_1(x_dtm))  (final ReLU fused into the last gtheta linear)
    e1 = ecc_curve(x_dtm[:, 0], tseq)
    h1 = linear(e1, params["g1_w1"], params["g1_b1"], relu=True)
    x_1 = linear(h1, params["g1_w2"], params["g1_b2"], relu=True)

    # x = conv(x): Conv(1->32)+ReLU (im2col matmul, tiny for 1 channel), then Conv(32->1)
    # as a fused shifted-accumulate kernel that also returns the per-sample min / max.
    x_nhwc = jnp.transpose(x_img, (0, 2, 3, 1))
    c1 = linear(_im2col_3x3(x_nhwc), params["conv1_w"], params["conv1_b"], relu=True)
    conv_out, mn_b, mx_b = conv2_with_minmax(
        c1.reshape(B, H, W, 32), params["conv2_w"], params["conv2_b"])
    mn = jnp.min(mn_b)
    mx = jnp.max(mx_b)

    # x_2 = (x - min) / (max - min) ; x_2 = dtm(x_2) ; x_2 = relu(ecc_2(x_2))
    inv_span = 1.0 / jnp.maximum(mx - mn, 1e-12)
    x_norm = (conv_out.reshape(B, HW) - mn) * inv_span
    dtm_img = weighted_dtm(x_norm, d2_sorted, order, m0).reshape(B, H, W)
    e2 = ecc_curve(dtm_img, tseq)
    h2 = linear(e2, params["g2_w1"], params["g2_b1"], relu=True)
    x_2 = linear(h2, params["g2_w2"], params["g2_b2"], relu=True)

    # x = relu(x); flatten; concat; fc
    feat = jnp.maximum(conv_out.reshape(B, HW), 0.0)
    feat = jnp.concatenate([feat, x_1, x_2], axis=-1)
    h3 = linear(feat, params["fc1_w"], params["fc1_b"], relu=True)
    return linear(h3, params["fc2_w"], params["fc2_b"], relu=False)


if __name__ == "__main__":
    B, H, W = 2, 8, 8         # small spatial (real ORBIT5K uses 40x40 -> 1600)
    T = 32                    # ECC filtration steps
    num_classes = 5

    key = jax.random.PRNGKey(0)
    k1, k2, k3, kp = jax.random.split(key, 4)
    x_pc = jax.random.uniform(k1, (B, 16, 2), jnp.float32)     # unused, interface parity
    x_img = jax.random.uniform(k2, (B, 1, H, W), jnp.float32)  # NCHW
    x_dtm = jax.random.uniform(k3, (B, 1, H, W), jnp.float32)  # NCHW

    params = init_params(kp, H, W, T, gdim=32, num_classes=num_classes)
    tseq = jnp.linspace(0.0, 1.0, T, dtype=jnp.float32)
    order, d2_sorted = dtm_tables(H, W)

    fwd = jax.jit(functools.partial(ec_cnn_dtm_forward, m0=0.01))
    out = fwd(params, x_pc, x_img, x_dtm, tseq, order, d2_sorted)
    jax.block_until_ready(out)
    assert out.shape == (B, num_classes)
    print("KERNEL_OK")
</pallas_src>

<mosaic_0001>
module attributes {stable_mosaic.version = 11 : i64} {
  func.func @_linear_kernel(%arg0: i32, %arg1: memref<128x9xf32, #tpu.memory_space<vmem>>, %arg2: memref<9x32xf32, #tpu.memory_space<vmem>>, %arg3: memref<1x32xf32, #tpu.memory_space<vmem>>, %arg4: memref<128x32xf32, #tpu.memory_space<vmem>>) attributes {dimension_semantics = [#tpu.dimension_semantics<parallel>], iteration_bounds = array<i64: 1>, scalar_prefetch = 0 : i64, scratch_operands = 0 : i64, tpu.core_type = #tpu.core_type<tc>, window_params = [{transform_indices = @transform_0, window_bounds = array<i64: 128, 9>}, {pipeline_mode = #tpu.pipeline_mode<synchronous>, transform_indices = @transform_1, window_bounds = array<i64: 9, 32>}, {pipeline_mode = #tpu.pipeline_mode<synchronous>, transform_indices = @transform_2, window_bounds = array<i64: 1, 32>}, {transform_indices = @transform_3, window_bounds = array<i64: 128, 32>}]} {
    %c0 = arith.constant 0 : index
    %c0_0 = arith.constant 0 : index
    %0 = vector.load %arg1[%c0, %c0_0] : memref<128x9xf32, #tpu.memory_space<vmem>>, vector<128x9xf32>
    %c0_1 = arith.constant 0 : index
    %c0_2 = arith.constant 0 : index
    %1 = vector.load %arg2[%c0_1, %c0_2] : memref<9x32xf32, #tpu.memory_space<vmem>>, vector<9x32xf32>
    %cst = arith.constant dense<0.000000e+00> : vector<128x32xf32>
    %2 = tpu.matmul %0, %1, %cst {dimension_numbers = #tpu.dot_dimension_numbers<[1], [0], [0], [1], [0, 0, 1, 1], [], []>} : vector<128x9xf32>, vector<9x32xf32>, vector<128x32xf32> -> vector<128x32xf32>
    %c0_3 = arith.constant 0 : index
    %c0_4 = arith.constant 0 : index
    %3 = vector.load %arg3[%c0_3, %c0_4] : memref<1x32xf32, #tpu.memory_space<vmem>>, vector<1x32xf32>
    %4 = vector.broadcast %3 : vector<1x32xf32> to vector<128x32xf32>
    %5 = arith.addf %2, %4 : vector<128x32xf32>
    %cst_5 = arith.constant 0.000000e+00 : f32
    %6 = vector.broadcast %cst_5 : f32 to vector<128x32xf32>
    %7 = arith.maximumf %5, %6 : vector<128x32xf32>
    %c0_6 = arith.constant 0 : index
    %c0_7 = arith.constant 0 : index
    %8 = vector.load %arg4[%c0_6, %c0_7] : memref<128x32xf32, #tpu.memory_space<vmem>>, vector<128x32xf32>
    tpu.vector_store %arg4[%c0_6, %c0_7], %7 {strides = array<i32>} : memref<128x32xf32, #tpu.memory_space<vmem>>, vector<128x32xf32>,
    return
  }
  func.func @transform_0(%arg0: i32) -> (i32, i32) {
    %c0_i32 = arith.constant 0 : i32
    %c0_i32_0 = arith.constant 0 : i32
    return %arg0, %c0_i32 : i32, i32
  }
  func.func @transform_1(%arg0: i32) -> (i32, i32) {
    %c0_i32 = arith.constant 0 : i32
    %c0_i32_0 = arith.constant 0 : i32
    %c0_i32_1 = arith.constant 0 : i32
    return %c0_i32, %c0_i32_0 : i32, i32
  }
  func.func @transform_2(%arg0: i32) -> (i32, i32) {
    %c0_i32 = arith.constant 0 : i32
    %c0_i32_0 = arith.constant 0 : i32
    %c0_i32_1 = arith.constant 0 : i32
    return %c0_i32, %c0_i32_0 : i32, i32
  }
  func.func @transform_3(%arg0: i32) -> (i32, i32) {
    %c0_i32 = arith.constant 0 : i32
    %c0_i32_0 = arith.constant 0 : i32
    return %arg0, %c0_i32 : i32, i32
  }
}

module attributes {stable_mosaic.version = 11 : i64} {
  func.func @_conv2_kernel(%arg0: i32, %arg1: memref<1x10x10x32xf32, #tpu.memory_space<vmem>>, %arg2: memref<9x32xf32, #tpu.memory_space<vmem>>, %arg3: memref<1xf32, #tpu.memory_space<smem>>, %arg4: memref<1x8x8xf32, #tpu.memory_space<vmem>>, %arg5: memref<1x1x1xf32, #tpu.memory_space<vmem>>, %arg6: memref<1x1x1xf32, #tpu.memory_space<vmem>>) attributes {dimension_semantics = [#tpu.dimension_semantics<parallel>], iteration_bounds = array<i64: 2>, scalar_prefetch = 0 : i64, scratch_operands = 0 : i64, tpu.core_type = #tpu.core_type<tc>, window_params = [{transform_indices = @transform_0, window_bounds = array<i64: 1, 10, 10, 32>}, {pipeline_mode = #tpu.pipeline_mode<synchronous>, transform_indices = @transform_1, window_bounds = array<i64: 9, 32>}, {transform_indices = @transform_2, window_bounds = array<i64: 1>}, {transform_indices = @transform_3, window_bounds = array<i64: 1, 8, 8>}, {transform_indices = @transform_4, window_bounds = array<i64: 1, 1, 1>}, {transform_indices = @transform_5, window_bounds = array<i64: 1, 1, 1>}]} {
    %cst = arith.constant 0.000000e+00 : f32
    %0 = vector.broadcast %cst : f32 to vector<8x8xf32>
    %c0 = arith.constant 0 : index
    %1 = memref.load %arg3[%c0] : memref<1xf32, #tpu.memory_space<smem>>
    %2 = vector.broadcast %1 : f32 to vector<8x8xf32>
    %3 = arith.addf %0, %2 : vector<8x8xf32>
    %c0_0 = arith.constant 0 : index
    %c0_1 = arith.constant 0 : index
    %c0_2 = arith.constant 0 : index
    %c0_3 = arith.constant 0 : index
    %4 = vector.load %arg1[%c0_0, %c0_1, %c0_2, %c0_3] : memref<1x10x10x32xf32, #tpu.memory_space<vmem>>, vector<1x8x8x32xf32>
    %5 = vector.shape_cast %4 : vector<1x8x8x32xf32> to vector<8x8x32xf32>
    %c0_4 = arith.constant 0 : index
    %c0_5 = arith.constant 0 : index
    %6 = vector.load %arg2[%c0_4, %c0_5] : memref<9x32xf32, #tpu.memory_space<vmem>>, vector<1x32xf32>
    %7 = vector.shape_cast %6 : vector<1x32xf32> to vector<32xf32>
    %8 = vector.shape_cast %7 : vector<32xf32> to vector<1x1x32xf32>
    %9 = vector.broadcast %8 : vector<1x1x32xf32> to vector<8x8x32xf32>
    %10 = arith.mulf %5, %9 : vector<8x8x32xf32>
    %cst_6 = arith.constant dense<0.000000e+00> : vector<8x8xf32>
    %11 = vector.multi_reduction <add>, %10, %cst_6 [2] : vector<8x8x32xf32> to vector<8x8xf32>
    %12 = arith.addf %3, %11 : vector<8x8xf32>
    %c0_7 = arith.constant 0 : index
    %c0_8 = arith.constant 0 : index
    %c1 = arith.constant 1 : index
    %c0_9 = arith.constant 0 : index
    %13 = vector.load %arg1[%c0_7, %c0_8, %c1, %c0_9] : memref<1x10x10x32xf32, #tpu.memory_space<vmem>>, vector<1x8x8x32xf32>
    %14 = vector.shape_cast %13 : vector<1x8x8x32xf32> to vector<8x8x32xf32>
    %c1_10 = arith.constant 1 : index
    %c0_11 = arith.constant 0 : index
    %15 = vector.load %arg2[%c1_10, %c0_11] : memref<9x32xf32, #tpu.memory_space<vmem>>, vector<1x32xf32>
    %16 = vector.shape_cast %15 : vector<1x32xf32> to vector<32xf32>
    %17 = vector.shape_cast %16 : vector<32xf32> to vector<1x1x32xf32>
    %18 = vector.broadcast %17 : vector<1x1x32xf32> to vector<8x8x32xf32>
    %19 = arith.mulf %14, %18 : vector<8x8x32xf32>
    %cst_12 = arith.constant dense<0.000000e+00> : vector<8x8xf32>
    %20 = vector.multi_reduction <add>, %19, %cst_12 [2] : vector<8x8x32xf32> to vector<8x8xf32>
    %21 = arith.addf %12, %20 : vector<8x8xf32>
    %c0_13 = arith.constant 0 : index
    %c0_14 = arith.constant 0 : index
    %c2 = arith.constant 2 : index
    %c0_15 = arith.constant 0 : index
    %22 = vector.load %arg1[%c0_13, %c0_14, %c2, %c0_15] : memref<1x10x10x32xf32, #tpu.memory_space<vmem>>, vector<1x8x8x32xf32>
    %23 = vector.shape_cast %22 : vector<1x8x8x32xf32> to vector<8x8x32xf32>
    %c2_16 = arith.constant 2 : index
    %c0_17 = arith.constant 0 : index
    %24 = vector.load %arg2[%c2_16, %c0_17] : memref<9x32xf32, #tpu.memory_space<vmem>>, vector<1x32xf32>
    %25 = vector.shape_cast %24 : vector<1x32xf32> to vector<32xf32>
    %26 = vector.shape_cast %25 : vector<32xf32> to vector<1x1x32xf32>
    %27 = vector.broadcast %26 : vector<1x1x32xf32> to vector<8x8x32xf32>
    %28 = arith.mulf %23, %27 : vector<8x8x32xf32>
    %cst_18 = arith.constant dense<0.000000e+00> : vector<8x8xf32>
    %29 = vector.multi_reduction <add>, %28, %cst_18 [2] : vector<8x8x32xf32> to vector<8x8xf32>
    %30 = arith.addf %21, %29 : vector<8x8xf32>
    %c0_19 = arith.constant 0 : index
    %c1_20 = arith.constant 1 : index
    %c0_21 = arith.constant 0 : index
    %c0_22 = arith.constant 0 : index
    %31 = vector.load %arg1[%c0_19, %c1_20, %c0_21, %c0_22] : memref<1x10x10x32xf32, #tpu.memory_space<vmem>>, vector<1x8x8x32xf32>
    %32 = vector.shape_cast %31 : vector<1x8x8x32xf32> to vector<8x8x32xf32>
    %c3 = arith.constant 3 : index
    %c0_23 = arith.constant 0 : index
    %33 = vector.load %arg2[%c3, %c0_23] : memref<9x32xf32, #tpu.memory_space<vmem>>, vector<1x32xf32>
    %34 = vector.shape_cast %33 : vector<1x32xf32> to vector<32xf32>
    %35 = vector.shape_cast %34 : vector<32xf32> to vector<1x1x32xf32>
    %36 = vector.broadcast %35 : vector<1x1x32xf32> to vector<8x8x32xf32>
    %37 = arith.mulf %32, %36 : vector<8x8x32xf32>
    %cst_24 = arith.constant dense<0.000000e+00> : vector<8x8xf32>
    %38 = vector.multi_reduction <add>, %37, %cst_24 [2] : vector<8x8x32xf32> to vector<8x8xf32>
    %39 = arith.addf %30, %38 : vector<8x8xf32>
    %c0_25 = arith.constant 0 : index
    %c1_26 = arith.constant 1 : index
    %c1_27 = arith.constant 1 : index
    %c0_28 = arith.constant 0 : index
    %40 = vector.load %arg1[%c0_25, %c1_26, %c1_27, %c0_28] : memref<1x10x10x32xf32, #tpu.memory_space<vmem>>, vector<1x8x8x32xf32>
    %41 = vector.shape_cast %40 : vector<1x8x8x32xf32> to vector<8x8x32xf32>
    %c4 = arith.constant 4 : index
    %c0_29 = arith.constant 0 : index
    %42 = vector.load %arg2[%c4, %c0_29] : memref<9x32xf32, #tpu.memory_space<vmem>>, vector<1x32xf32>
    %43 = vector.shape_cast %42 : vector<1x32xf32> to vector<32xf32>
    %44 = vector.shape_cast %43 : vector<32xf32> to vector<1x1x32xf32>
    %45 = vector.broadcast %44 : vector<1x1x32xf32> to vector<8x8x32xf32>
    %46 = arith.mulf %41, %45 : vector<8x8x32xf32>
    %cst_30 = arith.constant dense<0.000000e+00> : vector<8x8xf32>
    %47 = vector.multi_reduction <add>, %46, %cst_30 [2] : vector<8x8x32xf32> to vector<8x8xf32>
    %48 = arith.addf %39, %47 : vector<8x8xf32>
    %c0_31 = arith.constant 0 : index
    %c1_32 = arith.constant 1 : index
    %c2_33 = arith.constant 2 : index
    %c0_34 = arith.constant 0 : index
    %49 = vector.load %arg1[%c0_31, %c1_32, %c2_33, %c0_34] : memref<1x10x10x32xf32, #tpu.memory_space<vmem>>, vector<1x8x8x32xf32>
    %50 = vector.shape_cast %49 : vector<1x8x8x32xf32> to vector<8x8x32xf32>
    %c5 = arith.constant 5 : index
    %c0_35 = arith.constant 0 : index
    %51 = vector.load %arg2[%c5, %c0_35] : memref<9x32xf32, #tpu.memory_space<vmem>>, vector<1x32xf32>
    %52 = vector.shape_cast %51 : vector<1x32xf32> to vector<32xf32>
    %53 = vector.shape_cast %52 : vector<32xf32> to vector<1x1x32xf32>
    %54 = vector.broadcast %53 : vector<1x1x32xf32> to vector<8x8x32xf32>
    %55 = arith.mulf %50, %54 : vector<8x8x32xf32>
    %cst_36 = arith.constant dense<0.000000e+00> : vector<8x8xf32>
    %56 = vector.multi_reduction <add>, %55, %cst_36 [2] : vector<8x8x32xf32> to vector<8x8xf32>
    %57 = arith.addf %48, %56 : vector<8x8xf32>
    %c0_37 = arith.constant 0 : index
    %c2_38 = arith.constant 2 : index
    %c0_39 = arith.constant 0 : index
    %c0_40 = arith.constant 0 : index
    %58 = vector.load %arg1[%c0_37, %c2_38, %c0_39, %c0_40] : memref<1x10x10x32xf32, #tpu.memory_space<vmem>>, vector<1x8x8x32xf32>
    %59 = vector.shape_cast %58 : vector<1x8x8x32xf32> to vector<8x8x32xf32>
    %c6 = arith.constant 6 : index
    %c0_41 = arith.constant 0 : index
    %60 = vector.load %arg2[%c6, %c0_41] : memref<9x32xf32, #tpu.memory_space<vmem>>, vector<1x32xf32>
    %61 = vector.shape_cast %60 : vector<1x32xf32> to vector<32xf32>
    %62 = vector.shape_cast %61 : vector<32xf32> to vector<1x1x32xf32>
    %63 = vector.broadcast %62 : vector<1x1x32xf32> to vector<8x8x32xf32>
    %64 = arith.mulf %59, %63 : vector<8x8x32xf32>
    %cst_42 = arith.constant dense<0.000000e+00> : vector<8x8xf32>
    %65 = vector.multi_reduction <add>, %64, %cst_42 [2] : vector<8x8x32xf32> to vector<8x8xf32>
    %66 = arith.addf %57, %65 : vector<8x8xf32>
    %c0_43 = arith.constant 0 : index
    %c2_44 = arith.constant 2 : index
    %c1_45 = arith.constant 1 : index
    %c0_46 = arith.constant 0 : index
    %67 = vector.load %arg1[%c0_43, %c2_44, %c1_45, %c0_46] : memref<1x10x10x32xf32, #tpu.memory_space<vmem>>, vector<1x8x8x32xf32>
    %68 = vector.shape_cast %67 : vector<1x8x8x32xf32> to vector<8x8x32xf32>
    %c7 = arith.constant 7 : index
    %c0_47 = arith.constant 0 : index
    %69 = vector.load %arg2[%c7, %c0_47] : memref<9x32xf32, #tpu.memory_space<vmem>>, vector<1x32xf32>
    %70 = vector.shape_cast %69 : vector<1x32xf32> to vector<32xf32>
    %71 = vector.shape_cast %70 : vector<32xf32> to vector<1x1x32xf32>
    %72 = vector.broadcast %71 : vector<1x1x32xf32> to vector<8x8x32xf32>
    %73 = arith.mulf %68, %72 : vector<8x8x32xf32>
    %cst_48 = arith.constant dense<0.000000e+00> : vector<8x8xf32>
    %74 = vector.multi_reduction <add>, %73, %cst_48 [2] : vector<8x8x32xf32> to vector<8x8xf32>
    %75 = arith.addf %66, %74 : vector<8x8xf32>
    %c0_49 = arith.constant 0 : index
    %c2_50 = arith.constant 2 : index
    %c2_51 = arith.constant 2 : index
    %c0_52 = arith.constant 0 : index
    %76 = vector.load %arg1[%c0_49, %c2_50, %c2_51, %c0_52] : memref<1x10x10x32xf32, #tpu.memory_space<vmem>>, vector<1x8x8x32xf32>
    %77 = vector.shape_cast %76 : vector<1x8x8x32xf32> to vector<8x8x32xf32>
    %c8 = arith.constant 8 : index
    %c0_53 = arith.constant 0 : index
    %78 = vector.load %arg2[%c8, %c0_53] : memref<9x32xf32, #tpu.memory_space<vmem>>, vector<1x32xf32>
    %79 = vector.shape_cast %78 : vector<1x32xf32> to vector<32xf32>
    %80 = vector.shape_cast %79 : vector<32xf32> to vector<1x1x32xf32>
    %81 = vector.broadcast %80 : vector<1x1x32xf32> to vector<8x8x32xf32>
    %82 = arith.mulf %77, %81 : vector<8x8x32xf32>
    %cst_54 = arith.constant dense<0.000000e+00> : vector<8x8xf32>
    %83 = vector.multi_reduction <add>, %82, %cst_54 [2] : vector<8x8x32xf32> to vector<8x8xf32>
    %84 = arith.addf %75, %83 : vector<8x8xf32>
    %c0_55 = arith.constant 0 : index
    %c0_56 = arith.constant 0 : index
    %c0_57 = arith.constant 0 : index
    %85 = vector.load %arg4[%c0_55, %c0_56, %c0_57] : memref<1x8x8xf32, #tpu.memory_space<vmem>>, vector<1x8x8xf32>
    %86 = vector.shape_cast %85 : vector<1x8x8xf32> to vector<8x8xf32>
    %87 = vector.shape_cast %84 : vector<8x8xf32> to vector<1x8x8xf32>
    tpu.vector_store %arg4[%c0_55, %c0_56, %c0_57], %87 {strides = array<i32>} : memref<1x8x8xf32, #tpu.memory_space<vmem>>, vector<1x8x8xf32>,
    %88 = vector.shape_cast %84 : vector<8x8xf32> to vector<1x8x8xf32>
    %cst_58 = arith.constant dense<0x7F800000> : vector<1xf32>
    %89 = vector.multi_reduction <minimumf>, %88, %cst_58 [1, 2] : vector<1x8x8xf32> to vector<1xf32>
    %90 = vector.shape_cast %89 : vector<1xf32> to vector<1x1x1xf32>
    %91 = vector.extract %90[0, 0, 0] : f32 from vector<1x1x1xf32>
    %92 = vector.broadcast %91 : f32 to vector<1x1xf32>
    %c0_59 = arith.constant 0 : index
    %c0_60 = arith.constant 0 : index
    %c0_61 = arith.constant 0 : index
    %93 = vector.load %arg5[%c0_59, %c0_60, %c0_61] : memref<1x1x1xf32, #tpu.memory_space<vmem>>, vector<1x1x1xf32>
    %94 = vector.shape_cast %93 : vector<1x1x1xf32> to vector<1x1xf32>
    %95 = vector.shape_cast %92 : vector<1x1xf32> to vector<1x1x1xf32>
    tpu.vector_store %arg5[%c0_59, %c0_60, %c0_61], %95 {strides = array<i32>} : memref<1x1x1xf32, #tpu.memory_space<vmem>>, vector<1x1x1xf32>,
    %96 = vector.shape_cast %84 : vector<8x8xf32> to vector<1x8x8xf32>
    %cst_62 = arith.constant dense<0xFF800000> : vector<1xf32>
    %97 = vector.multi_reduction <maximumf>, %96, %cst_62 [1, 2] : vector<1x8x8xf32> to vector<1xf32>
    %98 = vector.shape_cast %97 : vector<1xf32> to vector<1x1x1xf32>
    %99 = vector.extract %98[0, 0, 0] : f32 from vector<1x1x1xf32>
    %100 = vector.broadcast %99 : f32 to vector<1x1xf32>
    %c0_63 = arith.constant 0 : index
    %c0_64 = arith.constant 0 : index
    %c0_65 = arith.constant 0 : index
    %101 = vector.load %arg6[%c0_63, %c0_64, %c0_65] : memref<1x1x1xf32, #tpu.memory_space<vmem>>, vector<1x1x1xf32>
    %102 = vector.shape_cast %101 : vector<1x1x1xf32> to vector<1x1xf32>
    %103 = vector.shape_cast %100 : vector<1x1xf32> to vector<1x1x1xf32>
    tpu.vector_store %arg6[%c0_63, %c0_64, %c0_65], %103 {strides = array<i32>} : memref<1x1x1xf32, #tpu.memory_space<vmem>>, vector<1x1x1xf32>,
    return
  }
  func.func @transform_0(%arg0: i32) -> (i32, i32, i32, i32) {
    %c0_i32 = arith.constant 0 : i32
    %c0_i32_0 = arith.constant 0 : i32
    %c0_i32_1 = arith.constant 0 : i32
    %c0_i32_2 = arith.constant 0 : i32
    return %arg0, %c0_i32, %c0_i32_0, %c0_i32_1 : i32, i32, i32, i32
  }
  func.func @transform_1(%arg0: i32) -> (i32, i32) {
    %c0_i32 = arith.constant 0 : i32
    %c0_i32_0 = arith.constant 0 : i32
    %c0_i32_1 = arith.constant 0 : i32
    return %c0_i32, %c0_i32_0 : i32, i32
  }
  func.func @transform_2(%arg0: i32) -> i32 {
    %c0_i32 = arith.constant 0 : i32
    %c0_i32_0 = arith.constant 0 : i32
    return %c0_i32 : i32
  }
  func.func @transform_3(%arg0: i32) -> (i32, i32, i32) {
    %c0_i32 = arith.constant 0 : i32
    %c0_i32_0 = arith.constant 0 : i32
    %c0_i32_1 = arith.constant 0 : i32
    return %arg0, %c0_i32, %c0_i32_0 : i32, i32, i32
  }
  func.func @transform_4(%arg0: i32) -> (i32, i32, i32) {
    %c0_i32 = arith.constant 0 : i32
    %c0_i32_0 = arith.constant 0 : i32
    %c0_i32_1 = arith.constant 0 : i32
    return %arg0, %c0_i32, %c0_i32_0 : i32, i32, i32
  }
  func.func @transform_5(%arg0: i32) -> (i32, i32, i32) {
    %c0_i32 = arith.constant 0 : i32
    %c0_i32_0 = arith.constant 0 : i32
    %c0_i32_1 = arith.constant 0 : i32
    return %arg0, %c0_i32, %c0_i32_0 : i32, i32, i32
  }
}

module attributes {stable_mosaic.version = 11 : i64} {
  func.func @_dtm_kernel(%arg0: i32, %arg1: i32, %arg2: memref<1x64x64xf32, #tpu.memory_space<vmem>>, %arg3: memref<64x64xf32, #tpu.memory_space<vmem>>, %arg4: memref<2xf32, #tpu.memory_space<smem>>, %arg5: memref<1x64x1xf32, #tpu.memory_space<vmem>>) attributes {dimension_semantics = [#tpu.dimension_semantics<parallel>, #tpu.dimension_semantics<parallel>], iteration_bounds = array<i64: 2, 1>, scalar_prefetch = 0 : i64, scratch_operands = 0 : i64, tpu.core_type = #tpu.core_type<tc>, window_params = [{transform_indices = @transform_0, window_bounds = array<i64: 1, 64, 64>}, {transform_indices = @transform_1, window_bounds = array<i64: 64, 64>}, {transform_indices = @transform_2, window_bounds = array<i64: 2>}, {transform_indices = @transform_3, window_bounds = array<i64: 1, 64, 1>}]} {
    %c0 = arith.constant 0 : index
    %c0_0 = arith.constant 0 : index
    %c0_1 = arith.constant 0 : index
    %0 = vector.load %arg2[%c0, %c0_0, %c0_1] : memref<1x64x64xf32, #tpu.memory_space<vmem>>, vector<1x64x64xf32>
    %1 = vector.shape_cast %0 : vector<1x64x64xf32> to vector<64x64xf32>
    %c0_2 = arith.constant 0 : index
    %c0_3 = arith.constant 0 : index
    %2 = vector.load %arg3[%c0_2, %c0_3] : memref<64x64xf32, #tpu.memory_space<vmem>>, vector<64x64xf32>
    %3 = arith.index_cast %arg0 : i32 to index
    %4 = memref.load %arg4[%3] : memref<2xf32, #tpu.memory_space<smem>>
    %5 = tpu.iota {dimensions = array<i32: 1>} : vector<64x64xi32>
    %c1_i32 = arith.constant 1 : i32
    %6 = tpu.dynamic_rotate %1 by %c1_i32 dim 1 : vector<64x64xf32>, i32 -> vector<64x64xf32>
    %c1_i32_4 = arith.constant 1 : i32
    %7 = vector.broadcast %c1_i32_4 : i32 to vector<64x64xi32>
    %8 = arith.cmpi sge, %5, %7 : vector<64x64xi32>
    %cst = arith.constant 0.000000e+00 : f32
    %9 = vector.broadcast %cst : f32 to vector<64x64xf32>
    %10 = arith.select %8, %6, %9 : vector<64x64xi1>, vector<64x64xf32>
    %11 = arith.addf %1, %10 : vector<64x64xf32>
    %c2_i32 = arith.constant 2 : i32
    %12 = tpu.dynamic_rotate %11 by %c2_i32 dim 1 : vector<64x64xf32>, i32 -> vector<64x64xf32>
    %c2_i32_5 = arith.constant 2 : i32
    %13 = vector.broadcast %c2_i32_5 : i32 to vector<64x64xi32>
    %14 = arith.cmpi sge, %5, %13 : vector<64x64xi32>
    %cst_6 = arith.constant 0.000000e+00 : f32
    %15 = vector.broadcast %cst_6 : f32 to vector<64x64xf32>
    %16 = arith.select %14, %12, %15 : vector<64x64xi1>, vector<64x64xf32>
    %17 = arith.addf %11, %16 : vector<64x64xf32>
    %c4_i32 = arith.constant 4 : i32
    %18 = tpu.dynamic_rotate %17 by %c4_i32 dim 1 : vector<64x64xf32>, i32 -> vector<64x64xf32>
    %c4_i32_7 = arith.constant 4 : i32
    %19 = vector.broadcast %c4_i32_7 : i32 to vector<64x64xi32>
    %20 = arith.cmpi sge, %5, %19 : vector<64x64xi32>
    %cst_8 = arith.constant 0.000000e+00 : f32
    %21 = vector.broadcast %cst_8 : f32 to vector<64x64xf32>
    %22 = arith.select %20, %18, %21 : vector<64x64xi1>, vector<64x64xf32>
    %23 = arith.addf %17, %22 : vector<64x64xf32>
    %c8_i32 = arith.constant 8 : i32
    %24 = tpu.dynamic_rotate %23 by %c8_i32 dim 1 : vector<64x64xf32>, i32 -> vector<64x64xf32>
    %c8_i32_9 = arith.constant 8 : i32
    %25 = vector.broadcast %c8_i32_9 : i32 to vector<64x64xi32>
    %26 = arith.cmpi sge, %5, %25 : vector<64x64xi32>
    %cst_10 = arith.constant 0.000000e+00 : f32
    %27 = vector.broadcast %cst_10 : f32 to vector<64x64xf32>
    %28 = arith.select %26, %24, %27 : vector<64x64xi1>, vector<64x64xf32>
    %29 = arith.addf %23, %28 : vector<64x64xf32>
    %c16_i32 = arith.constant 16 : i32
    %30 = tpu.dynamic_rotate %29 by %c16_i32 dim 1 : vector<64x64xf32>, i32 -> vector<64x64xf32>
    %c16_i32_11 = arith.constant 16 : i32
    %31 = vector.broadcast %c16_i32_11 : i32 to vector<64x64xi32>
    %32 = arith.cmpi sge, %5, %31 : vector<64x64xi32>
    %cst_12 = arith.constant 0.000000e+00 : f32
    %33 = vector.broadcast %cst_12 : f32 to vector<64x64xf32>
    %34 = arith.select %32, %30, %33 : vector<64x64xi1>, vector<64x64xf32>
    %35 = arith.addf %29, %34 : vector<64x64xf32>
    %c32_i32 = arith.constant 32 : i32
    %36 = tpu.dynamic_rotate %35 by %c32_i32 dim 1 : vector<64x64xf32>, i32 -> vector<64x64xf32>
    %c32_i32_13 = arith.constant 32 : i32
    %37 = vector.broadcast %c32_i32_13 : i32 to vector<64x64xi32>
    %38 = arith.cmpi sge, %5, %37 : vector<64x64xi32>
    %cst_14 = arith.constant 0.000000e+00 : f32
    %39 = vector.broadcast %cst_14 : f32 to vector<64x64xf32>
    %40 = arith.select %38, %36, %39 : vector<64x64xi1>, vector<64x64xf32>
    %41 = arith.addf %35, %40 : vector<64x64xf32>
    %42 = arith.subf %41, %1 : vector<64x64xf32>
    %43 = vector.broadcast %4 : f32 to vector<64x64xf32>
    %44 = arith.subf %43, %42 : vector<64x64xf32>
    %cst_15 = arith.constant 0.000000e+00 : f32
    %45 = vector.broadcast %cst_15 : f32 to vector<64x64xf32>
    %46 = arith.maximumf %44, %45 : vector<64x64xf32>
    %47 = arith.minimumf %46, %1 : vector<64x64xf32>
    %cst_16 = arith.constant 1.000000e+00 : f32
    %48 = vector.broadcast %cst_16 : f32 to vector<64x1xf32>
    %49 = arith.mulf %47, %2 : vector<64x64xf32>
    %cst_17 = arith.constant dense<0.000000e+00> : vector<64x1xf32>
    %50 = tpu.matmul %49, %48, %cst_17 {dimension_numbers = #tpu.dot_dimension_numbers<[1], [0], [0], [1], [0, 0, 1, 1], [], []>} : vector<64x64xf32>, vector<64x1xf32>, vector<64x1xf32> -> vector<64x1xf32>
    %cst_18 = arith.constant 1.000000e+00 : f32
    %51 = arith.divf %cst_18, %4 : f32
    %52 = vector.broadcast %51 : f32 to vector<64x1xf32>
    %53 = arith.mulf %50, %52 : vector<64x1xf32>
    %54 = math.sqrt %53 : vector<64x1xf32>
    %c0_19 = arith.constant 0 : index
    %c0_20 = arith.constant 0 : index
    %c0_21 = arith.constant 0 : index
    %55 = vector.load %arg5[%c0_19, %c0_20, %c0_21] : memref<1x64x1xf32, #tpu.memory_space<vmem>>, vector<1x64x1xf32>
    %56 = vector.shape_cast %55 : vector<1x64x1xf32> to vector<64x1xf32>
    %57 = vector.shape_cast %54 : vector<64x1xf32> to vector<1x64x1xf32>
    tpu.vector_store %arg5[%c0_19, %c0_20, %c0_21], %57 {strides = array<i32>} : memref<1x64x1xf32, #tpu.memory_space<vmem>>, vector<1x64x1xf32>,
    return
  }
  func.func @transform_0(%arg0: i32, %arg1: i32) -> (i32, i32, i32) {
    %c0_i32 = arith.constant 0 : i32
    %c0_i32_0 = arith.constant 0 : i32
    return %arg0, %arg1, %c0_i32 : i32, i32, i32
  }
  func.func @transform_1(%arg0: i32, %arg1: i32) -> (i32, i32) {
    %c0_i32 = arith.constant 0 : i32
    %c0_i32_0 = arith.constant 0 : i32
    return %arg1, %c0_i32 : i32, i32
  }
  func.func @transform_2(%arg0: i32, %arg1: i32) -> i32 {
    %c0_i32 = arith.constant 0 : i32
    %c0_i32_0 = arith.constant 0 : i32
    return %c0_i32 : i32
  }
  func.func @transform_3(%arg0: i32, %arg1: i32) -> (i32, i32, i32) {
    %c0_i32 = arith.constant 0 : i32
    %c0_i32_0 = arith.constant 0 : i32
    return %arg0, %arg1, %c0_i32 : i32, i32, i32
  }
}

module attributes {stable_mosaic.version = 11 : i64} {
  func.func @_ecc_kernel(%arg0: i32, %arg1: memref<1x9x9xf32, #tpu.memory_space<vmem>>, %arg2: memref<32xf32, #tpu.memory_space<smem>>, %arg3: memref<1x1x32xf32, #tpu.memory_space<vmem>>) attributes {dimension_semantics = [#tpu.dimension_semantics<parallel>], iteration_bounds = array<i64: 2>, scalar_prefetch = 0 : i64, scratch_operands = 0 : i64, tpu.core_type = #tpu.core_type<tc>, window_params = [{transform_indices = @transform_0, window_bounds = array<i64: 1, 9, 9>}, {transform_indices = @transform_1, window_bounds = array<i64: 32>}, {transform_indices = @transform_2, window_bounds = array<i64: 1, 1, 32>}]} {
    %c0 = arith.constant 0 : index
    %c0_0 = arith.constant 0 : index
    %c0_1 = arith.constant 0 : index
    %0 = vector.load %arg1[%c0, %c0_0, %c0_1] : memref<1x9x9xf32, #tpu.memory_space<vmem>>, vector<1x8x8xf32>
    %1 = vector.shape_cast %0 : vector<1x8x8xf32> to vector<8x8xf32>
    %c0_2 = arith.constant 0 : index
    %c0_3 = arith.constant 0 : index
    %c1 = arith.constant 1 : index
    %2 = vector.load %arg1[%c0_2, %c0_3, %c1] : memref<1x9x9xf32, #tpu.memory_space<vmem>>, vector<1x8x8xf32>
    %3 = vector.shape_cast %2 : vector<1x8x8xf32> to vector<8x8xf32>
    %c0_4 = arith.constant 0 : index
    %c1_5 = arith.constant 1 : index
    %c0_6 = arith.constant 0 : index
    %4 = vector.load %arg1[%c0_4, %c1_5, %c0_6] : memref<1x9x9xf32, #tpu.memory_space<vmem>>, vector<1x8x8xf32>
    %5 = vector.shape_cast %4 : vector<1x8x8xf32> to vector<8x8xf32>
    %c0_7 = arith.constant 0 : index
    %c1_8 = arith.constant 1 : index
    %c1_9 = arith.constant 1 : index
    %6 = vector.load %arg1[%c0_7, %c1_8, %c1_9] : memref<1x9x9xf32, #tpu.memory_space<vmem>>, vector<1x8x8xf32>
    %7 = vector.shape_cast %6 : vector<1x8x8xf32> to vector<8x8xf32>
    %8 = arith.maximumf %1, %3 : vector<8x8xf32>
    %9 = arith.maximumf %1, %5 : vector<8x8xf32>
    %10 = arith.maximumf %5, %7 : vector<8x8xf32>
    %11 = arith.maximumf %8, %10 : vector<8x8xf32>
    %12 = tpu.concatenate %1, %8, %9, %11 in 0 : vector<8x8xf32>, vector<8x8xf32>, vector<8x8xf32>, vector<8x8xf32> -> vector<32x8xf32>
    %13 = tpu.iota {dimensions = array<i32: 0>} : vector<32x8xi32>
    %c8_i32 = arith.constant 8 : i32
    %14 = vector.broadcast %c8_i32 : i32 to vector<32x8xi32>
    %15 = arith.cmpi slt, %13, %14 : vector<32x8xi32>
    %c24_i32 = arith.constant 24 : i32
    %16 = vector.broadcast %c24_i32 : i32 to vector<32x8xi32>
    %17 = arith.cmpi sge, %13, %16 : vector<32x8xi32>
    %18 = arith.ori %15, %17 : vector<32x8xi1>
    %cst = arith.constant 1.000000e+00 : f32
    %cst_10 = arith.constant -1.000000e+00 : f32
    %19 = vector.broadcast %cst : f32 to vector<32x8xf32>
    %20 = vector.broadcast %cst_10 : f32 to vector<32x8xf32>
    %21 = arith.select %18, %19, %20 : vector<32x8xi1>, vector<32x8xf32>
    %22 = tpu.iota {dimensions = array<i32: 1>} : vector<1x32xi32>
    %cst_11 = arith.constant 0.000000e+00 : f32
    %23 = vector.broadcast %cst_11 : f32 to vector<1x32xf32>
    %c0_12 = arith.constant 0 : index
    %24 = memref.load %arg2[%c0_12] : memref<32xf32, #tpu.memory_space<smem>>
    %25 = vector.broadcast %24 : f32 to vector<32x8xf32>
    %26 = arith.cmpf ole, %12, %25 : vector<32x8xf32>
    %cst_13 = arith.constant 0.000000e+00 : f32
    %27 = vector.broadcast %cst_13 : f32 to vector<32x8xf32>
    %28 = arith.select %26, %21, %27 : vector<32x8xi1>, vector<32x8xf32>
    %29 = vector.shape_cast %28 : vector<32x8xf32> to vector<1x32x8xf32>
    %cst_14 = arith.constant dense<0.000000e+00> : vector<1xf32>
    %30 = vector.multi_reduction <add>, %29, %cst_14 [1, 2] : vector<1x32x8xf32> to vector<1xf32>
    %31 = vector.shape_cast %30 : vector<1xf32> to vector<1x1x1xf32>
    %32 = vector.extract %31[0, 0, 0] : f32 from vector<1x1x1xf32>
    %33 = vector.broadcast %32 : f32 to vector<1x1xf32>
    %c0_i32 = arith.constant 0 : i32
    %34 = vector.broadcast %c0_i32 : i32 to vector<1x32xi32>
    %35 = arith.cmpi eq, %22, %34 : vector<1x32xi32>
    %cst_15 = arith.constant 0.000000e+00 : f32
    %36 = vector.shape_cast %33 : vector<1x1xf32> to vector<1x1xf32>
    %37 = vector.broadcast %36 : vector<1x1xf32> to vector<1x32xf32>
    %38 = vector.broadcast %cst_15 : f32 to vector<1x32xf32>
    %39 = arith.select %35, %37, %38 : vector<1x32xi1>, vector<1x32xf32>
    %40 = arith.addf %23, %39 : vector<1x32xf32>
    %c1_16 = arith.constant 1 : index
    %41 = memref.load %arg2[%c1_16] : memref<32xf32, #tpu.memory_space<smem>>
    %42 = vector.broadcast %41 : f32 to vector<32x8xf32>
    %43 = arith.cmpf ole, %12, %42 : vector<32x8xf32>
    %cst_17 = arith.constant 0.000000e+00 : f32
    %44 = vector.broadcast %cst_17 : f32 to vector<32x8xf32>
    %45 = arith.select %43, %21, %44 : vector<32x8xi1>, vector<32x8xf32>
    %46 = vector.shape_cast %45 : vector<32x8xf32> to vector<1x32x8xf32>
    %cst_18 = arith.constant dense<0.000000e+00> : vector<1xf32>
    %47 = vector.multi_reduction <add>, %46, %cst_18 [1, 2] : vector<1x32x8xf32> to vector<1xf32>
    %48 = vector.shape_cast %47 : vector<1xf32> to vector<1x1x1xf32>
    %49 = vector.extract %48[0, 0, 0] : f32 from vector<1x1x1xf32>
    %50 = vector.broadcast %49 : f32 to vector<1x1xf32>
    %c1_i32 = arith.constant 1 : i32
    %51 = vector.broadcast %c1_i32 : i32 to vector<1x32xi32>
    %52 = arith.cmpi eq, %22, %51 : vector<1x32xi32>
    %cst_19 = arith.constant 0.000000e+00 : f32
    %53 = vector.shape_cast %50 : vector<1x1xf32> to vector<1x1xf32>
    %54 = vector.broadcast %53 : vector<1x1xf32> to vector<1x32xf32>
    %55 = vector.broadcast %cst_19 : f32 to vector<1x32xf32>
    %56 = arith.select %52, %54, %55 : vector<1x32xi1>, vector<1x32xf32>
    %57 = arith.addf %40, %56 : vector<1x32xf32>
    %c2 = arith.constant 2 : index
    %58 = memref.load %arg2[%c2] : memref<32xf32, #tpu.memory_space<smem>>
    %59 = vector.broadcast %58 : f32 to vector<32x8xf32>
    %60 = arith.cmpf ole, %12, %59 : vector<32x8xf32>
    %cst_20 = arith.constant 0.000000e+00 : f32
    %61 = vector.broadcast %cst_20 : f32 to vector<32x8xf32>
    %62 = arith.select %60, %21, %61 : vector<32x8xi1>, vector<32x8xf32>
    %63 = vector.shape_cast %62 : vector<32x8xf32> to vector<1x32x8xf32>
    %cst_21 = arith.constant dense<0.000000e+00> : vector<1xf32>
    %64 = vector.multi_reduction <add>, %63, %cst_21 [1, 2] : vector<1x32x8xf32> to vector<1xf32>
    %65 = vector.shape_cast %64 : vector<1xf32> to vector<1x1x1xf32>
    %66 = vector.extract %65[0, 0, 0] : f32 from vector<1x1x1xf32>
    %67 = vector.broadcast %66 : f32 to vector<1x1xf32>
    %c2_i32 = arith.constant 2 : i32
    %68 = vector.broadcast %c2_i32 : i32 to vector<1x32xi32>
    %69 = arith.cmpi eq, %22, %68 : vector<1x32xi32>
    %cst_22 = arith.constant 0.000000e+00 : f32
    %70 = vector.shape_cast %67 : vector<1x1xf32> to vector<1x1xf32>
    %71 = vector.broadcast %70 : vector<1x1xf32> to vector<1x32xf32>
    %72 = vector.broadcast %cst_22 : f32 to vector<1x32xf32>
    %73 = arith.select %69, %71, %72 : vector<1x32xi1>, vector<1x32xf32>
    %74 = arith.addf %57, %73 : vector<1x32xf32>
    %c3 = arith.constant 3 : index
    %75 = memref.load %arg2[%c3] : memref<32xf32, #tpu.memory_space<smem>>
    %76 = vector.broadcast %75 : f32 to vector<32x8xf32>
    %77 = arith.cmpf ole, %12, %76 : vector<32x8xf32>
    %cst_23 = arith.constant 0.000000e+00 : f32
    %78 = vector.broadcast %cst_23 : f32 to vector<32x8xf32>
    %79 = arith.select %77, %21, %78 : vector<32x8xi1>, vector<32x8xf32>
    %80 = vector.shape_cast %79 : vector<32x8xf32> to vector<1x32x8xf32>
    %cst_24 = arith.constant dense<0.000000e+00> : vector<1xf32>
    %81 = vector.multi_reduction <add>, %80, %cst_24 [1, 2] : vector<1x32x8xf32> to vector<1xf32>
    %82 = vector.shape_cast %81 : vector<1xf32> to vector<1x1x1xf32>
    %83 = vector.extract %82[0, 0, 0] : f32 from vector<1x1x1xf32>
    %84 = vector.broadcast %83 : f32 to vector<1x1xf32>
    %c3_i32 = arith.constant 3 : i32
    %85 = vector.broadcast %c3_i32 : i32 to vector<1x32xi32>
    %86 = arith.cmpi eq, %22, %85 : vector<1x32xi32>
    %cst_25 = arith.constant 0.000000e+00 : f32
    %87 = vector.shape_cast %84 : vector<1x1xf32> to vector<1x1xf32>
    %88 = vector.broadcast %87 : vector<1x1xf32> to vector<1x32xf32>
    %89 = vector.broadcast %cst_25 : f32 to vector<1x32xf32>
    %90 = arith.select %86, %88, %89 : vector<1x32xi1>, vector<1x32xf32>
    %91 = arith.addf %74, %90 : vector<1x32xf32>
    %c4 = arith.constant 4 : index
    %92 = memref.load %arg2[%c4] : memref<32xf32, #tpu.memory_space<smem>>
    %93 = vector.broadcast %92 : f32 to vector<32x8xf32>
    %94 = arith.cmpf ole, %12, %93 : vector<32x8xf32>
    %cst_26 = arith.constant 0.000000e+00 : f32
    %95 = vector.broadcast %cst_26 : f32 to vector<32x8xf32>
    %96 = arith.select %94, %21, %95 : vector<32x8xi1>, vector<32x8xf32>
    %97 = vector.shape_cast %96 : vector<32x8xf32> to vector<1x32x8xf32>
    %cst_27 = arith.constant dense<0.000000e+00> : vector<1xf32>
    %98 = vector.multi_reduction <add>, %97, %cst_27 [1, 2] : vector<1x32x8xf32> to vector<1xf32>
    %99 = vector.shape_cast %98 : vector<1xf32> to vector<1x1x1xf32>
    %100 = vector.extract %99[0, 0, 0] : f32 from vector<1x1x1xf32>
    %101 = vector.broadcast %100 : f32 to vector<1x1xf32>
    %c4_i32 = arith.constant 4 : i32
    %102 = vector.broadcast %c4_i32 : i32 to vector<1x32xi32>
    %103 = arith.cmpi eq, %22, %102 : vector<1x32xi32>
    %cst_28 = arith.constant 0.000000e+00 : f32
    %104 = vector.shape_cast %101 : vector<1x1xf32> to vector<1x1xf32>
    %105 = vector.broadcast %104 : vector<1x1xf32> to vector<1x32xf32>
    %106 = vector.broadcast %cst_28 : f32 to vector<1x32xf32>
    %107 = arith.select %103, %105, %106 : vector<1x32xi1>, vector<1x32xf32>
    %108 = arith.addf %91, %107 : vector<1x32xf32>
    %c5 = arith.constant 5 : index
    %109 = memref.load %arg2[%c5] : memref<32xf32, #tpu.memory_space<smem>>
    %110 = vector.broadcast %109 : f32 to vector<32x8xf32>
    %111 = arith.cmpf ole, %12, %110 : vector<32x8xf32>
    %cst_29 = arith.constant 0.000000e+00 : f32
    %112 = vector.broadcast %cst_29 : f32 to vector<32x8xf32>
    %113 = arith.select %111, %21, %112 : vector<32x8xi1>, vector<32x8xf32>
    %114 = vector.shape_cast %113 : vector<32x8xf32> to vector<1x32x8xf32>
    %cst_30 = arith.constant dense<0.000000e+00> : vector<1xf32>
    %115 = vector.multi_reduction <add>, %114, %cst_30 [1, 2] : vector<1x32x8xf32> to vector<1xf32>
    %116 = vector.shape_cast %115 : vector<1xf32> to vector<1x1x1xf32>
    %117 = vector.extract %116[0, 0, 0] : f32 from vector<1x1x1xf32>
    %118 = vector.broadcast %117 : f32 to vector<1x1xf32>
    %c5_i32 = arith.constant 5 : i32
    %119 = vector.broadcast %c5_i32 : i32 to vector<1x32xi32>
    %120 = arith.cmpi eq, %22, %119 : vector<1x32xi32>
    %cst_31 = arith.constant 0.000000e+00 : f32
    %121 = vector.shape_cast %118 : vector<1x1xf32> to vector<1x1xf32>
    %122 = vector.broadcast %121 : vector<1x1xf32> to vector<1x32xf32>
    %123 = vector.broadcast %cst_31 : f32 to vector<1x32xf32>
    %124 = arith.select %120, %122, %123 : vector<1x32xi1>, vector<1x32xf32>
    %125 = arith.addf %108, %124 : vector<1x32xf32>
    %c6 = arith.constant 6 : index
    %126 = memref.load %arg2[%c6] : memref<32xf32, #tpu.memory_space<smem>>
    %127 = vector.broadcast %126 : f32 to vector<32x8xf32>
    %128 = arith.cmpf ole, %12, %127 : vector<32x8xf32>
    %cst_32 = arith.constant 0.000000e+00 : f32
    %129 = vector.broadcast %cst_32 : f32 to vector<32x8xf32>
    %130 = arith.select %128, %21, %129 : vector<32x8xi1>, vector<32x8xf32>
    %131 = vector.shape_cast %130 : vector<32x8xf32> to vector<1x32x8xf32>
    %cst_33 = arith.constant dense<0.000000e+00> : vector<1xf32>
    %132 = vector.multi_reduction <add>, %131, %cst_33 [1, 2] : vector<1x32x8xf32> to vector<1xf32>
    %133 = vector.shape_cast %132 : vector<1xf32> to vector<1x1x1xf32>
    %134 = vector.extract %133[0, 0, 0] : f32 from vector<1x1x1xf32>
    %135 = vector.broadcast %134 : f32 to vector<1x1xf32>
    %c6_i32 = arith.constant 6 : i32
    %136 = vector.broadcast %c6_i32 : i32 to vector<1x32xi32>
    %137 = arith.cmpi eq, %22, %136 : vector<1x32xi32>
    %cst_34 = arith.constant 0.000000e+00 : f32
    %138 = vector.shape_cast %135 : vector<1x1xf32> to vector<1x1xf32>
    %139 = vector.broadcast %138 : vector<1x1xf32> to vector<1x32xf32>
    %140 = vector.broadcast %cst_34 : f32 to vector<1x32xf32>
    %141 = arith.select %137, %139, %140 : vector<1x32xi1>, vector<1x32xf32>
    %142 = arith.addf %125, %141 : vector<1x32xf32>
    %c7 = arith.constant 7 : index
    %143 = memref.load %arg2[%c7] : memref<32xf32, #tpu.memory_space<smem>>
    %144 = vector.broadcast %143 : f32 to vector<32x8xf32>
    %145 = arith.cmpf ole, %12, %144 : vector<32x8xf32>
    %cst_35 = arith.constant 0.000000e+00 : f32
    %146 = vector.broadcast %cst_35 : f32 to vector<32x8xf32>
    %147 = arith.select %145, %21, %146 : vector<32x8xi1>, vector<32x8xf32>
    %148 = vector.shape_cast %147 : vector<32x8xf32> to vector<1x32x8xf32>
    %cst_36 = arith.constant dense<0.000000e+00> : vector<1xf32>
    %149 = vector.multi_reduction <add>, %148, %cst_36 [1, 2] : vector<1x32x8xf32> to vector<1xf32>
    %150 = vector.shape_cast %149 : vector<1xf32> to vector<1x1x1xf32>
    %151 = vector.extract %150[0, 0, 0] : f32 from vector<1x1x1xf32>
    %152 = vector.broadcast %151 : f32 to vector<1x1xf32>
    %c7_i32 = arith.constant 7 : i32
    %153 = vector.broadcast %c7_i32 : i32 to vector<1x32xi32>
    %154 = arith.cmpi eq, %22, %153 : vector<1x32xi32>
    %cst_37 = arith.constant 0.000000e+00 : f32
    %155 = vector.shape_cast %152 : vector<1x1xf32> to vector<1x1xf32>
    %156 = vector.broadcast %155 : vector<1x1xf32> to vector<1x32xf32>
    %157 = vector.broadcast %cst_37 : f32 to vector<1x32xf32>
    %158 = arith.select %154, %156, %157 : vector<1x32xi1>, vector<1x32xf32>
    %159 = arith.addf %142, %158 : vector<1x32xf32>
    %c8 = arith.constant 8 : index
    %160 = memref.load %arg2[%c8] : memref<32xf32, #tpu.memory_space<smem>>
    %161 = vector.broadcast %160 : f32 to vector<32x8xf32>
    %162 = arith.cmpf ole, %12, %161 : vector<32x8xf32>
    %cst_38 = arith.constant 0.000000e+00 : f32
    %163 = vector.broadcast %cst_38 : f32 to vector<32x8xf32>
    %164 = arith.select %162, %21, %163 : vector<32x8xi1>, vector<32x8xf32>
    %165 = vector.shape_cast %164 : vector<32x8xf32> to vector<1x32x8xf32>
    %cst_39 = arith.constant dense<0.000000e+00> : vector<1xf32>
    %166 = vector.multi_reduction <add>, %165, %cst_39 [1, 2] : vector<1x32x8xf32> to vector<1xf32>
    %167 = vector.shape_cast %166 : vector<1xf32> to vector<1x1x1xf32>
    %168 = vector.extract %167[0, 0, 0] : f32 from vector<1x1x1xf32>
    %169 = vector.broadcast %168 : f32 to vector<1x1xf32>
    %c8_i32_40 = arith.constant 8 : i32
    %170 = vector.broadcast %c8_i32_40 : i32 to vector<1x32xi32>
    %171 = arith.cmpi eq, %22, %170 : vector<1x32xi32>
    %cst_41 = arith.constant 0.000000e+00 : f32
    %172 = vector.shape_cast %169 : vector<1x1xf32> to vector<1x1xf32>
    %173 = vector.broadcast %172 : vector<1x1xf32> to vector<1x32xf32>
    %174 = vector.broadcast %cst_41 : f32 to vector<1x32xf32>
    %175 = arith.select %171, %173, %174 : vector<1x32xi1>, vector<1x32xf32>
    %176 = arith.addf %159, %175 : vector<1x32xf32>
    %c9 = arith.constant 9 : index
    %177 = memref.load %arg2[%c9] : memref<32xf32, #tpu.memory_space<smem>>
    %178 = vector.broadcast %177 : f32 to vector<32x8xf32>
    %179 = arith.cmpf ole, %12, %178 : vector<32x8xf32>
    %cst_42 = arith.constant 0.000000e+00 : f32
    %180 = vector.broadcast %cst_42 : f32 to vector<32x8xf32>
    %181 = arith.select %179, %21, %180 : vector<32x8xi1>, vector<32x8xf32>
    %182 = vector.shape_cast %181 : vector<32x8xf32> to vector<1x32x8xf32>
    %cst_43 = arith.constant dense<0.000000e+00> : vector<1xf32>
    %183 = vector.multi_reduction <add>, %182, %cst_43 [1, 2] : vector<1x32x8xf32> to vector<1xf32>
    %184 = vector.shape_cast %183 : vector<1xf32> to vector<1x1x1xf32>
    %185 = vector.extract %184[0, 0, 0] : f32 from vector<1x1x1xf32>
    %186 = vector.broadcast %185 : f32 to vector<1x1xf32>
    %c9_i32 = arith.constant 9 : i32
    %187 = vector.broadcast %c9_i32 : i32 to vector<1x32xi32>
    %188 = arith.cmpi eq, %22, %187 : vector<1x32xi32>
    %cst_44 = arith.constant 0.000000e+00 : f32
    %189 = vector.shape_cast %186 : vector<1x1xf32> to vector<1x1xf32>
    %190 = vector.broadcast %189 : vector<1x1xf32> to vector<1x32xf32>
    %191 = vector.broadcast %cst_44 : f32 to vector<1x32xf32>
    %192 = arith.select %188, %190, %191 : vector<1x32xi1>, vector<1x32xf32>
    %193 = arith.addf %176, %192 : vector<1x32xf32>
    %c10 = arith.constant 10 : index
    %194 = memref.load %arg2[%c10] : memref<32xf32, #tpu.memory_space<smem>>
    %195 = vector.broadcast %194 : f32 to vector<32x8xf32>
    %196 = arith.cmpf ole, %12, %195 : vector<32x8xf32>
    %cst_45 = arith.constant 0.000000e+00 : f32
    %197 = vector.broadcast %cst_45 : f32 to vector<32x8xf32>
    %198 = arith.select %196, %21, %197 : vector<32x8xi1>, vector<32x8xf32>
    %199 = vector.shape_cast %198 : vector<32x8xf32> to vector<1x32x8xf32>
    %cst_46 = arith.constant dense<0.000000e+00> : vector<1xf32>
    %200 = vector.multi_reduction <add>, %199, %cst_46 [1, 2] : vector<1x32x8xf32> to vector<1xf32>
    %201 = vector.shape_cast %200 : vector<1xf32> to vector<1x1x1xf32>
    %202 = vector.extract %201[0, 0, 0] : f32 from vector<1x1x1xf32>
    %203 = vector.broadcast %202 : f32 to vector<1x1xf32>
    %c10_i32 = arith.constant 10 : i32
    %204 = vector.broadcast %c10_i32 : i32 to vector<1x32xi32>
    %205 = arith.cmpi eq, %22, %204 : vector<1x32xi32>
    %cst_47 = arith.constant 0.000000e+00 : f32
    %206 = vector.shape_cast %203 : vector<1x1xf32> to vector<1x1xf32>
    %207 = vector.broadcast %206 : vector<1x1xf32> to vector<1x32xf32>
    %208 = vector.broadcast %cst_47 : f32 to vector<1x32xf32>
    %209 = arith.select %205, %207, %208 : vector<1x32xi1>, vector<1x32xf32>
    %210 = arith.addf %193, %209 : vector<1x32xf32>
    %c11 = arith.constant 11 : index
    %211 = memref.load %arg2[%c11] : memref<32xf32, #tpu.memory_space<smem>>
    %212 = vector.broadcast %211 : f32 to vector<32x8xf32>
    %213 = arith.cmpf ole, %12, %212 : vector<32x8xf32>
    %cst_48 = arith.constant 0.000000e+00 : f32
    %214 = vector.broadcast %cst_48 : f32 to vector<32x8xf32>
    %215 = arith.select %213, %21, %214 : vector<32x8xi1>, vector<32x8xf32>
    %216 = vector.shape_cast %215 : vector<32x8xf32> to vector<1x32x8xf32>
    %cst_49 = arith.constant dense<0.000000e+00> : vector<1xf32>
    %217 = vector.multi_reduction <add>, %216, %cst_49 [1, 2] : vector<1x32x8xf32> to vector<1xf32>
    %218 = vector.shape_cast %217 : vector<1xf32> to vector<1x1x1xf32>
    %219 = vector.extract %218[0, 0, 0] : f32 from vector<1x1x1xf32>
    %220 = vector.broadcast %219 : f32 to vector<1x1xf32>
    %c11_i32 = arith.constant 11 : i32
    %221 = vector.broadcast %c11_i32 : i32 to vector<1x32xi32>
    %222 = arith.cmpi eq, %22, %221 : vector<1x32xi32>
    %cst_50 = arith.constant 0.000000e+00 : f32
    %223 = vector.shape_cast %220 : vector<1x1xf32> to vector<1x1xf32>
    %224 = vector.broadcast %223 : vector<1x1xf32> to vector<1x32xf32>
    %225 = vector.broadcast %cst_50 : f32 to vector<1x32xf32>
    %226 = arith.select %222, %224, %225 : vector<1x32xi1>, vector<1x32xf32>
    %227 = arith.addf %210, %226 : vector<1x32xf32>
    %c12 = arith.constant 12 : index
    %228 = memref.load %arg2[%c12] : memref<32xf32, #tpu.memory_space<smem>>
    %229 = vector.broadcast %228 : f32 to vector<32x8xf32>
    %230 = arith.cmpf ole, %12, %229 : vector<32x8xf32>
    %cst_51 = arith.constant 0.000000e+00 : f32
    %231 = vector.broadcast %cst_51 : f32 to vector<32x8xf32>
    %232 = arith.select %230, %21, %231 : vector<32x8xi1>, vector<32x8xf32>
    %233 = vector.shape_cast %232 : vector<32x8xf32> to vector<1x32x8xf32>
    %cst_52 = arith.constant dense<0.000000e+00> : vector<1xf32>
    %234 = vector.multi_reduction <add>, %233, %cst_52 [1, 2] : vector<1x32x8xf32> to vector<1xf32>
    %235 = vector.shape_cast %234 : vector<1xf32> to vector<1x1x1xf32>
    %236 = vector.extract %235[0, 0, 0] : f32 from vector<1x1x1xf32>
    %237 = vector.broadcast %236 : f32 to vector<1x1xf32>
    %c12_i32 = arith.constant 12 : i32
    %238 = vector.broadcast %c12_i32 : i32 to vector<1x32xi32>
    %239 = arith.cmpi eq, %22, %238 : vector<1x32xi32>
    %cst_53 = arith.constant 0.000000e+00 : f32
    %240 = vector.shape_cast %237 : vector<1x1xf32> to vector<1x1xf32>
    %241 = vector.broadcast %240 : vector<1x1xf32> to vector<1x32xf32>
    %242 = vector.broadcast %cst_53 : f32 to vector<1x32xf32>
    %243 = arith.select %239, %241, %242 : vector<1x32xi1>, vector<1x32xf32>
    %244 = arith.addf %227, %243 : vector<1x32xf32>
    %c13 = arith.constant 13 : index
    %245 = memref.load %arg2[%c13] : memref<32xf32, #tpu.memory_space<smem>>
    %246 = vector.broadcast %245 : f32 to vector<32x8xf32>
    %247 = arith.cmpf ole, %12, %246 : vector<32x8xf32>
    %cst_54 = arith.constant 0.000000e+00 : f32
    %248 = vector.broadcast %cst_54 : f32 to vector<32x8xf32>
    %249 = arith.select %247, %21, %248 : vector<32x8xi1>, vector<32x8xf32>
    %250 = vector.shape_cast %249 : vector<32x8xf32> to vector<1x32x8xf32>
    %cst_55 = arith.constant dense<0.000000e+00> : vector<1xf32>
    %251 = vector.multi_reduction <add>, %250, %cst_55 [1, 2] : vector<1x32x8xf32> to vector<1xf32>
    %252 = vector.shape_cast %251 : vector<1xf32> to vector<1x1x1xf32>
    %253 = vector.extract %252[0, 0, 0] : f32 from vector<1x1x1xf32>
    %254 = vector.broadcast %253 : f32 to vector<1x1xf32>
    %c13_i32 = arith.constant 13 : i32
    %255 = vector.broadcast %c13_i32 : i32 to vector<1x32xi32>
    %256 = arith.cmpi eq, %22, %255 : vector<1x32xi32>
    %cst_56 = arith.constant 0.000000e+00 : f32
    %257 = vector.shape_cast %254 : vector<1x1xf32> to vector<1x1xf32>
    %258 = vector.broadcast %257 : vector<1x1xf32> to vector<1x32xf32>
    %259 = vector.broadcast %cst_56 : f32 to vector<1x32xf32>
    %260 = arith.select %256, %258, %259 : vector<1x32xi1>, vector<1x32xf32>
    %261 = arith.addf %244, %260 : vector<1x32xf32>
    %c14 = arith.constant 14 : index
    %262 = memref.load %arg2[%c14] : memref<32xf32, #tpu.memory_space<smem>>
    %263 = vector.broadcast %262 : f32 to vector<32x8xf32>
    %264 = arith.cmpf ole, %12, %263 : vector<32x8xf32>
    %cst_57 = arith.constant 0.000000e+00 : f32
    %265 = vector.broadcast %cst_57 : f32 to vector<32x8xf32>
    %266 = arith.select %264, %21, %265 : vector<32x8xi1>, vector<32x8xf32>
    %267 = vector.shape_cast %266 : vector<32x8xf32> to vector<1x32x8xf32>
    %cst_58 = arith.constant dense<0.000000e+00> : vector<1xf32>
    %268 = vector.multi_reduction <add>, %267, %cst_58 [1, 2] : vector<1x32x8xf32> to vector<1xf32>
    %269 = vector.shape_cast %268 : vector<1xf32> to vector<1x1x1xf32>
    %270 = vector.extract %269[0, 0, 0] : f32 from vector<1x1x1xf32>
    %271 = vector.broadcast %270 : f32 to vector<1x1xf32>
    %c14_i32 = arith.constant 14 : i32
    %272 = vector.broadcast %c14_i32 : i32 to vector<1x32xi32>
    %273 = arith.cmpi eq, %22, %272 : vector<1x32xi32>
    %cst_59 = arith.constant 0.000000e+00 : f32
    %274 = vector.shape_cast %271 : vector<1x1xf32> to vector<1x1xf32>
    %275 = vector.broadcast %274 : vector<1x1xf32> to vector<1x32xf32>
    %276 = vector.broadcast %cst_59 : f32 to vector<1x32xf32>
    %277 = arith.select %273, %275, %276 : vector<1x32xi1>, vector<1x32xf32>
    %278 = arith.addf %261, %277 : vector<1x32xf32>
    %c15 = arith.constant 15 : index
    %279 = memref.load %arg2[%c15] : memref<32xf32, #tpu.memory_space<smem>>
    %280 = vector.broadcast %279 : f32 to vector<32x8xf32>
    %281 = arith.cmpf ole, %12, %280 : vector<32x8xf32>
    %cst_60 = arith.constant 0.000000e+00 : f32
    %282 = vector.broadcast %cst_60 : f32 to vector<32x8xf32>
    %283 = arith.select %281, %21, %282 : vector<32x8xi1>, vector<32x8xf32>
    %284 = vector.shape_cast %283 : vector<32x8xf32> to vector<1x32x8xf32>
    %cst_61 = arith.constant dense<0.000000e+00> : vector<1xf32>
    %285 = vector.multi_reduction <add>, %284, %cst_61 [1, 2] : vector<1x32x8xf32> to vector<1xf32>
    %286 = vector.shape_cast %285 : vector<1xf32> to vector<1x1x1xf32>
    %287 = vector.extract %286[0, 0, 0] : f32 from vector<1x1x1xf32>
    %288 = vector.broadcast %287 : f32 to vector<1x1xf32>
    %c15_i32 = arith.constant 15 : i32
    %289 = vector.broadcast %c15_i32 : i32 to vector<1x32xi32>
    %290 = arith.cmpi eq, %22, %289 : vector<1x32xi32>
    %cst_62 = arith.constant 0.000000e+00 : f32
    %291 = vector.shape_cast %288 : vector<1x1xf32> to vector<1x1xf32>
    %292 = vector.broadcast %291 : vector<1x1xf32> to vector<1x32xf32>
    %293 = vector.broadcast %cst_62 : f32 to vector<1x32xf32>
    %294 = arith.select %290, %292, %293 : vector<1x32xi1>, vector<1x32xf32>
    %295 = arith.addf %278, %294 : vector<1x32xf32>
    %c16 = arith.constant 16 : index
    %296 = memref.load %arg2[%c16] : memref<32xf32, #tpu.memory_space<smem>>
    %297 = vector.broadcast %296 : f32 to vector<32x8xf32>
    %298 = arith.cmpf ole, %12, %297 : vector<32x8xf32>
    %cst_63 = arith.constant 0.000000e+00 : f32
    %299 = vector.broadcast %cst_63 : f32 to vector<32x8xf32>
    %300 = arith.select %298, %21, %299 : vector<32x8xi1>, vector<32x8xf32>
    %301 = vector.shape_cast %300 : vector<32x8xf32> to vector<1x32x8xf32>
    %cst_64 = arith.constant dense<0.000000e+00> : vector<1xf32>
    %302 = vector.multi_reduction <add>, %301, %cst_64 [1, 2] : vector<1x32x8xf32> to vector<1xf32>
    %303 = vector.shape_cast %302 : vector<1xf32> to vector<1x1x1xf32>
    %304 = vector.extract %303[0, 0, 0] : f32 from vector<1x1x1xf32>
    %305 = vector.broadcast %304 : f32 to vector<1x1xf32>
    %c16_i32 = arith.constant 16 : i32
    %306 = vector.broadcast %c16_i32 : i32 to vector<1x32xi32>
    %307 = arith.cmpi eq, %22, %306 : vector<1x32xi32>
    %cst_65 = arith.constant 0.000000e+00 : f32
    %308 = vector.shape_cast %305 : vector<1x1xf32> to vector<1x1xf32>
    %309 = vector.broadcast %308 : vector<1x1xf32> to vector<1x32xf32>
    %310 = vector.broadcast %cst_65 : f32 to vector<1x32xf32>
    %311 = arith.select %307, %309, %310 : vector<1x32xi1>, vector<1x32xf32>
    %312 = arith.addf %295, %311 : vector<1x32xf32>
    %c17 = arith.constant 17 : index
    %313 = memref.load %arg2[%c17] : memref<32xf32, #tpu.memory_space<smem>>
    %314 = vector.broadcast %313 : f32 to vector<32x8xf32>
    %315 = arith.cmpf ole, %12, %314 : vector<32x8xf32>
    %cst_66 = arith.constant 0.000000e+00 : f32
    %316 = vector.broadcast %cst_66 : f32 to vector<32x8xf32>
    %317 = arith.select %315, %21, %316 : vector<32x8xi1>, vector<32x8xf32>
    %318 = vector.shape_cast %317 : vector<32x8xf32> to vector<1x32x8xf32>
    %cst_67 = arith.constant dense<0.000000e+00> : vector<1xf32>
    %319 = vector.multi_reduction <add>, %318, %cst_67 [1, 2] : vector<1x32x8xf32> to vector<1xf32>
    %320 = vector.shape_cast %319 : vector<1xf32> to vector<1x1x1xf32>
    %321 = vector.extract %320[0, 0, 0] : f32 from vector<1x1x1xf32>
    %322 = vector.broadcast %321 : f32 to vector<1x1xf32>
    %c17_i32 = arith.constant 17 : i32
    %323 = vector.broadcast %c17_i32 : i32 to vector<1x32xi32>
    %324 = arith.cmpi eq, %22, %323 : vector<1x32xi32>
    %cst_68 = arith.constant 0.000000e+00 : f32
    %325 = vector.shape_cast %322 : vector<1x1xf32> to vector<1x1xf32>
    %326 = vector.broadcast %325 : vector<1x1xf32> to vector<1x32xf32>
    %327 = vector.broadcast %cst_68 : f32 to vector<1x32xf32>
    %328 = arith.select %324, %326, %327 : vector<1x32xi1>, vector<1x32xf32>
    %329 = arith.addf %312, %328 : vector<1x32xf32>
    %c18 = arith.constant 18 : index
    %330 = memref.load %arg2[%c18] : memref<32xf32, #tpu.memory_space<smem>>
    %331 = vector.broadcast %330 : f32 to vector<32x8xf32>
    %332 = arith.cmpf ole, %12, %331 : vector<32x8xf32>
    %cst_69 = arith.constant 0.000000e+00 : f32
    %333 = vector.broadcast %cst_69 : f32 to vector<32x8xf32>
    %334 = arith.select %332, %21, %333 : vector<32x8xi1>, vector<32x8xf32>
    %335 = vector.shape_cast %334 : vector<32x8xf32> to vector<1x32x8xf32>
    %cst_70 = arith.constant dense<0.000000e+00> : vector<1xf32>
    %336 = vector.multi_reduction <add>, %335, %cst_70 [1, 2] : vector<1x32x8xf32> to vector<1xf32>
    %337 = vector.shape_cast %336 : vector<1xf32> to vector<1x1x1xf32>
    %338 = vector.extract %337[0, 0, 0] : f32 from vector<1x1x1xf32>
    %339 = vector.broadcast %338 : f32 to vector<1x1xf32>
    %c18_i32 = arith.constant 18 : i32
    %340 = vector.broadcast %c18_i32 : i32 to vector<1x32xi32>
    %341 = arith.cmpi eq, %22, %340 : vector<1x32xi32>
    %cst_71 = arith.constant 0.000000e+00 : f32
    %342 = vector.shape_cast %339 : vector<1x1xf32> to vector<1x1xf32>
    %343 = vector.broadcast %342 : vector<1x1xf32> to vector<1x32xf32>
    %344 = vector.broadcast %cst_71 : f32 to vector<1x32xf32>
    %345 = arith.select %341, %343, %344 : vector<1x32xi1>, vector<1x32xf32>
    %346 = arith.addf %329, %345 : vector<1x32xf32>
    %c19 = arith.constant 19 : index
    %347 = memref.load %arg2[%c19] : memref<32xf32, #tpu.memory_space<smem>>
    %348 = vector.broadcast %347 : f32 to vector<32x8xf32>
    %349 = arith.cmpf ole, %12, %348 : vector<32x8xf32>
    %cst_72 = arith.constant 0.000000e+00 : f32
    %350 = vector.broadcast %cst_72 : f32 to vector<32x8xf32>
    %351 = arith.select %349, %21, %350 : vector<32x8xi1>, vector<32x8xf32>
    %352 = vector.shape_cast %351 : vector<32x8xf32> to vector<1x32x8xf32>
    %cst_73 = arith.constant dense<0.000000e+00> : vector<1xf32>
    %353 = vector.multi_reduction <add>, %352, %cst_73 [1, 2] : vector<1x32x8xf32> to vector<1xf32>
    %354 = vector.shape_cast %353 : vector<1xf32> to vector<1x1x1xf32>
    %355 = vector.extract %354[0, 0, 0] : f32 from vector<1x1x1xf32>
    %356 = vector.broadcast %355 : f32 to vector<1x1xf32>
    %c19_i32 = arith.constant 19 : i32
    %357 = vector.broadcast %c19_i32 : i32 to vector<1x32xi32>
    %358 = arith.cmpi eq, %22, %357 : vector<1x32xi32>
    %cst_74 = arith.constant 0.000000e+00 : f32
    %359 = vector.shape_cast %356 : vector<1x1xf32> to vector<1x1xf32>
    %360 = vector.broadcast %359 : vector<1x1xf32> to vector<1x32xf32>
    %361 = vector.broadcast %cst_74 : f32 to vector<1x32xf32>
    %362 = arith.select %358, %360, %361 : vector<1x32xi1>, vector<1x32xf32>
    %363 = arith.addf %346, %362 : vector<1x32xf32>
    %c20 = arith.constant 20 : index
    %364 = memref.load %arg2[%c20] : memref<32xf32, #tpu.memory_space<smem>>
    %365 = vector.broadcast %364 : f32 to vector<32x8xf32>
    %366 = arith.cmpf ole, %12, %365 : vector<32x8xf32>
    %cst_75 = arith.constant 0.000000e+00 : f32
    %367 = vector.broadcast %cst_75 : f32 to vector<32x8xf32>
    %368 = arith.select %366, %21, %367 : vector<32x8xi1>, vector<32x8xf32>
    %369 = vector.shape_cast %368 : vector<32x8xf32> to vector<1x32x8xf32>
    %cst_76 = arith.constant dense<0.000000e+00> : vector<1xf32>
    %370 = vector.multi_reduction <add>, %369, %cst_76 [1, 2] : vector<1x32x8xf32> to vector<1xf32>
    %371 = vector.shape_cast %370 : vector<1xf32> to vector<1x1x1xf32>
    %372 = vector.extract %371[0, 0, 0] : f32 from vector<1x1x1xf32>
    %373 = vector.broadcast %372 : f32 to vector<1x1xf32>
    %c20_i32 = arith.constant 20 : i32
    %374 = vector.broadcast %c20_i32 : i32 to vector<1x32xi32>
    %375 = arith.cmpi eq, %22, %374 : vector<1x32xi32>
    %cst_77 = arith.constant 0.000000e+00 : f32
    %376 = vector.shape_cast %373 : vector<1x1xf32> to vector<1x1xf32>
    %377 = vector.broadcast %376 : vector<1x1xf32> to vector<1x32xf32>
    %378 = vector.broadcast %cst_77 : f32 to vector<1x32xf32>
    %379 = arith.select %375, %377, %378 : vector<1x32xi1>, vector<1x32xf32>
    %380 = arith.addf %363, %379 : vector<1x32xf32>
    %c21 = arith.constant 21 : index
    %381 = memref.load %arg2[%c21] : memref<32xf32, #tpu.memory_space<smem>>
    %382 = vector.broadcast %381 : f32 to vector<32x8xf32>
    %383 = arith.cmpf ole, %12, %382 : vector<32x8xf32>
    %cst_78 = arith.constant 0.000000e+00 : f32
    %384 = vector.broadcast %cst_78 : f32 to vector<32x8xf32>
    %385 = arith.select %383, %21, %384 : vector<32x8xi1>, vector<32x8xf32>
    %386 = vector.shape_cast %385 : vector<32x8xf32> to vector<1x32x8xf32>
    %cst_79 = arith.constant dense<0.000000e+00> : vector<1xf32>
    %387 = vector.multi_reduction <add>, %386, %cst_79 [1, 2] : vector<1x32x8xf32> to vector<1xf32>
    %388 = vector.shape_cast %387 : vector<1xf32> to vector<1x1x1xf32>
    %389 = vector.extract %388[0, 0, 0] : f32 from vector<1x1x1xf32>
    %390 = vector.broadcast %389 : f32 to vector<1x1xf32>
    %c21_i32 = arith.constant 21 : i32
    %391 = vector.broadcast %c21_i32 : i32 to vector<1x32xi32>
    %392 = arith.cmpi eq, %22, %391 : vector<1x32xi32>
    %cst_80 = arith.constant 0.000000e+00 : f32
    %393 = vector.shape_cast %390 : vector<1x1xf32> to vector<1x1xf32>
    %394 = vector.broadcast %393 : vector<1x1xf32> to vector<1x32xf32>
    %395 = vector.broadcast %cst_80 : f32 to vector<1x32xf32>
    %396 = arith.select %392, %394, %395 : vector<1x32xi1>, vector<1x32xf32>
    %397 = arith.addf %380, %396 : vector<1x32xf32>
    %c22 = arith.constant 22 : index
    %398 = memref.load %arg2[%c22] : memref<32xf32, #tpu.memory_space<smem>>
    %399 = vector.broadcast %398 : f32 to vector<32x8xf32>
    %400 = arith.cmpf ole, %12, %399 : vector<32x8xf32>
    %cst_81 = arith.constant 0.000000e+00 : f32
    %401 = vector.broadcast %cst_81 : f32 to vector<32x8xf32>
    %402 = arith.select %400, %21, %401 : vector<32x8xi1>, vector<32x8xf32>
    %403 = vector.shape_cast %402 : vector<32x8xf32> to vector<1x32x8xf32>
    %cst_82 = arith.constant dense<0.000000e+00> : vector<1xf32>
    %404 = vector.multi_reduction <add>, %403, %cst_82 [1, 2] : vector<1x32x8xf32> to vector<1xf32>
    %405 = vector.shape_cast %404 : vector<1xf32> to vector<1x1x1xf32>
    %406 = vector.extract %405[0, 0, 0] : f32 from vector<1x1x1xf32>
    %407 = vector.broadcast %406 : f32 to vector<1x1xf32>
    %c22_i32 = arith.constant 22 : i32
    %408 = vector.broadcast %c22_i32 : i32 to vector<1x32xi32>
    %409 = arith.cmpi eq, %22, %408 : vector<1x32xi32>
    %cst_83 = arith.constant 0.000000e+00 : f32
    %410 = vector.shape_cast %407 : vector<1x1xf32> to vector<1x1xf32>
    %411 = vector.broadcast %410 : vector<1x1xf32> to vector<1x32xf32>
    %412 = vector.broadcast %cst_83 : f32 to vector<1x32xf32>
    %413 = arith.select %409, %411, %412 : vector<1x32xi1>, vector<1x32xf32>
    %414 = arith.addf %397, %413 : vector<1x32xf32>
    %c23 = arith.constant 23 : index
    %415 = memref.load %arg2[%c23] : memref<32xf32, #tpu.memory_space<smem>>
    %416 = vector.broadcast %415 : f32 to vector<32x8xf32>
    %417 = arith.cmpf ole, %12, %416 : vector<32x8xf32>
    %cst_84 = arith.constant 0.000000e+00 : f32
    %418 = vector.broadcast %cst_84 : f32 to vector<32x8xf32>
    %419 = arith.select %417, %21, %418 : vector<32x8xi1>, vector<32x8xf32>
    %420 = vector.shape_cast %419 : vector<32x8xf32> to vector<1x32x8xf32>
    %cst_85 = arith.constant dense<0.000000e+00> : vector<1xf32>
    %421 = vector.multi_reduction <add>, %420, %cst_85 [1, 2] : vector<1x32x8xf32> to vector<1xf32>
    %422 = vector.shape_cast %421 : vector<1xf32> to vector<1x1x1xf32>
    %423 = vector.extract %422[0, 0, 0] : f32 from vector<1x1x1xf32>
    %424 = vector.broadcast %423 : f32 to vector<1x1xf32>
    %c23_i32 = arith.constant 23 : i32
    %425 = vector.broadcast %c23_i32 : i32 to vector<1x32xi32>
    %426 = arith.cmpi eq, %22, %425 : vector<1x32xi32>
    %cst_86 = arith.constant 0.000000e+00 : f32
    %427 = vector.shape_cast %424 : vector<1x1xf32> to vector<1x1xf32>
    %428 = vector.broadcast %427 : vector<1x1xf32> to vector<1x32xf32>
    %429 = vector.broadcast %cst_86 : f32 to vector<1x32xf32>
    %430 = arith.select %426, %428, %429 : vector<1x32xi1>, vector<1x32xf32>
    %431 = arith.addf %414, %430 : vector<1x32xf32>
    %c24 = arith.constant 24 : index
    %432 = memref.load %arg2[%c24] : memref<32xf32, #tpu.memory_space<smem>>
    %433 = vector.broadcast %432 : f32 to vector<32x8xf32>
    %434 = arith.cmpf ole, %12, %433 : vector<32x8xf32>
    %cst_87 = arith.constant 0.000000e+00 : f32
    %435 = vector.broadcast %cst_87 : f32 to vector<32x8xf32>
    %436 = arith.select %434, %21, %435 : vector<32x8xi1>, vector<32x8xf32>
    %437 = vector.shape_cast %436 : vector<32x8xf32> to vector<1x32x8xf32>
    %cst_88 = arith.constant dense<0.000000e+00> : vector<1xf32>
    %438 = vector.multi_reduction <add>, %437, %cst_88 [1, 2] : vector<1x32x8xf32> to vector<1xf32>
    %439 = vector.shape_cast %438 : vector<1xf32> to vector<1x1x1xf32>
    %440 = vector.extract %439[0, 0, 0] : f32 from vector<1x1x1xf32>
    %441 = vector.broadcast %440 : f32 to vector<1x1xf32>
    %c24_i32_89 = arith.constant 24 : i32
    %442 = vector.broadcast %c24_i32_89 : i32 to vector<1x32xi32>
    %443 = arith.cmpi eq, %22, %442 : vector<1x32xi32>
    %cst_90 = arith.constant 0.000000e+00 : f32
    %444 = vector.shape_cast %441 : vector<1x1xf32> to vector<1x1xf32>
    %445 = vector.broadcast %444 : vector<1x1xf32> to vector<1x32xf32>
    %446 = vector.broadcast %cst_90 : f32 to vector<1x32xf32>
    %447 = arith.select %443, %445, %446 : vector<1x32xi1>, vector<1x32xf32>
    %448 = arith.addf %431, %447 : vector<1x32xf32>
    %c25 = arith.constant 25 : index
    %449 = memref.load %arg2[%c25] : memref<32xf32, #tpu.memory_space<smem>>
    %450 = vector.broadcast %449 : f32 to vector<32x8xf32>
    %451 = arith.cmpf ole, %12, %450 : vector<32x8xf32>
    %cst_91 = arith.constant 0.000000e+00 : f32
    %452 = vector.broadcast %cst_91 : f32 to vector<32x8xf32>
    %453 = arith.select %451, %21, %452 : vector<32x8xi1>, vector<32x8xf32>
    %454 = vector.shape_cast %453 : vector<32x8xf32> to vector<1x32x8xf32>
    %cst_92 = arith.constant dense<0.000000e+00> : vector<1xf32>
    %455 = vector.multi_reduction <add>, %454, %cst_92 [1, 2] : vector<1x32x8xf32> to vector<1xf32>
    %456 = vector.shape_cast %455 : vector<1xf32> to vector<1x1x1xf32>
    %457 = vector.extract %456[0, 0, 0] : f32 from vector<1x1x1xf32>
    %458 = vector.broadcast %457 : f32 to vector<1x1xf32>
    %c25_i32 = arith.constant 25 : i32
    %459 = vector.broadcast %c25_i32 : i32 to vector<1x32xi32>
    %460 = arith.cmpi eq, %22, %459 : vector<1x32xi32>
    %cst_93 = arith.constant 0.000000e+00 : f32
    %461 = vector.shape_cast %458 : vector<1x1xf32> to vector<1x1xf32>
    %462 = vector.broadcast %461 : vector<1x1xf32> to vector<1x32xf32>
    %463 = vector.broadcast %cst_93 : f32 to vector<1x32xf32>
    %464 = arith.select %460, %462, %463 : vector<1x32xi1>, vector<1x32xf32>
    %465 = arith.addf %448, %464 : vector<1x32xf32>
    %c26 = arith.constant 26 : index
    %466 = memref.load %arg2[%c26] : memref<32xf32, #tpu.memory_space<smem>>
    %467 = vector.broadcast %466 : f32 to vector<32x8xf32>
    %468 = arith.cmpf ole, %12, %467 : vector<32x8xf32>
    %cst_94 = arith.constant 0.000000e+00 : f32
    %469 = vector.broadcast %cst_94 : f32 to vector<32x8xf32>
    %470 = arith.select %468, %21, %469 : vector<32x8xi1>, vector<32x8xf32>
    %471 = vector.shape_cast %470 : vector<32x8xf32> to vector<1x32x8xf32>
    %cst_95 = arith.constant dense<0.000000e+00> : vector<1xf32>
    %472 = vector.multi_reduction <add>, %471, %cst_95 [1, 2] : vector<1x32x8xf32> to vector<1xf32>
    %473 = vector.shape_cast %472 : vector<1xf32> to vector<1x1x1xf32>
    %474 = vector.extract %473[0, 0, 0] : f32 from vector<1x1x1xf32>
    %475 = vector.broadcast %474 : f32 to vector<1x1xf32>
    %c26_i32 = arith.constant 26 : i32
    %476 = vector.broadcast %c26_i32 : i32 to vector<1x32xi32>
    %477 = arith.cmpi eq, %22, %476 : vector<1x32xi32>
    %cst_96 = arith.constant 0.000000e+00 : f32
    %478 = vector.shape_cast %475 : vector<1x1xf32> to vector<1x1xf32>
    %479 = vector.broadcast %478 : vector<1x1xf32> to vector<1x32xf32>
    %480 = vector.broadcast %cst_96 : f32 to vector<1x32xf32>
    %481 = arith.select %477, %479, %480 : vector<1x32xi1>, vector<1x32xf32>
    %482 = arith.addf %465, %481 : vector<1x32xf32>
    %c27 = arith.constant 27 : index
    %483 = memref.load %arg2[%c27] : memref<32xf32, #tpu.memory_space<smem>>
    %484 = vector.broadcast %483 : f32 to vector<32x8xf32>
    %485 = arith.cmpf ole, %12, %484 : vector<32x8xf32>
    %cst_97 = arith.constant 0.000000e+00 : f32
    %486 = vector.broadcast %cst_97 : f32 to vector<32x8xf32>
    %487 = arith.select %485, %21, %486 : vector<32x8xi1>, vector<32x8xf32>
    %488 = vector.shape_cast %487 : vector<32x8xf32> to vector<1x32x8xf32>
    %cst_98 = arith.constant dense<0.000000e+00> : vector<1xf32>
    %489 = vector.multi_reduction <add>, %488, %cst_98 [1, 2] : vector<1x32x8xf32> to vector<1xf32>
    %490 = vector.shape_cast %489 : vector<1xf32> to vector<1x1x1xf32>
    %491 = vector.extract %490[0, 0, 0] : f32 from vector<1x1x1xf32>
    %492 = vector.broadcast %491 : f32 to vector<1x1xf32>
    %c27_i32 = arith.constant 27 : i32
    %493 = vector.broadcast %c27_i32 : i32 to vector<1x32xi32>
    %494 = arith.cmpi eq, %22, %493 : vector<1x32xi32>
    %cst_99 = arith.constant 0.000000e+00 : f32
    %495 = vector.shape_cast %492 : vector<1x1xf32> to vector<1x1xf32>
    %496 = vector.broadcast %495 : vector<1x1xf32> to vector<1x32xf32>
    %497 = vector.broadcast %cst_99 : f32 to vector<1x32xf32>
    %498 = arith.select %494, %496, %497 : vector<1x32xi1>, vector<1x32xf32>
    %499 = arith.addf %482, %498 : vector<1x32xf32>
    %c28 = arith.constant 28 : index
    %500 = memref.load %arg2[%c28] : memref<32xf32, #tpu.memory_space<smem>>
    %501 = vector.broadcast %500 : f32 to vector<32x8xf32>
    %502 = arith.cmpf ole, %12, %501 : vector<32x8xf32>
    %cst_100 = arith.constant 0.000000e+00 : f32
    %503 = vector.broadcast %cst_100 : f32 to vector<32x8xf32>
    %504 = arith.select %502, %21, %503 : vector<32x8xi1>, vector<32x8xf32>
    %505 = vector.shape_cast %504 : vector<32x8xf32> to vector<1x32x8xf32>
    %cst_101 = arith.constant dense<0.000000e+00> : vector<1xf32>
    %506 = vector.multi_reduction <add>, %505, %cst_101 [1, 2] : vector<1x32x8xf32> to vector<1xf32>
    %507 = vector.shape_cast %506 : vector<1xf32> to vector<1x1x1xf32>
    %508 = vector.extract %507[0, 0, 0] : f32 from vector<1x1x1xf32>
    %509 = vector.broadcast %508 : f32 to vector<1x1xf32>
    %c28_i32 = arith.constant 28 : i32
    %510 = vector.broadcast %c28_i32 : i32 to vector<1x32xi32>
    %511 = arith.cmpi eq, %22, %510 : vector<1x32xi32>
    %cst_102 = arith.constant 0.000000e+00 : f32
    %512 = vector.shape_cast %509 : vector<1x1xf32> to vector<1x1xf32>
    %513 = vector.broadcast %512 : vector<1x1xf32> to vector<1x32xf32>
    %514 = vector.broadcast %cst_102 : f32 to vector<1x32xf32>
    %515 = arith.select %511, %513, %514 : vector<1x32xi1>, vector<1x32xf32>
    %516 = arith.addf %499, %515 : vector<1x32xf32>
    %c29 = arith.constant 29 : index
    %517 = memref.load %arg2[%c29] : memref<32xf32, #tpu.memory_space<smem>>
    %518 = vector.broadcast %517 : f32 to vector<32x8xf32>
    %519 = arith.cmpf ole, %12, %518 : vector<32x8xf32>
    %cst_103 = arith.constant 0.000000e+00 : f32
    %520 = vector.broadcast %cst_103 : f32 to vector<32x8xf32>
    %521 = arith.select %519, %21, %520 : vector<32x8xi1>, vector<32x8xf32>
    %522 = vector.shape_cast %521 : vector<32x8xf32> to vector<1x32x8xf32>
    %cst_104 = arith.constant dense<0.000000e+00> : vector<1xf32>
    %523 = vector.multi_reduction <add>, %522, %cst_104 [1, 2] : vector<1x32x8xf32> to vector<1xf32>
    %524 = vector.shape_cast %523 : vector<1xf32> to vector<1x1x1xf32>
    %525 = vector.extract %524[0, 0, 0] : f32 from vector<1x1x1xf32>
    %526 = vector.broadcast %525 : f32 to vector<1x1xf32>
    %c29_i32 = arith.constant 29 : i32
    %527 = vector.broadcast %c29_i32 : i32 to vector<1x32xi32>
    %528 = arith.cmpi eq, %22, %527 : vector<1x32xi32>
    %cst_105 = arith.constant 0.000000e+00 : f32
    %529 = vector.shape_cast %526 : vector<1x1xf32> to vector<1x1xf32>
    %530 = vector.broadcast %529 : vector<1x1xf32> to vector<1x32xf32>
    %531 = vector.broadcast %cst_105 : f32 to vector<1x32xf32>
    %532 = arith.select %528, %530, %531 : vector<1x32xi1>, vector<1x32xf32>
    %533 = arith.addf %516, %532 : vector<1x32xf32>
    %c30 = arith.constant 30 : index
    %534 = memref.load %arg2[%c30] : memref<32xf32, #tpu.memory_space<smem>>
    %535 = vector.broadcast %534 : f32 to vector<32x8xf32>
    %536 = arith.cmpf ole, %12, %535 : vector<32x8xf32>
    %cst_106 = arith.constant 0.000000e+00 : f32
    %537 = vector.broadcast %cst_106 : f32 to vector<32x8xf32>
    %538 = arith.select %536, %21, %537 : vector<32x8xi1>, vector<32x8xf32>
    %539 = vector.shape_cast %538 : vector<32x8xf32> to vector<1x32x8xf32>
    %cst_107 = arith.constant dense<0.000000e+00> : vector<1xf32>
    %540 = vector.multi_reduction <add>, %539, %cst_107 [1, 2] : vector<1x32x8xf32> to vector<1xf32>
    %541 = vector.shape_cast %540 : vector<1xf32> to vector<1x1x1xf32>
    %542 = vector.extract %541[0, 0, 0] : f32 from vector<1x1x1xf32>
    %543 = vector.broadcast %542 : f32 to vector<1x1xf32>
    %c30_i32 = arith.constant 30 : i32
    %544 = vector.broadcast %c30_i32 : i32 to vector<1x32xi32>
    %545 = arith.cmpi eq, %22, %544 : vector<1x32xi32>
    %cst_108 = arith.constant 0.000000e+00 : f32
    %546 = vector.shape_cast %543 : vector<1x1xf32> to vector<1x1xf32>
    %547 = vector.broadcast %546 : vector<1x1xf32> to vector<1x32xf32>
    %548 = vector.broadcast %cst_108 : f32 to vector<1x32xf32>
    %549 = arith.select %545, %547, %548 : vector<1x32xi1>, vector<1x32xf32>
    %550 = arith.addf %533, %549 : vector<1x32xf32>
    %c31 = arith.constant 31 : index
    %551 = memref.load %arg2[%c31] : memref<32xf32, #tpu.memory_space<smem>>
    %552 = vector.broadcast %551 : f32 to vector<32x8xf32>
    %553 = arith.cmpf ole, %12, %552 : vector<32x8xf32>
    %cst_109 = arith.constant 0.000000e+00 : f32
    %554 = vector.broadcast %cst_109 : f32 to vector<32x8xf32>
    %555 = arith.select %553, %21, %554 : vector<32x8xi1>, vector<32x8xf32>
    %556 = vector.shape_cast %555 : vector<32x8xf32> to vector<1x32x8xf32>
    %cst_110 = arith.constant dense<0.000000e+00> : vector<1xf32>
    %557 = vector.multi_reduction <add>, %556, %cst_110 [1, 2] : vector<1x32x8xf32> to vector<1xf32>
    %558 = vector.shape_cast %557 : vector<1xf32> to vector<1x1x1xf32>
    %559 = vector.extract %558[0, 0, 0] : f32 from vector<1x1x1xf32>
    %560 = vector.broadcast %559 : f32 to vector<1x1xf32>
    %c31_i32 = arith.constant 31 : i32
    %561 = vector.broadcast %c31_i32 : i32 to vector<1x32xi32>
    %562 = arith.cmpi eq, %22, %561 : vector<1x32xi32>
    %cst_111 = arith.constant 0.000000e+00 : f32
    %563 = vector.shape_cast %560 : vector<1x1xf32> to vector<1x1xf32>
    %564 = vector.broadcast %563 : vector<1x1xf32> to vector<1x32xf32>
    %565 = vector.broadcast %cst_111 : f32 to vector<1x32xf32>
    %566 = arith.select %562, %564, %565 : vector<1x32xi1>, vector<1x32xf32>
    %567 = arith.addf %550, %566 : vector<1x32xf32>
    %c0_112 = arith.constant 0 : index
    %c0_113 = arith.constant 0 : index
    %c0_114 = arith.constant 0 : index
    %568 = vector.load %arg3[%c0_112, %c0_113, %c0_114] : memref<1x1x32xf32, #tpu.memory_space<vmem>>, vector<1x1x32xf32>
    %569 = vector.shape_cast %568 : vector<1x1x32xf32> to vector<1x32xf32>
    %570 = vector.shape_cast %567 : vector<1x32xf32> to vector<1x1x32xf32>
    tpu.vector_store %arg3[%c0_112, %c0_113, %c0_114], %570 {strides = array<i32>} : memref<1x1x32xf32, #tpu.memory_space<vmem>>, vector<1x1x32xf32>,
    return
  }
  func.func @transform_0(%arg0: i32) -> (i32, i32, i32) {
    %c0_i32 = arith.constant 0 : i32
    %c0_i32_0 = arith.constant 0 : i32
    %c0_i32_1 = arith.constant 0 : i32
    return %arg0, %c0_i32, %c0_i32_0 : i32, i32, i32
  }
  func.func @transform_1(%arg0: i32) -> i32 {
    %c0_i32 = arith.constant 0 : i32
    %c0_i32_0 = arith.constant 0 : i32
    return %c0_i32 : i32
  }
  func.func @transform_2(%arg0: i32) -> (i32, i32, i32) {
    %c0_i32 = arith.constant 0 : i32
    %c0_i32_0 = arith.constant 0 : i32
    %c0_i32_1 = arith.constant 0 : i32
    return %arg0, %c0_i32, %c0_i32_0 : i32, i32, i32
  }
}

module attributes {stable_mosaic.version = 11 : i64} {
  func.func @_linear_kernel(%arg0: i32, %arg1: memref<2x32xf32, #tpu.memory_space<vmem>>, %arg2: memref<32x32xf32, #tpu.memory_space<vmem>>, %arg3: memref<1x32xf32, #tpu.memory_space<vmem>>, %arg4: memref<2x32xf32, #tpu.memory_space<vmem>>) attributes {dimension_semantics = [#tpu.dimension_semantics<parallel>], iteration_bounds = array<i64: 1>, scalar_prefetch = 0 : i64, scratch_operands = 0 : i64, tpu.core_type = #tpu.core_type<tc>, window_params = [{transform_indices = @transform_0, window_bounds = array<i64: 2, 32>}, {pipeline_mode = #tpu.pipeline_mode<synchronous>, transform_indices = @transform_1, window_bounds = array<i64: 32, 32>}, {pipeline_mode = #tpu.pipeline_mode<synchronous>, transform_indices = @transform_2, window_bounds = array<i64: 1, 32>}, {transform_indices = @transform_3, window_bounds = array<i64: 2, 32>}]} {
    %c0 = arith.constant 0 : index
    %c0_0 = arith.constant 0 : index
    %0 = vector.load %arg1[%c0, %c0_0] : memref<2x32xf32, #tpu.memory_space<vmem>>, vector<2x32xf32>
    %c0_1 = arith.constant 0 : index
    %c0_2 = arith.constant 0 : index
    %1 = vector.load %arg2[%c0_1, %c0_2] : memref<32x32xf32, #tpu.memory_space<vmem>>, vector<32x32xf32>
    %cst = arith.constant dense<0.000000e+00> : vector<2x32xf32>
    %2 = tpu.matmul %0, %1, %cst {dimension_numbers = #tpu.dot_dimension_numbers<[1], [0], [0], [1], [0, 0, 1, 1], [], []>} : vector<2x32xf32>, vector<32x32xf32>, vector<2x32xf32> -> vector<2x32xf32>
    %c0_3 = arith.constant 0 : index
    %c0_4 = arith.constant 0 : index
    %3 = vector.load %arg3[%c0_3, %c0_4] : memref<1x32xf32, #tpu.memory_space<vmem>>, vector<1x32xf32>
    %4 = vector.broadcast %3 : vector<1x32xf32> to vector<2x32xf32>
    %5 = arith.addf %2, %4 : vector<2x32xf32>
    %cst_5 = arith.constant 0.000000e+00 : f32
    %6 = vector.broadcast %cst_5 : f32 to vector<2x32xf32>
    %7 = arith.maximumf %5, %6 : vector<2x32xf32>
    %c0_6 = arith.constant 0 : index
    %c0_7 = arith.constant 0 : index
    %8 = vector.load %arg4[%c0_6, %c0_7] : memref<2x32xf32, #tpu.memory_space<vmem>>, vector<2x32xf32>
    tpu.vector_store %arg4[%c0_6, %c0_7], %7 {strides = array<i32>} : memref<2x32xf32, #tpu.memory_space<vmem>>, vector<2x32xf32>,
    return
  }
  func.func @transform_0(%arg0: i32) -> (i32, i32) {
    %c0_i32 = arith.constant 0 : i32
    %c0_i32_0 = arith.constant 0 : i32
    return %arg0, %c0_i32 : i32, i32
  }
  func.func @transform_1(%arg0: i32) -> (i32, i32) {
    %c0_i32 = arith.constant 0 : i32
    %c0_i32_0 = arith.constant 0 : i32
    %c0_i32_1 = arith.constant 0 : i32
    return %c0_i32, %c0_i32_0 : i32, i32
  }
  func.func @transform_2(%arg0: i32) -> (i32, i32) {
    %c0_i32 = arith.constant 0 : i32
    %c0_i32_0 = arith.constant 0 : i32
    %c0_i32_1 = arith.constant 0 : i32
    return %c0_i32, %c0_i32_0 : i32, i32
  }
  func.func @transform_3(%arg0: i32) -> (i32, i32) {
    %c0_i32 = arith.constant 0 : i32
    %c0_i32_0 = arith.constant 0 : i32
    return %arg0, %c0_i32 : i32, i32
  }
}

module attributes {stable_mosaic.version = 11 : i64} {
  func.func @_linear_kernel(%arg0: i32, %arg1: memref<2x128xf32, #tpu.memory_space<vmem>>, %arg2: memref<128x64xf32, #tpu.memory_space<vmem>>, %arg3: memref<1x64xf32, #tpu.memory_space<vmem>>, %arg4: memref<2x64xf32, #tpu.memory_space<vmem>>) attributes {dimension_semantics = [#tpu.dimension_semantics<parallel>], iteration_bounds = array<i64: 1>, scalar_prefetch = 0 : i64, scratch_operands = 0 : i64, tpu.core_type = #tpu.core_type<tc>, window_params = [{transform_indices = @transform_0, window_bounds = array<i64: 2, 128>}, {pipeline_mode = #tpu.pipeline_mode<synchronous>, transform_indices = @transform_1, window_bounds = array<i64: 128, 64>}, {pipeline_mode = #tpu.pipeline_mode<synchronous>, transform_indices = @transform_2, window_bounds = array<i64: 1, 64>}, {transform_indices = @transform_3, window_bounds = array<i64: 2, 64>}]} {
    %c0 = arith.constant 0 : index
    %c0_0 = arith.constant 0 : index
    %0 = vector.load %arg1[%c0, %c0_0] : memref<2x128xf32, #tpu.memory_space<vmem>>, vector<2x128xf32>
    %c0_1 = arith.constant 0 : index
    %c0_2 = arith.constant 0 : index
    %1 = vector.load %arg2[%c0_1, %c0_2] : memref<128x64xf32, #tpu.memory_space<vmem>>, vector<128x64xf32>
    %cst = arith.constant dense<0.000000e+00> : vector<2x64xf32>
    %2 = tpu.matmul %0, %1, %cst {dimension_numbers = #tpu.dot_dimension_numbers<[1], [0], [0], [1], [0, 0, 1, 1], [], []>} : vector<2x128xf32>, vector<128x64xf32>, vector<2x64xf32> -> vector<2x64xf32>
    %c0_3 = arith.constant 0 : index
    %c0_4 = arith.constant 0 : index
    %3 = vector.load %arg3[%c0_3, %c0_4] : memref<1x64xf32, #tpu.memory_space<vmem>>, vector<1x64xf32>
    %4 = vector.broadcast %3 : vector<1x64xf32> to vector<2x64xf32>
    %5 = arith.addf %2, %4 : vector<2x64xf32>
    %cst_5 = arith.constant 0.000000e+00 : f32
    %6 = vector.broadcast %cst_5 : f32 to vector<2x64xf32>
    %7 = arith.maximumf %5, %6 : vector<2x64xf32>
    %c0_6 = arith.constant 0 : index
    %c0_7 = arith.constant 0 : index
    %8 = vector.load %arg4[%c0_6, %c0_7] : memref<2x64xf32, #tpu.memory_space<vmem>>, vector<2x64xf32>
    tpu.vector_store %arg4[%c0_6, %c0_7], %7 {strides = array<i32>} : memref<2x64xf32, #tpu.memory_space<vmem>>, vector<2x64xf32>,
    return
  }
  func.func @transform_0(%arg0: i32) -> (i32, i32) {
    %c0_i32 = arith.constant 0 : i32
    %c0_i32_0 = arith.constant 0 : i32
    return %arg0, %c0_i32 : i32, i32
  }
  func.func @transform_1(%arg0: i32) -> (i32, i32) {
    %c0_i32 = arith.constant 0 : i32
    %c0_i32_0 = arith.constant 0 : i32
    %c0_i32_1 = arith.constant 0 : i32
    return %c0_i32, %c0_i32_0 : i32, i32
  }
  func.func @transform_2(%arg0: i32) -> (i32, i32) {
    %c0_i32 = arith.constant 0 : i32
    %c0_i32_0 = arith.constant 0 : i32
    %c0_i32_1 = arith.constant 0 : i32
    return %c0_i32, %c0_i32_0 : i32, i32
  }
  func.func @transform_3(%arg0: i32) -> (i32, i32) {
    %c0_i32 = arith.constant 0 : i32
    %c0_i32_0 = arith.constant 0 : i32
    return %arg0, %c0_i32 : i32, i32
  }
}

module attributes {stable_mosaic.version = 11 : i64} {
  func.func @_linear_kernel(%arg0: i32, %arg1: memref<2x64xf32, #tpu.memory_space<vmem>>, %arg2: memref<64x5xf32, #tpu.memory_space<vmem>>, %arg3: memref<1x5xf32, #tpu.memory_space<vmem>>, %arg4: memref<2x5xf32, #tpu.memory_space<vmem>>) attributes {dimension_semantics = [#tpu.dimension_semantics<parallel>], iteration_bounds = array<i64: 1>, scalar_prefetch = 0 : i64, scratch_operands = 0 : i64, tpu.core_type = #tpu.core_type<tc>, window_params = [{transform_indices = @transform_0, window_bounds = array<i64: 2, 64>}, {pipeline_mode = #tpu.pipeline_mode<synchronous>, transform_indices = @transform_1, window_bounds = array<i64: 64, 5>}, {pipeline_mode = #tpu.pipeline_mode<synchronous>, transform_indices = @transform_2, window_bounds = array<i64: 1, 5>}, {transform_indices = @transform_3, window_bounds = array<i64: 2, 5>}]} {
    %c0 = arith.constant 0 : index
    %c0_0 = arith.constant 0 : index
    %0 = vector.load %arg1[%c0, %c0_0] : memref<2x64xf32, #tpu.memory_space<vmem>>, vector<2x64xf32>
    %c0_1 = arith.constant 0 : index
    %c0_2 = arith.constant 0 : index
    %1 = vector.load %arg2[%c0_1, %c0_2] : memref<64x5xf32, #tpu.memory_space<vmem>>, vector<64x5xf32>
    %cst = arith.constant dense<0.000000e+00> : vector<2x5xf32>
    %2 = tpu.matmul %0, %1, %cst {dimension_numbers = #tpu.dot_dimension_numbers<[1], [0], [0], [1], [0, 0, 1, 1], [], []>} : vector<2x64xf32>, vector<64x5xf32>, vector<2x5xf32> -> vector<2x5xf32>
    %c0_3 = arith.constant 0 : index
    %c0_4 = arith.constant 0 : index
    %3 = vector.load %arg3[%c0_3, %c0_4] : memref<1x5xf32, #tpu.memory_space<vmem>>, vector<1x5xf32>
    %4 = vector.broadcast %3 : vector<1x5xf32> to vector<2x5xf32>
    %5 = arith.addf %2, %4 : vector<2x5xf32>
    %c0_5 = arith.constant 0 : index
    %c0_6 = arith.constant 0 : index
    %6 = vector.load %arg4[%c0_5, %c0_6] : memref<2x5xf32, #tpu.memory_space<vmem>>, vector<2x5xf32>
    tpu.vector_store %arg4[%c0_5, %c0_6], %5 {strides = array<i32>} : memref<2x5xf32, #tpu.memory_space<vmem>>, vector<2x5xf32>,
    return
  }
  func.func @transform_0(%arg0: i32) -> (i32, i32) {
    %c0_i32 = arith.constant 0 : i32
    %c0_i32_0 = arith.constant 0 : i32
    return %arg0, %c0_i32 : i32, i32
  }
  func.func @transform_1(%arg0: i32) -> (i32, i32) {
    %c0_i32 = arith.constant 0 : i32
    %c0_i32_0 = arith.constant 0 : i32
    %c0_i32_1 = arith.constant 0 : i32
    return %c0_i32, %c0_i32_0 : i32, i32
  }
  func.func @transform_2(%arg0: i32) -> (i32, i32) {
    %c0_i32 = arith.constant 0 : i32
    %c0_i32_0 = arith.constant 0 : i32
    %c0_i32_1 = arith.constant 0 : i32
    return %c0_i32, %c0_i32_0 : i32, i32
  }
  func.func @transform_3(%arg0: i32) -> (i32, i32) {
    %c0_i32 = arith.constant 0 : i32
    %c0_i32_0 = arith.constant 0 : i32
    return %arg0, %c0_i32 : i32, i32
  }
}

</mosaic_0001>

<bundles_post_ra>
// kernel: ec_cnn_dtm_forward.14
= control target key start
LH: loop header
LB: loop body
LE: loop exit
PB: predicated region body
PF: predicated region fallthrough
CT: control target
= control target key end

     0   :  { %8 = vsyncpa [#allocation3], 0  ;;  %s604_s0 = inlined_call_operand.vmem [shape: f32[128,9], index: 0, kind: input, shape index: {}]   ;;  %s605_s1 = inlined_call_operand.hbm [shape: f32[9,32], index: 1, kind: input, shape index: {}]   ;;  %s606_s2 = inlined_call_operand.hbm [shape: f32[1,32], index: 2, kind: input, shape index: {}]   ;;  %s607_s3 = inlined_call_operand.vmem [shape: f32[128,32], index: 3, kind: output, shape index: {}]  }
   0x1   :  { %9 = vsyncpa [#allocation5], 0  ;;  %s427_s12 = smov [#allocation2]   ;;  %s379_s16 = scalar_lea.hbm %s605_s1, 256 }
   0x2   :  { %s17_s13 = sshll.u32 %s427_s12, 4  ;;  %p380_p0 = scmp.ne.s32.totalorder %s605_s1, %s379_s16  ;;  %s18_s13 = int_to_ptr.vmem [resolvable:$true] %s17_s13 }
   0x3   :  { %p383_p1 = scmp.lt.u32.totalorder %s379_s16, %s605_s1 }
   0x5   :  { %p385_p2 = pnand %p383_p1, %p380_p0 }
   0x7   :  { %388 = shalt.err (!%p385_p2)
}
   0x8   :  { %s389_s21 = scalar_lea.vmem %s18_s13, 256  ;;  %p394_p4 = scmp.lt.s32.totalorder %s18_s13, %s18_s13 }
   0x9   :  { %p390_p3 = scmp.ne.s32.totalorder %s18_s13, %s389_s21  ;;  %p395_p5 = scmp.lt.s32.totalorder %s389_s21, %s389_s21 }
   0xb   :  { %p396_p6 = por %p395_p5, %p394_p4 }
   0xd   :  { %p397_p7 = pnand %p396_p6, %p390_p3 }
   0xf   :  { %400 = shalt.err (!%p397_p7)
}
  0x10   :  { %s428_s22 = smov 128   ;;  %s429_s23 = smov 8  }
  0x11   :  { %23 = dma.hbm_to_vmem [thread:$0]  %s605_s1, 256, %s18_s13, [#allocation3], %s428_s22, %s428_s22, %s429_s23  }
  0x12   :  { %s430_s26 = smov [#allocation4]   ;;  %s401_s30 = scalar_lea.hbm %s606_s2, 16 }
  0x13   :  { %s30_s27 = sshll.u32 %s430_s26, 4  ;;  %p402_p8 = scmp.ne.s32.totalorder %s606_s2, %s401_s30  ;;  %s31_s27 = int_to_ptr.vmem [resolvable:$true] %s30_s27 }
  0x14   :  { %p405_p9 = scmp.lt.u32.totalorder %s401_s30, %s606_s2 }
  0x16   :  { %p407_p10 = pnand %p405_p9, %p402_p8 }
  0x18   :  { %410 = shalt.err (!%p407_p10)
}
  0x19   :  { %s411_s8 = scalar_lea.vmem %s31_s27, 16  ;;  %s415_s1 = scalar_lea.vmem %s31_s27, 32 }
  0x1a   :  { %p412_p11 = scmp.ne.s32.totalorder %s31_s27, %s411_s8  ;;  %p416_p12 = scmp.lt.s32.totalorder %s31_s27, %s31_s27 }
  0x1b   :  { %p417_p13 = scmp.lt.s32.totalorder %s415_s1, %s411_s8 }
  0x1d   :  { %p418_p0 = por %p417_p13, %p416_p12 }
  0x1f   :  { %p419_p1 = pnand %p418_p0, %p412_p11 }
  0x21   :  { %422 = shalt.err (!%p419_p1)
}
  0x22   :  { %33 = dma.hbm_to_vmem [thread:$0]  %s606_s2, 16, %s31_s27, [#allocation5]  }
  0x23   :  { %423 = dma.done.wait [#allocation3], 256  }
  0x24   :  { %424 = vsyncadd [#allocation3], 4294967040 }
  0x25   :  { %425 = dma.done.wait [#allocation5], 16  }
  0x26   :  { %426 = vsyncadd [#allocation5], 4294967280  ;;  %vm114_vm0 = vcmask 1040384   ;;  %vm65_vm1 = vcmask 72704   ;;  %vm431_vm2 = vmmov 1   ;;  %v56_v0 = vld [vmem:[#allocation2] sm:$0xff] }
  0x27   :  { %vm367_vm3 = vmpackc.low %vm114_vm0, %vm431_vm2  ;;  %v57_v1 = vld [vmem:[#allocation2 + $0x8] sm:$0x1]  ;;  %v40_v2 = vld [vmem:[%s604_s0] sm:$0xff]  ;;  %vm279_vm4 = vcmask 261120  }
  0x28   :  { %v366_v3 = vpack.c.bf16 %v57_v1, %v56_v0  ;;  %342 = vmatprep.mubr.msk.f32.mxu0 %vm65_vm1, %v40_v2  ;;  %v48_v4 = vld [vmem:[%s604_s0 + $0x40] sm:$0xff]  ;;  %v41_v5 = vld [vmem:[%s604_s0 + $0x8] sm:$0xff]  ;;  %v42_v7 = vld [vmem:[%s604_s0 + $0x10] sm:$0xff] }
  0x29   :  { %354 = vmatprep.mubr.msk.f32.mxu1 %vm65_vm1, %v48_v4  ;;  %v49_v6 = vld [vmem:[%s604_s0 + $0x48] sm:$0xff]  ;;  %v50_v8 = vld [vmem:[%s604_s0 + $0x50] sm:$0xff]  ;;  %v43_v9 = vld [vmem:[%s604_s0 + $0x18] sm:$0xff] }
  0x2a   :  { %368 = vmatprep.subr.msk.bf16.mxu0 %vm367_vm3, %v366_v3  ;;  %372 = vmatprep.subr.msk.bf16.mxu1 %vm367_vm3, %v366_v3  ;;  %v51_v10 = vld [vmem:[%s604_s0 + $0x58] sm:$0xff]  ;;  %v44_v11 = vld [vmem:[%s604_s0 + $0x20] sm:$0xff]  ;;  %v45_v13 = vld [vmem:[%s604_s0 + $0x28] sm:$0xff] }
  0x2b   :  { %371 = vmatpush3.bf16.msk.msra.mxu0 %vm367_vm3, %v366_v3  ;;  %373 = vmatpush3.bf16.msk.msra.mxu1 %vm367_vm3, %v366_v3  ;;  %v52_v12 = vld [vmem:[%s604_s0 + $0x60] sm:$0xff]  ;;  %v53_v14 = vld [vmem:[%s604_s0 + $0x68] sm:$0xff]  ;;  %v46_v15 = vld [vmem:[%s604_s0 + $0x30] sm:$0xff] }
  0x2c   :  { %v54_v16 = vld [vmem:[%s604_s0 + $0x70] sm:$0xff]  ;;  %v47_v17 = vld [vmem:[%s604_s0 + $0x38] sm:$0xff] }
  0x2d   :  { %v55_v18 = vld [vmem:[%s604_s0 + $0x78] sm:$0xff]  ;;  %v302_v19 = vld [vmem:[#allocation4] ss:$0 sm:$0xff] }
  0x2e   :  { %343 = vmatmul.mubr.msk.f32.vlgmr.msra.gmra.mrb[0].mxu0 %vm65_vm1, %v41_v5  ;;  %355 = vmatmul.mubr.msk.f32.vlgmr.msra.gmra.mrb[0].mxu1 %vm65_vm1, %v49_v6 }
  0x2f   :  { %345 = vmatprep.mubr.msk.f32.mxu0 %vm65_vm1, %v42_v7  ;;  %357 = vmatprep.mubr.msk.f32.mxu1 %vm65_vm1, %v50_v8 }
  0x32   :  { %346 = vmatmul.mubr.msk.f32.gmra.mrb[2].mxu0 %vm65_vm1, %v43_v9  ;;  %358 = vmatmul.mubr.msk.f32.gmra.mrb[2].mxu1 %vm65_vm1, %v51_v10 }
  0x33   :  { %348 = vmatprep.mubr.msk.f32.mxu0 %vm65_vm1, %v44_v11  ;;  %360 = vmatprep.mubr.msk.f32.mxu1 %vm65_vm1, %v52_v12 }
  0x36   :  { %349 = vmatmul.mubr.msk.f32.gmra.mrb[4].mxu0 %vm65_vm1, %v45_v13  ;;  %361 = vmatmul.mubr.msk.f32.gmra.mrb[4].mxu1 %vm65_vm1, %v53_v14 }
  0x37   :  { %351 = vmatprep.mubr.msk.f32.mxu0 %vm65_vm1, %v46_v15  ;;  %363 = vmatprep.mubr.msk.f32.mxu1 %vm65_vm1, %v54_v16 }
  0x3a   :  { %352 = vmatmul.mubr.msk.f32.gmra.mrb[6].mxu0 %vm65_vm1, %v47_v17  ;;  %364 = vmatmul.mubr.msk.f32.gmra.mrb[6].mxu1 %vm65_vm1, %v55_v18 }
 0x101   :  { %v344_v20 = vpop.f32.mrb[0].mxu0  ;;  %v356_v21 = vpop.f32.mrb[0].mxu1 }
 0x102   :  { %v190_v22 = vadd.f32 %v344_v20, %v302_v19  ;;  %v230_v23 = vadd.f32 %v356_v21, %v302_v19  ;;  %v184_v24 = vpop.f32.mrb[1].mxu0  ;;  %v224_v25 = vpop.f32.mrb[1].mxu1 }
 0x103   :  { %v185_v26 = vadd.f32 %v302_v19, %v184_v24  ;;  %v225_v27 = vadd.f32 %v302_v19, %v224_v25 }
 0x104   :  { %v264_v28 = vmax.f32 %v190_v22, 0.0  ;;  %v272_v29 = vmax.f32 %v230_v23, 0.0 }
 0x105   :  { %v263_v30 = vmax.f32 %v185_v26, 0.0  ;;  %v271_v31 = vmax.f32 %v225_v27, 0.0  ;;  %v347_v32 = vpop.f32.mrb[2].mxu0  ;;  %v359_v33 = vpop.f32.mrb[2].mxu1 }
 0x106   :  { %281 = vst.msk [vmem:[%s607_s3 + $0x8] sm:$0xff] %vm279_vm4, %v264_v28  ;;  %289 = vst.msk [vmem:[%s607_s3 + $0x48] sm:$0xff] %vm279_vm4, %v272_v29  ;;  %v200_v34 = vadd.f32 %v347_v32, %v302_v19  ;;  %v240_v35 = vadd.f32 %v359_v33, %v302_v19  ;;  %v194_v36 = vpop.f32.mrb[3].mxu0  ;;  %v234_v37 = vpop.f32.mrb[3].mxu1 }
 0x107   :  { %280 = vst.msk [vmem:[%s607_s3] sm:$0xff] %vm279_vm4, %v263_v30  ;;  %288 = vst.msk [vmem:[%s607_s3 + $0x40] sm:$0xff] %vm279_vm4, %v271_v31  ;;  %v195_v38 = vadd.f32 %v302_v19, %v194_v36  ;;  %v235_v39 = vadd.f32 %v302_v19, %v234_v37 }
 0x108   :  { %v266_v40 = vmax.f32 %v200_v34, 0.0  ;;  %v274_v41 = vmax.f32 %v240_v35, 0.0 }
 0x109   :  { %v265_v42 = vmax.f32 %v195_v38, 0.0  ;;  %v273_v43 = vmax.f32 %v235_v39, 0.0  ;;  %v350_v44 = vpop.f32.mrb[4].mxu0  ;;  %v362_v45 = vpop.f32.mrb[4].mxu1 }
 0x10a   :  { %283 = vst.msk [vmem:[%s607_s3 + $0x18] sm:$0xff] %vm279_vm4, %v266_v40  ;;  %291 = vst.msk [vmem:[%s607_s3 + $0x58] sm:$0xff] %vm279_vm4, %v274_v41  ;;  %v210_v46 = vadd.f32 %v350_v44, %v302_v19  ;;  %v250_v47 = vadd.f32 %v362_v45, %v302_v19  ;;  %v204_v48 = vpop.f32.mrb[5].mxu0  ;;  %v244_v49 = vpop.f32.mrb[5].mxu1 }
 0x10b   :  { %282 = vst.msk [vmem:[%s607_s3 + $0x10] sm:$0xff] %vm279_vm4, %v265_v42  ;;  %290 = vst.msk [vmem:[%s607_s3 + $0x50] sm:$0xff] %vm279_vm4, %v273_v43  ;;  %v205_v50 = vadd.f32 %v302_v19, %v204_v48  ;;  %v245_v51 = vadd.f32 %v302_v19, %v244_v49 }
 0x10c   :  { %v268_v52 = vmax.f32 %v210_v46, 0.0  ;;  %v276_v53 = vmax.f32 %v250_v47, 0.0 }
 0x10d   :  { %v267_v54 = vmax.f32 %v205_v50, 0.0  ;;  %v275_v55 = vmax.f32 %v245_v51, 0.0  ;;  %v353_v56 = vpop.f32.mrb[6].mxu0  ;;  %v365_v57 = vpop.f32.mrb[6].mxu1 }
 0x10e   :  { %285 = vst.msk [vmem:[%s607_s3 + $0x28] sm:$0xff] %vm279_vm4, %v268_v52  ;;  %293 = vst.msk [vmem:[%s607_s3 + $0x68] sm:$0xff] %vm279_vm4, %v276_v53  ;;  %v220_v58 = vadd.f32 %v353_v56, %v302_v19  ;;  %v260_v59 = vadd.f32 %v365_v57, %v302_v19  ;;  %v214_v60 = vpop.f32.mrb[7].mxu0  ;;  %v254_v61 = vpop.f32.mrb[7].mxu1 }
 0x10f   :  { %284 = vst.msk [vmem:[%s607_s3 + $0x20] sm:$0xff] %vm279_vm4, %v267_v54  ;;  %292 = vst.msk [vmem:[%s607_s3 + $0x60] sm:$0xff] %vm279_vm4, %v275_v55  ;;  %v215_v62 = vadd.f32 %v302_v19, %v214_v60  ;;  %v255_v63 = vadd.f32 %v302_v19, %v254_v61 }
 0x110   :  { %v270_v0 = vmax.f32 %v220_v58, 0.0  ;;  %v278_v1 = vmax.f32 %v260_v59, 0.0 }
 0x111   :  { %v269_v2 = vmax.f32 %v215_v62, 0.0  ;;  %v277_v3 = vmax.f32 %v255_v63, 0.0 }
 0x112   :  { %287 = vst.msk [vmem:[%s607_s3 + $0x38] sm:$0xff] %vm279_vm4, %v270_v0  ;;  %295 = vst.msk [vmem:[%s607_s3 + $0x78] sm:$0xff] %vm279_vm4, %v278_v1 }
 0x113   :  { %286 = vst.msk [vmem:[%s607_s3 + $0x30] sm:$0xff] %vm279_vm4, %v269_v2  ;;  %294 = vst.msk [vmem:[%s607_s3 + $0x70] sm:$0xff] %vm279_vm4, %v277_v3 }
 0x114   :  { %300 = vsyncpa [#allocation3], 1 }
 0x115   :  { %301 = vsyncpa [#allocation5], 1 }

// kernel: ec_cnn_dtm_forward.15
= control target key start
LH: loop header
LB: loop body
LE: loop exit
PB: predicated region body
PF: predicated region fallthrough
CT: control target
= control target key end

     0   :  { %s1539_s0 = inlined_call_operand.vmem [shape: f32[2,10,10,32], index: 0, kind: input, shape index: {}]   ;;  %s1540_s1 = inlined_call_operand.hbm [shape: f32[9,32], index: 1, kind: input, shape index: {}]   ;;  %s1541_s2 = inlined_call_operand.<no memory space> [shape: f32[1], index: 2, kind: input, shape index: {}]   ;;  %s1542_s3 = inlined_call_operand.vmem [shape: f32[2,8,8], index: 3, kind: output, shape index: {0}]   ;;  %s1543_s4 = inlined_call_operand.vmem [shape: f32[2,1,1], index: 4, kind: output, shape index: {1}]   ;;  %s1544_s5 = inlined_call_operand.vmem [shape: f32[2,1,1], index: 5, kind: output, shape index: {2}]  }
   0x1   :  { %11 = sst [smem:[#allocation2]] %s1541_s2 }
   0x2   :  { %12 = vsyncpa [#allocation4], 0  ;;  %s1116_s20 = smov 0  }
   0x3 LB: > { %s1122_s21 = sadd.s32 4294967295, %s1078_s20   ;;  %p948_p0 = scmp.ge.s32.totalorder %s1078_s20, 1  ;;  %s1078_s20 = sphi %s1116_s20, %s18_s20  }
   0x4   : > { %p169_p1 = scmp.lt.s32.totalorder %s1078_s20, 3  ;;  %s1080_s22 = smov [#allocation3]  }
   0x5   : > { %s181_s23 = sshll.u32 %s1080_s22, 4  ;;  %p1545_p3 = scmp.eq.s32.totalorder %s1122_s21, 0  ;;  %s182_s23 = int_to_ptr.vmem [resolvable:$true] %s181_s23 }
   0x6   : > { %p1126_p2 = pnand %p948_p0, %p169_p1  ;;  %s1040_s27 = scalar_lea.hbm %s1540_s1, 256 }
   0x7   : > { %p1041_p6 = scmp.ne.s32.totalorder %s1540_s1, %s1040_s27  ;;  %p1047_p10 = scmp.lt.u32.totalorder %s1040_s27, %s1540_s1 }
   0x8   : > { %s1547_s2 = scalar_select %p1126_p2, 1, 0 }
   0x9   : > { %p1023_p4 = pneg %p1126_p2 }
   0xb   : > { %p1135_p5 = pnand %p1545_p3, %p1023_p4 }
   0xd   : > { %p1042_p7 = pneg %p1135_p5 }
   0xf   : > { %p1043_p8 = pnand %p1042_p7, %p1041_p6 }
  0x11   : > { %p1044_p9 = pneg %p1043_p8 }
  0x13   : > { %p1049_p11 = pnand %p1047_p10, %p1044_p9 }
  0x15   : > { %1052 = shalt.err (!%p1049_p11)
}
  0x16   : > { %s1053_s7 = scalar_lea.vmem %s182_s23, 256  ;;  %p1061_p1 = scmp.lt.s32.totalorder %s182_s23, %s182_s23 }
  0x17   : > { %p1054_p12 = scmp.ne.s32.totalorder %s182_s23, %s1053_s7  ;;  %p1062_p4 = scmp.lt.s32.totalorder %s1053_s7, %s1053_s7 }
  0x19   : > { %p1056_p13 = pnand %p1054_p12, %p1042_p7  ;;  %p1063_p3 = por %p1062_p4, %p1061_p1 }
  0x1b   : > { %p1057_p0 = pneg %p1056_p13 }
  0x1d   : > { %p1064_p2 = pnand %p1063_p3, %p1057_p0 }
  0x1f   : > { %1067 = shalt.err (!%p1064_p2)
}
  0x20   : > { %s1081_s8 = smov 128   ;;  %s1082_s9 = smov 8  }
  0x21   : > { %1026 = dma.hbm_to_vmem [thread:$0]  (!%p1135_p5), %s1540_s1, 256, %s182_s23, [#allocation4], %s1081_s8, %s1081_s8, %s1082_s9  }
  0x22   : > { %p1549_p6 = scmp.ne.s32.totalorder %s1547_s2, 0 }
  0x23   : > { %p1550_p8 = scmp.eq.s32.totalorder (!%p1549_p6), %s1122_s21, 0 }
  0x24   : > { %208 = sbr.rel (%p1549_p6) target bundleno = 410 (0x19a), region = 32 }
  0x2b   : > { %1073 = dma.done.wait (%p1550_p8), [#allocation4], 256   ;;  %p1551_p7 = pmov %p1550_p8 }
  0x2c   : > { %p241_p2 = scmp.lt.s32.totalorder %s1122_s21, 1  ;;  %v955_v1 = vld [vmem:[#allocation3] ss:$0 sm:$0xff]  ;;  %vm280_vm0 = vcmask 261120   ;;  %v956_v24 = vld [vmem:[#allocation3 + $0x1] ss:$0 sm:$0xff] }
  0x2d   : > { %1075 = vsyncadd (%p1551_p7), [#allocation4], 4294967040  ;;  %v1238_v41 = vld [vmem:[#allocation3 + $0x4] ss:$0 sm:$0xff]  ;;  %v1246_v46 = vld [vmem:[#allocation3 + $0x2] ss:$0 sm:$0xff] }
  0x2e   : > { %s1553_s21 = smov (!%p241_p2, %s1122_s21), 1  ;;  %v1271_v58 = vld [vmem:[#allocation3 + $0x5] ss:$0 sm:$0xff]  ;;  %v1273_v59 = vld [vmem:[#allocation3 + $0x6] ss:$0 sm:$0xff]  ;;  %s256_s16 = sld [smem:[#allocation2]] }
  0x2f   : > { %s1014_s12 = smul.u32 160, %s1553_s21  ;;  %vm781_vm1 = vcmask 1041409   ;;  %vm783_vm2 = vcmask 1042434   ;;  %vm785_vm3 = vcmask 1043459   ;;  %vm787_vm4 = vcmask 1044484   ;;  %s954_s17 = sshll.u32 %s1553_s21, 3 }
  0x30   : > { %vm789_vm5 = vcmask 1045509   ;;  %vm791_vm6 = vcmask 1046534   ;;  %vm793_vm7 = vcmask 1047559   ;;  %s249_s22 = scalar_lea.vmem %s1542_s3, %s954_s17  ;;  %vm796_vm8 = vcmask 64512   ;;  %s252_s24 = scalar_lea.vmem %s1543_s4, %s1553_s21 }
  0x31   : > { %s1169_s15 = scalar_lea.vmem %s1539_s0, %s1014_s12  ;;  %vm813_vm9 = vcmask 0   ;;  %s255_s28 = scalar_lea.vmem %s1544_s5, %s1553_s21 }
  0x32   : > { %v1172_v0 = vld [vmem:[%s1169_s15 + $0x20] sm:$0xff]  ;;  %v1177_v5 = vld [vmem:[%s1169_s15 + $0x30] sm:$0xff] }
  0x33   : > { %v259_v2 = vld [vmem:[%s1169_s15] sm:$0xff]  ;;  %v274_v3 = vmul.f32 %v955_v1, %v1172_v0  ;;  %v1180_v6 = vld [vmem:[%s1169_s15 + $0x10] sm:$0xff]  ;;  %v275_v7 = vmul.f32 %v955_v1, %v1177_v5 }
  0x34   : > { %v272_v4 = vmul.f32 %v955_v1, %v259_v2  ;;  %v273_v8 = vmul.f32 %v955_v1, %v1180_v6  ;;  %v1185_v9 = vld [vmem:[%s1169_s15 + $0x50] sm:$0xff]  ;;  %v1188_v10 = vld [vmem:[%s1169_s15 + $0x40] sm:$0xff] }
  0x35   : > { %v287_v11 = vsel %vm280_vm0, %v274_v3, 0.0  ;;  %v290_v13 = vsel %vm280_vm0, %v275_v7, 0.0  ;;  %v277_v15 = vmul.f32 %v955_v1, %v1185_v9  ;;  %v276_v16 = vmul.f32 %v955_v1, %v1188_v10  ;;  %v1197_v17 = vld [vmem:[%s1169_s15 + $0x70] sm:$0xff]  ;;  %v1200_v18 = vld [vmem:[%s1169_s15 + $0x60] sm:$0xff] }
  0x36   : > { %v281_v12 = vsel %vm280_vm0, %v272_v4, 0.0  ;;  %288 = vadd.xlane.f32.xlu1 %v287_v11  ;;  %v284_v14 = vsel %vm280_vm0, %v273_v8, 0.0  ;;  %v279_v21 = vmul.f32 %v955_v1, %v1197_v17  ;;  %v278_v22 = vmul.f32 %v955_v1, %v1200_v18  ;;  %v1207_v23 = vld [vmem:[%s1169_s15 + $0x11] sm:$0xff]  ;;  %v313_v25 = vld [vmem:[%s1169_s15 + $0x1] sm:$0xff] }
  0x37   : > { %282 = vadd.xlane.f32.xlu0 %v281_v12  ;;  %v296_v19 = vsel %vm280_vm0, %v277_v15, 0.0  ;;  %v293_v20 = vsel %vm280_vm0, %v276_v16, 0.0  ;;  %v327_v28 = vmul.f32 %v956_v24, %v1207_v23  ;;  %v326_v29 = vmul.f32 %v956_v24, %v313_v25  ;;  %v1214_v30 = vld [vmem:[%s1169_s15 + $0x31] sm:$0xff]  ;;  %v1217_v31 = vld [vmem:[%s1169_s15 + $0x21] sm:$0xff] }
  0x38   : > { %v302_v26 = vsel %vm280_vm0, %v279_v21, 0.0  ;;  %v299_v27 = vsel %vm280_vm0, %v278_v22, 0.0  ;;  %v1220_v32 = vld [vmem:[%s1169_s15 + $0x51] sm:$0xff]  ;;  %v1223_v33 = vld [vmem:[%s1169_s15 + $0x41] sm:$0xff]  ;;  %v329_v38 = vmul.f32 %v956_v24, %v1214_v30  ;;  %v328_v39 = vmul.f32 %v956_v24, %v1217_v31 }
  0x39   : > { %v1226_v34 = vld [vmem:[%s1169_s15 + $0x71] sm:$0xff]  ;;  %v1229_v35 = vld [vmem:[%s1169_s15 + $0x81] sm:$0xff]  ;;  %v337_v36 = vsel %vm280_vm0, %v327_v28, 0.0  ;;  %v334_v37 = vsel %vm280_vm0, %v326_v29, 0.0  ;;  %v331_v42 = vmul.f32 %v956_v24, %v1220_v32  ;;  %v330_v43 = vmul.f32 %v956_v24, %v1223_v33 }
  0x3a   : > { %291 = vadd.xlane.f32.xlu1 %v290_v13  ;;  %v1236_v40 = vld [vmem:[%s1169_s15 + $0x61] sm:$0xff]  ;;  %v333_v44 = vmul.f32 %v956_v24, %v1226_v34  ;;  %v1244_v45 = vld [vmem:[%s1169_s15 + $0x12] sm:$0xff]  ;;  %v493_v47 = vmul.f32 %v1238_v41, %v1229_v35  ;;  %v343_v50 = vsel %vm280_vm0, %v329_v38, 0.0  ;;  %v340_v51 = vsel %vm280_vm0, %v328_v39, 0.0 }
  0x3b   : > { %285 = vadd.xlane.f32.xlu0 %v284_v14  ;;  %v332_v48 = vmul.f32 %v956_v24, %v1236_v40  ;;  %v1252_v49 = vld [vmem:[%s1169_s15 + $0x82] sm:$0xff]  ;;  %v1258_v53 = vld [vmem:[%s1169_s15 + $0x32] sm:$0xff]  ;;  %v380_v56 = vmul.f32 %v1246_v46, %v1244_v45  ;;  %v349_v60 = vsel %vm280_vm0, %v331_v42, 0.0  ;;  %v346_v61 = vsel %vm280_vm0, %v330_v43, 0.0 }
  0x3c   : > { %v366_v52 = vld [vmem:[%s1169_s15 + $0x2] sm:$0xff]  ;;  %v1264_v55 = vsel %vm280_vm0, %v493_v47, 0.0  ;;  %v1269_v57 = vld [vmem:[%s1169_s15 + $0x52] sm:$0xff]  ;;  %v355_v62 = vsel %vm280_vm0, %v333_v44, 0.0  ;;  %v546_v63 = vmul.f32 %v1271_v58, %v1252_v49  ;;  %v1284_v3 = vmul.f32 %v1246_v46, %v1258_v53 }
  0x3d   : > { %v1261_v54 = vld [vmem:[%s1169_s15 + $0x22] sm:$0xff]  ;;  %v352_v1 = vsel %vm280_vm0, %v332_v48, 0.0  ;;  %v379_v2 = vmul.f32 %v1246_v46, %v366_v52  ;;  %v992_v7 = vld [vmem:[%s1169_s15 + $0x90] sm:$0xff]  ;;  %v1293_v8 = vmul.f32 %v1246_v46, %v1269_v57  ;;  %v594_v12 = vmul.f32 %v1273_v59, %v1177_v5 }
  0x3e   : > { %297 = vadd.xlane.f32.xlu1 %v296_v19  ;;  %v1288_v4 = vmul.f32 %v1246_v46, %v1261_v54  ;;  %v1296_v11 = vsel %vm280_vm0, %v546_v63, 0.0  ;;  %v593_v13 = vmul.f32 %v1273_v59, %v1172_v0  ;;  %v390_v14 = vsel %vm280_vm0, %v380_v56, 0.0  ;;  %v1310_v21 = vld [vmem:[%s1169_s15 + $0x42] sm:$0xff] }
  0x3f   : > { %294 = vadd.xlane.f32.xlu0 %v293_v20  ;;  %v596_v15 = vmul.f32 %v1273_v59, %v1185_v9  ;;  %v595_v16 = vmul.f32 %v1273_v59, %v1188_v10  ;;  %v598_v19 = vmul.f32 %v1273_v59, %v1197_v17  ;;  %v1002_v20 = vld [vmem:[#allocation3 + $0x7] ss:$0 sm:$0xff]  ;;  %v1313_v22 = vsel %vm280_vm0, %v594_v12, 0.0 }
  0x40   : > { %v1316_v24 = vsel %vm280_vm0, %v593_v13, 0.0  ;;  %v597_v25 = vmul.f32 %v1273_v59, %v1200_v18  ;;  %v647_v42 = vmul.f32 %v1002_v20, %v1214_v30  ;;  %v646_v43 = vmul.f32 %v1002_v20, %v1217_v31  ;;  %v1010_v13 = vld [vmem:[%s1169_s15 + $0x92] sm:$0xff] }
  0x41   : > { %v1323_v28 = vsel %vm280_vm0, %v596_v15, 0.0  ;;  %v1326_v29 = vsel %vm280_vm0, %v595_v16, 0.0  ;;  %v383_v44 = vmul.f32 %v1246_v46, %v1310_v21  ;;  %v649_v47 = vmul.f32 %v1002_v20, %v1220_v32  ;;  %v1364_v15 = vld [vmem:[%s1169_s15 + $0x72] sm:$0xff] }
  0x42   : > { %303 = vadd.xlane.f32.xlu1 %v302_v26  ;;  %v600_v26 = vmul.f32 %v1273_v59, %v992_v7  ;;  %v1333_v38 = vsel %vm280_vm0, %v597_v25, 0.0  ;;  %v648_v48 = vmul.f32 %v1002_v20, %v1223_v33  ;;  %v1346_v52 = vsel %vm280_vm0, %v647_v42, 0.0  ;;  %v1375_v25 = vld [vmem:[%s1169_s15 + $0x62] sm:$0xff] }
  0x43   : > { %300 = vadd.xlane.f32.xlu0 %v299_v27  ;;  %v387_v27 = vsel %vm280_vm0, %v379_v2, 0.0  ;;  %v1349_v56 = vsel %vm280_vm0, %v646_v43, 0.0  ;;  %v1353_v63 = vsel %vm280_vm0, %v649_v47, 0.0  ;;  %v652_v12 = vmul.f32 %v1002_v20, %v1229_v35 }
  0x44   : > { %v1336_v39 = vsel %vm280_vm0, %v600_v26, 0.0  ;;  %v1356_v2 = vsel %vm280_vm0, %v648_v48, 0.0 }
  0x45   : > { %v1378_v26 = vsel %vm280_vm0, %v652_v12, 0.0 }
  0x46   : > { %338 = vadd.xlane.f32.xlu1 %v337_v36  ;;  %v1329_v36 = vsel %vm280_vm0, %v598_v19, 0.0 }
  0x47   : > { %335 = vadd.xlane.f32.xlu0 %v334_v37  ;;  %v1001_v37 = vld [vmem:[%s1169_s15 + $0x91] sm:$0xff] }
  0x4a   : > { %344 = vadd.xlane.f32.xlu1 %v343_v50  ;;  %v651_v50 = vmul.f32 %v1002_v20, %v1226_v34 }
  0x4b   : > { %341 = vadd.xlane.f32.xlu0 %v340_v51  ;;  %v1011_v51 = vld [vmem:[#allocation3 + $0x8] ss:$0 sm:$0xff] }
  0x4c   : > { %v1359_v7 = vsel %vm280_vm0, %v651_v50, 0.0  ;;  %v699_v19 = vmul.f32 %v1011_v51, %v1261_v54  ;;  %v702_v35 = vmul.f32 %v1011_v51, %v1269_v57  ;;  %v703_v47 = vmul.f32 %v1011_v51, %v1375_v25 }
  0x4d   : > { %v706_v48 = vmul.f32 %v1011_v51, %v1010_v13  ;;  %v705_v12 = vmul.f32 %v1011_v51, %v1252_v49  ;;  %v402_v49 = vsel %vm280_vm0, %v1293_v8, 0.0 }
  0x4e   : > { %350 = vadd.xlane.f32.xlu1 %v349_v60  ;;  %v650_v60 = vmul.f32 %v1002_v20, %v1236_v40  ;;  %v1387_v43 = vsel %vm280_vm0, %v699_v19, 0.0  ;;  %v1391_v50 = vsel %vm280_vm0, %v702_v35, 0.0  ;;  %v393_v19 = vsel %vm280_vm0, %v1288_v4, 0.0  ;;  %v966_v35 = vld [vmem:[#allocation3 + $0x3] ss:$0 sm:$0xff] }
  0x4f   : > { %347 = vadd.xlane.f32.xlu0 %v346_v61  ;;  %v653_v61 = vmul.f32 %v1002_v20, %v1001_v37  ;;  %v701_v20 = vmul.f32 %v1011_v51, %v1310_v21  ;;  %v704_v37 = vmul.f32 %v1011_v51, %v1364_v15  ;;  %v1411_v13 = vsel %vm280_vm0, %v705_v12, 0.0 }
  0x50   : > { %v1367_v16 = vsel %vm280_vm0, %v650_v60, 0.0  ;;  %v385_v4 = vmul.f32 %v1246_v46, %v1375_v25  ;;  %v433_v8 = vmul.f32 %v966_v35, %v1180_v6  ;;  %v435_v12 = vmul.f32 %v966_v35, %v1177_v5 }
  0x51   : > { %v1394_v60 = vsel %vm280_vm0, %v701_v20, 0.0  ;;  %v437_v6 = vmul.f32 %v966_v35, %v1185_v9  ;;  %v439_v5 = vmul.f32 %v966_v35, %v1197_v17  ;;  %v486_v9 = vmul.f32 %v1238_v41, %v1207_v23 }
  0x52   : > { %356 = vadd.xlane.f32.xlu1 %v355_v62  ;;  %v1370_v62 = vsel %vm280_vm0, %v653_v61, 0.0  ;;  %v1397_v61 = vsel %vm280_vm0, %v704_v37, 0.0  ;;  %v405_v37 = vsel %vm280_vm0, %v385_v4, 0.0  ;;  %v489_v17 = vmul.f32 %v1238_v41, %v1223_v33 }
  0x53   : > { %353 = vadd.xlane.f32.xlu0 %v352_v1  ;;  %v700_v1 = vmul.f32 %v1011_v51, %v1258_v53  ;;  %v399_v51 = vsel %vm280_vm0, %v383_v44, 0.0  ;;  %v491_v23 = vmul.f32 %v1238_v41, %v1236_v40  ;;  %v539_v40 = vmul.f32 %v1271_v58, %v1244_v45 }
  0x54   : > { %v544_v45 = vmul.f32 %v1271_v58, %v1375_v25 }
  0x55   : > { %v1384_v42 = vsel %vm280_vm0, %v700_v1, 0.0  ;;  %v396_v1 = vsel %vm280_vm0, %v1284_v3, 0.0  ;;  %v386_v3 = vmul.f32 %v1246_v46, %v1364_v15  ;;  %v436_v46 = vmul.f32 %v966_v35, %v1188_v10 }
  0x56   : > { %391 = vadd.xlane.f32.xlu1 %v390_v14  ;;  %v1405_v14 = vsel %vm280_vm0, %v703_v47, 0.0  ;;  %v434_v47 = vmul.f32 %v966_v35, %v1172_v0  ;;  %v438_v0 = vmul.f32 %v966_v35, %v1200_v18  ;;  %v487_v18 = vmul.f32 %v1238_v41, %v1217_v31 }
  0x57   : > { %388 = vadd.xlane.f32.xlu0 %v387_v27  ;;  %v1408_v27 = vsel %vm280_vm0, %v706_v48, 0.0  ;;  %v408_v20 = vsel %vm280_vm0, %v386_v3, 0.0  ;;  %v441_v48 = vsel %vm280_vm0, %v433_v8, 0.0  ;;  %v453_v3 = vsel %vm280_vm0, %v437_v6, 0.0 }
  0x58   : > { %v444_v44 = vsel %vm280_vm0, %v434_v47, 0.0  ;;  %v494_v47 = vsel %vm280_vm0, %v486_v9, 0.0  ;;  %v503_v8 = vsel %vm280_vm0, %v489_v17, 0.0 }
  0x5a   : > { %397 = vadd.xlane.f32.xlu1 %v396_v1  ;;  %v450_v1 = vsel %vm280_vm0, %v436_v46, 0.0 }
  0x5b   : > { %394 = vadd.xlane.f32.xlu0 %v393_v19  ;;  %v447_v19 = vsel %vm280_vm0, %v435_v12, 0.0  ;;  %v540_v12 = vmul.f32 %v1271_v58, %v1261_v54 }
  0x5e   : > { %403 = vadd.xlane.f32.xlu1 %v402_v49  ;;  %v965_v49 = vld [vmem:[%s1169_s15 + $0x80] sm:$0xff] }
  0x5f   : > { %400 = vadd.xlane.f32.xlu0 %v399_v51  ;;  %v456_v51 = vsel %vm280_vm0, %v438_v0, 0.0  ;;  %v440_v10 = vmul.f32 %v966_v35, %v965_v49  ;;  %v488_v35 = vmul.f32 %v1238_v41, %v1214_v30  ;;  %v492_v30 = vmul.f32 %v1238_v41, %v1226_v34 }
  0x60   : > { %v542_v34 = vmul.f32 %v1271_v58, %v1310_v21  ;;  %v562_v0 = vsel %vm280_vm0, %v544_v45, 0.0 }
  0x61   : > { %v462_v4 = vsel %vm280_vm0, %v440_v10, 0.0  ;;  %v500_v31 = vsel %vm280_vm0, %v488_v35, 0.0  ;;  %v512_v46 = vsel %vm280_vm0, %v492_v30, 0.0 }
  0x62   : > { %409 = vadd.xlane.f32.xlu1 %v408_v20  ;;  %v459_v20 = vsel %vm280_vm0, %v439_v5, 0.0  ;;  %v556_v54 = vsel %vm280_vm0, %v542_v34, 0.0 }
  0x63   : > { %406 = vadd.xlane.f32.xlu0 %v405_v37  ;;  %v497_v37 = vsel %vm280_vm0, %v487_v18, 0.0 }
  0x66   : > { %445 = vadd.xlane.f32.xlu1 %v444_v44  ;;  %v490_v44 = vmul.f32 %v1238_v41, %v1220_v32  ;;  %v550_v32 = vsel %vm280_vm0, %v540_v12, 0.0  ;;  %v541_v41 = vmul.f32 %v1271_v58, %v1258_v53  ;;  %v545_v53 = vmul.f32 %v1271_v58, %v1364_v15 }
  0x67   : > { %442 = vadd.xlane.f32.xlu0 %v441_v48  ;;  %v509_v48 = vsel %vm280_vm0, %v491_v23, 0.0 }
  0x68   : > { %v506_v33 = vsel %vm280_vm0, %v490_v44, 0.0  ;;  %v565_v6 = vsel %vm280_vm0, %v545_v53, 0.0 }
  0x6a   : > { %451 = vadd.xlane.f32.xlu1 %v450_v1  ;;  %v547_v1 = vsel %vm280_vm0, %v539_v40, 0.0 }
  0x6b   : > { %448 = vadd.xlane.f32.xlu0 %v447_v19  ;;  %v553_v19 = vsel %vm280_vm0, %v541_v41, 0.0 }
  0x6e   : > { %457 = vadd.xlane.f32.xlu1 %v456_v51 }
  0x6f   : > { %454 = vadd.xlane.f32.xlu0 %v453_v3 }
  0x72   : > { %463 = vadd.xlane.f32.xlu1 %v462_v4 }
  0x73   : > { %460 = vadd.xlane.f32.xlu0 %v459_v20 }
  0x76   : > { %498 = vadd.xlane.f32.xlu1 %v497_v37 }
  0x77   : > { %495 = vadd.xlane.f32.xlu0 %v494_v47 }
  0x7a   : > { %504 = vadd.xlane.f32.xlu1 %v503_v8 }
  0x7b   : > { %501 = vadd.xlane.f32.xlu0 %v500_v31 }
  0x7e   : > { %510 = vadd.xlane.f32.xlu1 %v509_v48 }
  0x7f   : > { %507 = vadd.xlane.f32.xlu0 %v506_v33 }
  0x82   : > { %516 = vadd.xlane.f32.xlu1 %v1264_v55  ;;  %v543_v55 = vmul.f32 %v1271_v58, %v1269_v57  ;;  %v599_v57 = vmul.f32 %v1273_v59, %v965_v49 }
  0x83   : > { %513 = vadd.xlane.f32.xlu0 %v512_v46 }
  0x84   : > { %v559_v21 = vsel %vm280_vm0, %v543_v55, 0.0  ;;  %v619_v58 = vsel %vm280_vm0, %v599_v57, 0.0 }
  0x86   : > { %551 = vadd.xlane.f32.xlu1 %v550_v32 }
  0x87   : > { %548 = vadd.xlane.f32.xlu0 %v547_v1 }
  0x8a   : > { %557 = vadd.xlane.f32.xlu1 %v556_v54 }
  0x8b   : > { %554 = vadd.xlane.f32.xlu0 %v553_v19 }
  0x8e   : > { %563 = vadd.xlane.f32.xlu1 %v562_v0 }
  0x8f   : > { %560 = vadd.xlane.f32.xlu0 %v559_v21 }
  0x92   : > { %569 = vadd.xlane.f32.xlu1 %v1296_v11 }
  0x93   : > { %566 = vadd.xlane.f32.xlu0 %v565_v6 }
  0x96   : > { %605 = vadd.xlane.f32.xlu1 %v1313_v22 }
  0x97   : > { %602 = vadd.xlane.f32.xlu0 %v1316_v24 }
  0x9a   : > { %611 = vadd.xlane.f32.xlu1 %v1323_v28 }
  0x9b   : > { %608 = vadd.xlane.f32.xlu0 %v1326_v29 }
  0x9e   : > { %617 = vadd.xlane.f32.xlu1 %v1329_v36  ;;  %v257_v36 = vstv %s256_s16 }
  0x9f   : > { %614 = vadd.xlane.f32.xlu0 %v1333_v38 }
  0xa2   : > { %623 = vadd.xlane.f32.xlu1 %v1336_v39 }
  0xa3   : > { %620 = vadd.xlane.f32.xlu0 %v619_v58 }
  0xa6   : > { %658 = vadd.xlane.f32.xlu1 %v1346_v52 }
  0xa7   : > { %655 = vadd.xlane.f32.xlu0 %v1349_v56 }
  0xaa   : > { %664 = vadd.xlane.f32.xlu1 %v1353_v63 }
  0xab   : > { %661 = vadd.xlane.f32.xlu0 %v1356_v2 }
  0xae   : > { %670 = vadd.xlane.f32.xlu1 %v1359_v7 }
  0xaf   : > { %667 = vadd.xlane.f32.xlu0 %v1367_v16 }
  0xb2   : > { %676 = vadd.xlane.f32.xlu1 %v1370_v62 }
  0xb3   : > { %673 = vadd.xlane.f32.xlu0 %v1378_v26 }
  0xb6   : > { %711 = vadd.xlane.f32.xlu1 %v1384_v42 }
  0xb7   : > { %708 = vadd.xlane.f32.xlu0 %v1387_v43 }
  0xba   : > { %717 = vadd.xlane.f32.xlu1 %v1391_v50 }
  0xbb   : > { %714 = vadd.xlane.f32.xlu0 %v1394_v60 }
  0xbe   : > { %723 = vadd.xlane.f32.xlu1 %v1397_v61 }
  0xbf   : > { %720 = vadd.xlane.f32.xlu0 %v1405_v14 }
  0xc2   : > { %729 = vadd.xlane.f32.xlu1 %v1408_v27 }
  0xc3   : > { %726 = vadd.xlane.f32.xlu0 %v1411_v13  ;;  %v289_v59 = vpop.xlane.xlu1 %288 }
  0xc4   : > { %v283_v11 = vpop.xlane.xlu0 %282  ;;  %v307_v16 = vadd.f32 %v289_v59, %v257_v36 }
  0xc5   : > { %v305_v52 = vadd.f32 %v283_v11, %v257_v36 }
  0xc7   : > { %v292_v22 = vpop.xlane.xlu1 %291 }
  0xc8   : > { %v286_v24 = vpop.xlane.xlu0 %285  ;;  %v308_v62 = vadd.f32 %v292_v22, %v257_v36 }
  0xc9   : > { %v306_v56 = vadd.f32 %v286_v24, %v257_v36 }
  0xcb   : > { %v298_v28 = vpop.xlane.xlu1 %297 }
  0xcc   : > { %v295_v29 = vpop.xlane.xlu0 %294  ;;  %v310_v50 = vadd.f32 %v298_v28, %v257_v36 }
  0xcd   : > { %v309_v60 = vadd.f32 %v295_v29, %v257_v36 }
  0xcf   : > { %v304_v38 = vpop.xlane.xlu1 %303 }
  0xd0   : > { %v301_v39 = vpop.xlane.xlu0 %300  ;;  %v312_v49 = vadd.f32 %v304_v38, %v257_v36 }
  0xd1   : > { %v311_v51 = vadd.f32 %v301_v39, %v257_v36 }
  0xd3   : > { %v339_v63 = vpop.xlane.xlu1 %338 }
  0xd4   : > { %v336_v2 = vpop.xlane.xlu0 %335  ;;  %v359_v7 = vadd.f32 %v339_v63, %v306_v56 }
  0xd5   : > { %v358_v15 = vadd.f32 %v336_v2, %v305_v52 }
  0xd7   : > { %v345_v25 = vpop.xlane.xlu1 %344 }
  0xd8   : > { %v342_v26 = vpop.xlane.xlu0 %341  ;;  %v361_v42 = vadd.f32 %v345_v25, %v308_v62 }
  0xd9   : > { %v360_v43 = vadd.f32 %v342_v26, %v307_v16 }
  0xdb   : > { %v351_v61 = vpop.xlane.xlu1 %350 }
  0xdc   : > { %v348_v14 = vpop.xlane.xlu0 %347  ;;  %v363_v27 = vadd.f32 %v351_v61, %v310_v50 }
  0xdd   : > { %v362_v13 = vadd.f32 %v348_v14, %v309_v60 }
  0xdf   : > { %v357_v3 = vpop.xlane.xlu1 %356 }
  0xe0   : > { %v354_v10 = vpop.xlane.xlu0 %353  ;;  %v365_v5 = vadd.f32 %v357_v3, %v312_v49  ;;  %v747_v3 = vlaneseq }
  0xe1   : > { %v364_v4 = vadd.f32 %v354_v10, %v311_v51 }
  0xe3   : > { %v392_v20 = vpop.xlane.xlu1 %391 }
  0xe4   : > { %v389_v18 = vpop.xlane.xlu0 %388  ;;  %v412_v9 = vadd.f32 %v392_v20, %v359_v7 }
  0xe5   : > { %v411_v37 = vadd.f32 %v389_v18, %v358_v15  ;;  %v748_v18 = vand.u32 127, %v747_v3 }
  0xe7   : > { %v398_v47 = vpop.xlane.xlu1 %397 }
  0xe8   : > { %v395_v17 = vpop.xlane.xlu0 %394  ;;  %v414_v35 = vadd.f32 %v398_v47, %v361_v42 }
  0xe9   : > { %v413_v8 = vadd.f32 %v395_v17, %v360_v43 }
  0xeb   : > { %v404_v31 = vpop.xlane.xlu1 %403 }
  0xec   : > { %v401_v23 = vpop.xlane.xlu0 %400  ;;  %v416_v44 = vadd.f32 %v404_v31, %v363_v27 }
  0xed   : > { %v415_v48 = vadd.f32 %v401_v23, %v362_v13 }
  0xef   : > { %v410_v33 = vpop.xlane.xlu1 %409 }
  0xf0   : > { %v407_v30 = vpop.xlane.xlu0 %406  ;;  %v418_v46 = vadd.f32 %v410_v33, %v365_v5 }
  0xf1   : > { %v417_v12 = vadd.f32 %v407_v30, %v364_v4 }
  0xf3   : > { %v446_v40 = vpop.xlane.xlu1 %445 }
  0xf4   : > { %v443_v32 = vpop.xlane.xlu0 %442  ;;  %v466_v1 = vadd.f32 %v446_v40, %v412_v9  ;;  %v750_v9 = vshrl.u32 %v747_v3, 7 }
  0xf5   : > { %v465_v34 = vadd.f32 %v443_v32, %v411_v37 }
  0xf7   : > { %v452_v41 = vpop.xlane.xlu1 %451 }
  0xf8   : > { %v449_v54 = vpop.xlane.xlu0 %448  ;;  %v468_v19 = vadd.f32 %v452_v41, %v414_v35 }
  0xf9   : > { %v467_v45 = vadd.f32 %v449_v54, %v413_v8 }
  0xfb   : > { %v458_v55 = vpop.xlane.xlu1 %457 }
  0xfc   : > { %v455_v0 = vpop.xlane.xlu0 %454  ;;  %v470_v21 = vadd.f32 %v458_v55, %v416_v44 }
  0xfd   : > { %v469_v53 = vadd.f32 %v455_v0, %v415_v48  ;;  %v1511_v48 = vsub.s32 %v748_v18, %v750_v9 }
  0xff   : > { %v464_v6 = vpop.xlane.xlu1 %463 }
 0x100   : > { %v461_v57 = vpop.xlane.xlu0 %460  ;;  %v1507_v58 = vadd.f32 %v464_v6, %v418_v46 }
 0x101   : > { %v1509_v59 = vadd.f32 %v461_v57, %v417_v12 }
 0x103   : > { %v499_v11 = vpop.xlane.xlu1 %498 }
 0x104   : > { %v496_v22 = vpop.xlane.xlu0 %495  ;;  %v519_v4 = vadd.f32 %v499_v11, %v466_v1 }
 0x105   : > { %v518_v20 = vadd.f32 %v496_v22, %v465_v34 }
 0x107   : > { %v505_v24 = vpop.xlane.xlu1 %504 }
 0x108   : > { %v502_v28 = vpop.xlane.xlu0 %501  ;;  %v521_v8 = vadd.f32 %v505_v24, %v468_v19 }
 0x109   : > { %v520_v31 = vadd.f32 %v502_v28, %v467_v45 }
 0x10b   : > { %v511_v29 = vpop.xlane.xlu1 %510 }
 0x10c   : > { %v508_v36 = vpop.xlane.xlu0 %507  ;;  %v523_v40 = vadd.f32 %v511_v29, %v470_v21 }
 0x10d   : > { %v522_v32 = vadd.f32 %v508_v36, %v469_v53 }
 0x10f   : > { %v517_v38 = vpop.xlane.xlu1 %516 }
 0x110   : > { %v514_v39 = vpop.xlane.xlu0 %513  ;;  %v525_v24 = vadd.f32 %v517_v38, %v1507_v58 }
 0x111   : > { %v524_v21 = vadd.f32 %v514_v39, %v1509_v59 }
 0x113   : > { %v552_v52 = vpop.xlane.xlu1 %551 }
 0x114   : > { %v549_v56 = vpop.xlane.xlu0 %548  ;;  %v572_v37 = vadd.f32 %v552_v52, %v519_v4 }
 0x115   : > { %v571_v47 = vadd.f32 %v549_v56, %v518_v20 }
 0x117   : > { %v558_v63 = vpop.xlane.xlu1 %557 }
 0x118   : > { %v555_v2 = vpop.xlane.xlu0 %554  ;;  %v574_v33 = vadd.f32 %v558_v63, %v521_v8 }
 0x119   : > { %v573_v30 = vadd.f32 %v555_v2, %v520_v31 }
 0x11b   : > { %v564_v7 = vpop.xlane.xlu1 %563 }
 0x11c   : > { %v561_v15 = vpop.xlane.xlu0 %560  ;;  %v576_v6 = vadd.f32 %v564_v7, %v523_v40 }
 0x11d   : > { %v575_v57 = vadd.f32 %v561_v15, %v522_v32 }
 0x11f   : > { %v570_v16 = vpop.xlane.xlu1 %569 }
 0x120   : > { %v567_v62 = vpop.xlane.xlu0 %566  ;;  %v578_v2 = vadd.f32 %v570_v16, %v525_v24 }
 0x121   : > { %v577_v7 = vadd.f32 %v567_v62, %v524_v21 }
 0x123   : > { %v606_v25 = vpop.xlane.xlu1 %605 }
 0x124   : > { %v603_v26 = vpop.xlane.xlu0 %602  ;;  %v626_v23 = vadd.f32 %v606_v25, %v572_v37 }
 0x125   : > { %v625_v44 = vadd.f32 %v603_v26, %v571_v47 }
 0x127   : > { %v612_v42 = vpop.xlane.xlu1 %611 }
 0x128   : > { %v609_v43 = vpop.xlane.xlu0 %608  ;;  %v628_v41 = vadd.f32 %v612_v42, %v574_v33 }
 0x129   : > { %v627_v54 = vadd.f32 %v609_v43, %v573_v30 }
 0x12b   : > { %v618_v50 = vpop.xlane.xlu1 %617 }
 0x12c   : > { %v615_v60 = vpop.xlane.xlu0 %614  ;;  %v630_v53 = vadd.f32 %v618_v50, %v576_v6 }
 0x12d   : > { %v629_v36 = vadd.f32 %v615_v60, %v575_v57 }
 0x12f   : > { %v624_v61 = vpop.xlane.xlu1 %623 }
 0x130   : > { %v621_v14 = vpop.xlane.xlu0 %620  ;;  %v632_v58 = vadd.f32 %v624_v61, %v578_v2 }
 0x131   : > { %v631_v38 = vadd.f32 %v621_v14, %v577_v7 }
 0x133   : > { %v659_v27 = vpop.xlane.xlu1 %658 }
 0x134   : > { %v656_v13 = vpop.xlane.xlu0 %655  ;;  %v679_v46 = vadd.f32 %v659_v27, %v626_v23 }
 0x135   : > { %v678_v12 = vadd.f32 %v656_v13, %v625_v44 }
 0x137   : > { %v665_v49 = vpop.xlane.xlu1 %664 }
 0x138   : > { %v662_v51 = vpop.xlane.xlu0 %661  ;;  %v681_v19 = vadd.f32 %v665_v49, %v628_v41 }
 0x139   : > { %v680_v45 = vadd.f32 %v662_v51, %v627_v54 }
 0x13b   : > { %v671_v10 = vpop.xlane.xlu1 %670 }
 0x13c   : > { %v668_v5 = vpop.xlane.xlu0 %667  ;;  %v683_v15 = vadd.f32 %v671_v10, %v630_v53 }
 0x13d   : > { %v682_v25 = vadd.f32 %v668_v5, %v629_v36 }
 0x13f   : > { %v677_v17 = vpop.xlane.xlu1 %676 }
 0x140   : > { %v674_v35 = vpop.xlane.xlu0 %673  ;;  %v685_v27 = vadd.f32 %v677_v17, %v632_v58 }
 0x141   : > { %v684_v16 = vadd.f32 %v674_v35, %v631_v38 }
 0x143   : > { %v712_v1 = vpop.xlane.xlu1 %711 }
 0x144   : > { %v709_v34 = vpop.xlane.xlu0 %708  ;;  %v732_v55 = vadd.f32 %v712_v1, %v679_v46 }
 0x145   : > { %v731_v0 = vadd.f32 %v709_v34, %v678_v12 }
 0x146   : > { %v756_v11 = vrot.slane %v732_v55, %v1511_v48 }
 0x147   : > { %v752_v22 = vrot.slane %v731_v0, %v1511_v48  ;;  %v718_v28 = vpop.xlane.xlu1 %717 }
 0x148   : > { %v715_v29 = vpop.xlane.xlu0 %714  ;;  %v734_v56 = vadd.f32 %v718_v28, %v681_v19 }
 0x149   : > { %v782_v52 = vsel %vm781_vm1, %v756_v11, %v752_v22  ;;  %v733_v63 = vadd.f32 %v715_v29, %v680_v45 }
 0x14a   : > { %v764_v26 = vrot.slane %v734_v56, %v1511_v48 }
 0x14b   : > { %v760_v42 = vrot.slane %v733_v63, %v1511_v48  ;;  %v724_v59 = vpop.xlane.xlu1 %723 }
 0x14c   : > { %v721_v39 = vpop.xlane.xlu0 %720  ;;  %v736_v50 = vadd.f32 %v724_v59, %v683_v15 }
 0x14d   : > { %v784_v43 = vsel %vm783_vm2, %v760_v42, %v782_v52  ;;  %v735_v60 = vadd.f32 %v721_v39, %v682_v25 }
 0x14e   : > { %v786_v62 = vsel %vm785_vm3, %v764_v26, %v784_v43  ;;  %v772_v13 = vrot.slane %v736_v50, %v1511_v48  ;;  %v799_v49 = vmin.f32 %v732_v55, %v736_v50  ;;  %v816_v51 = vmax.f32 %v732_v55, %v736_v50 }
 0x14f   : > { %v768_v3 = vrot.slane %v735_v60, %v1511_v48  ;;  %v798_v10 = vmin.f32 %v731_v0, %v735_v60  ;;  %v815_v61 = vmax.f32 %v731_v0, %v735_v60  ;;  %v730_v14 = vpop.xlane.xlu1 %729 }
 0x150   : > { %v727_v5 = vpop.xlane.xlu0 %726  ;;  %v738_v20 = vadd.f32 %v730_v14, %v685_v27 }
 0x151   : > { %v788_v4 = vsel %vm787_vm4, %v768_v3, %v786_v62  ;;  %v737_v18 = vadd.f32 %v727_v5, %v684_v16  ;;  %v802_v9 = vmin.f32 %v798_v10, %v799_v49  ;;  %v819_v37 = vmax.f32 %v815_v61, %v816_v51 }
 0x152   : > { %v790_v47 = vsel %vm789_vm5, %v772_v13, %v788_v4  ;;  %v780_v17 = vrot.slane %v738_v20, %v1511_v48  ;;  %v801_v35 = vmin.f32 %v734_v56, %v738_v20  ;;  %v818_v8 = vmax.f32 %v734_v56, %v738_v20 }
 0x153   : > { %v776_v31 = vrot.slane %v737_v18, %v1511_v48  ;;  %v800_v23 = vmin.f32 %v733_v63, %v737_v18  ;;  %v817_v44 = vmax.f32 %v733_v63, %v737_v18 }
 0x155   : > { %v792_v33 = vsel %vm791_vm6, %v776_v31, %v790_v47  ;;  %v803_v46 = vmin.f32 %v800_v23, %v801_v35  ;;  %v820_v12 = vmax.f32 %v817_v44, %v818_v8 }
 0x156   : > { %v794_v30 = vsel %vm793_vm7, %v780_v17, %v792_v33 }
 0x157   : > { %797 = vst.msk [vmem:[%s249_s22] sm:$0xff] %vm796_vm8, %v794_v30  ;;  %v804_v40 = vmin.f32 %v802_v9, %v803_v46  ;;  %v821_v32 = vmax.f32 %v819_v37, %v820_v12 }
 0x159   : > { %v805_v1 = vrot.slane %v804_v40, 4  ;;  %v822_v34 = vrot.slane %v821_v32, 4 }
 0x15b   : > { %v806_v41 = vmin.f32 %v804_v40, %v805_v1  ;;  %v823_v48 = vmax.f32 %v821_v32, %v822_v34 }
 0x15d   : > { %v807_v54 = vrot.slane %v806_v41, 2  ;;  %v824_v55 = vrot.slane %v823_v48, 2 }
 0x15f   : > { %v808_v0 = vmin.f32 %v806_v41, %v807_v54  ;;  %v825_v6 = vmax.f32 %v823_v48, %v824_v55 }
 0x161   : > { %v809_v57 = vrot.slane %v808_v0, 1  ;;  %v826_v19 = vrot.slane %v825_v6, 1 }
 0x163   : > { %v810_v45 = vmin.f32 %v808_v0, %v809_v57  ;;  %v827_v11 = vmax.f32 %v825_v6, %v826_v19 }
 0x165   : > { %1015 = vpush %v810_v45 }
 0x166   : > { %1017 = vpush %v827_v11 }
 0x196   : > { %s1016_s25 = spop %1015 }
 0x197   : > { %v812_v22 = vstv %s1016_s25  ;;  %s1018_s29 = spop %1017 }
 0x198   : > { %814 = vst.msk [vmem:[%s252_s24] sm:$0x1] %vm813_vm9, %v812_v22  ;;  %v829_v24 = vstv %s1018_s29 }
 0x199   : > { %830 = vst.msk [vmem:[%s255_s28] sm:$0x1] %vm813_vm9, %v829_v24 }
 0x19a PF: > { %s18_s20 = sadd.s32 1, %s1078_s20  }
 0x19b   : > { %p15_p3 = scmp.ge.s32.totalorder %s18_s20, 4  }
 0x19d   :  { %17 = sbr.rel (!%p15_p3) target bundleno = 3 (0x3), region = 93 }
 0x1a4   :  { %874 = vsyncpa [#allocation4], 1 }
 0x1a5   :  { %876 = vsyncpa [#allocation4 + $0x1], 1 }

// kernel: squeeze.6
= control target key start
LH: loop header
LB: loop body
LE: loop exit
PB: predicated region body
PF: predicated region fallthrough
CT: control target
= control target key end

     0   :  { %s66_s8 = smov 104   ;;  %vm7_vm0 = vcmask 64512   ;;  %s67_s11 = smov 112   ;;  %s117_s0 = inlined_call_operand.vmem [shape: f32[2,64], index: 0, kind: input, shape index: {}]   ;;  %s118_s1 = inlined_call_operand.vmem [shape: f32[2,8,8], index: 1, kind: output, shape index: {}]  }
   0x1   :  { %v4_v0 = vld [vmem:[%s117_s0] sm:$0x3]  ;;  %s65_s0 = smov 120   ;;  %s68_s12 = smov 96  }
   0x2   :  { %5 = vst [vmem:[#allocation0] sm:$0x3] %v4_v0  ;;  %s69_s13 = smov 88   ;;  %s70_s14 = smov 80  }
   0x3   :  { %s71_s15 = smov 72  }
   0x9   :  { %v9_v1 = vld [vmem:[#allocation0] sm:$0x3]  }
   0xa   :  { %v21_v2 = vld [vmem:[#allocation0] sm:$0x3]   ;;  %10 = vrot.lane.b32.xlu0 %v9_v1, %s65_s0 }
   0xb   :  { %22 = vrot.lane.b32.xlu1 %v21_v2, %s66_s8  ;;  %v15_v3 = vld [vmem:[#allocation0] sm:$0x3]  }
   0xc   :  { %v27_v4 = vld [vmem:[#allocation0] sm:$0x3]  }
   0xd   :  { %v6_v5 = vld [vmem:[#allocation0] sm:$0x3]  }
   0xe   :  { %8 = vst.msk [vmem:[%s118_s1] ss:$8 sm:$0x3] %vm7_vm0, %v6_v5   ;;  %16 = vrot.lane.b32.xlu0 %v15_v3, %s67_s11  ;;  %v33_v6 = vld [vmem:[#allocation0] sm:$0x3]  }
   0xf   :  { %28 = vrot.lane.b32.xlu1 %v27_v4, %s68_s12  ;;  %v39_v7 = vld [vmem:[#allocation0] sm:$0x3]  }
  0x10   :  { %v45_v8 = vld [vmem:[#allocation0] sm:$0x3]  }
  0x12   :  { %34 = vrot.lane.b32.xlu0 %v33_v6, %s69_s13 }
  0x13   :  { %40 = vrot.lane.b32.xlu1 %v39_v7, %s70_s14 }
  0x16   :  { %46 = vrot.lane.b32.xlu0 %v45_v8, %s71_s15 }
  0x7c   :  { %v11_v9 = vpop.permute.xlu0 %10  }
  0x7d   :  { %v23_v10 = vpop.permute.xlu1 %22   ;;  %51 = vst.msk [vmem:[%s118_s1 + $0x1] ss:$8 sm:$0x3] %vm7_vm0, %v11_v9  }
  0x7e   :  { %53 = vst.msk [vmem:[%s118_s1 + $0x3] ss:$8 sm:$0x3] %vm7_vm0, %v23_v10  }
  0x80   :  { %v17_v11 = vpop.permute.xlu0 %16  }
  0x81   :  { %v29_v12 = vpop.permute.xlu1 %28   ;;  %52 = vst.msk [vmem:[%s118_s1 + $0x2] ss:$8 sm:$0x3] %vm7_vm0, %v17_v11  }
  0x82   :  { %54 = vst.msk [vmem:[%s118_s1 + $0x4] ss:$8 sm:$0x3] %vm7_vm0, %v29_v12  }
  0x84   :  { %v35_v13 = vpop.permute.xlu0 %34  }
  0x85   :  { %v41_v14 = vpop.permute.xlu1 %40   ;;  %55 = vst.msk [vmem:[%s118_s1 + $0x5] ss:$8 sm:$0x3] %vm7_vm0, %v35_v13  }
  0x86   :  { %56 = vst.msk [vmem:[%s118_s1 + $0x6] ss:$8 sm:$0x3] %vm7_vm0, %v41_v14  }
  0x88   :  { %v47_v15 = vpop.permute.xlu0 %46  }
  0x89   :  { %57 = vst.msk [vmem:[%s118_s1 + $0x7] ss:$8 sm:$0x3] %vm7_vm0, %v47_v15  }

// kernel: ec_cnn_dtm_forward.16
= control target key start
LH: loop header
LB: loop body
LE: loop exit
PB: predicated region body
PF: predicated region fallthrough
CT: control target
= control target key end

     0   :  { %8 = vsyncpa [#allocation3], 0  ;;  %s1437_s12 = smov 0   ;;  %s1439_s13 = smov 0   ;;  %s2177_s0 = inlined_call_operand.vmem [shape: f32[2,64,64], index: 0, kind: input, shape index: {}]   ;;  %s2178_s1 = inlined_call_operand.vmem [shape: f32[64,64], index: 1, kind: input, shape index: {}]   ;;  %s2179_s2 = inlined_call_operand.vmem [shape: f32[2], index: 2, kind: input, shape index: {}]   ;;  %s2180_s3 = inlined_call_operand.vmem [shape: f32[2,64,1], index: 3, kind: output, shape index: {}]  }
   0x1   :  { %s1441_s14 = smov 0  }
   0x2 LB: > { %s1210_s15 = sadd.s32 4294967295, %s1406_s14   ;;  %s26_s16 = sadd.s32 1, %s1402_s13  ;;  %s1406_s14 = sphi %s1441_s14, %s14_s14   ;;  %s1402_s13 = sphi %s1439_s13, %s2184_s13   ;;  %s1398_s12 = sphi %s1437_s12, %s2183_s12  }
   0x3   : > { %p28_p0 = scmp.ge.s32.totalorder %s26_s16, 2  ;;  %p1212_p1 = scmp.ge.s32.totalorder %s1406_s14, 1 }
   0x4   : > { %p134_p2 = scmp.lt.s32.totalorder %s1406_s14, 3  ;;  %p1462_p4 = scmp.eq.s32.totalorder %s1210_s15, 0 }
   0x5   : > { %s2186_s16 = smov (%p28_p0, %s26_s16), 0  ;;  %s156_s21 = sshll.u32 %s2179_s2, 4  ;;  %s157_s21 = int_to_ptr.vmem [resolvable:$true] %s156_s21 }
   0x6   : > { %p1458_p3 = pnand %p1212_p1, %p134_p2  ;;  %s1365_s22 = scalar_lea.vmem %s157_s21, 16 }
   0x7   : > { %p1366_p7 = scmp.ne.s32.totalorder %s157_s21, %s1365_s22  ;;  %p1373_p11 = scmp.lt.s32.totalorder %s157_s21, %s157_s21 }
   0x8   : > { %p1300_p5 = pneg %p1458_p3  ;;  %p1374_p12 = scmp.lt.s32.totalorder %s1365_s22, %s1365_s22 }
   0xa   : > { %p1301_p6 = pnand %p1462_p4, %p1300_p5  ;;  %p1375_p13 = por %p1374_p12, %p1373_p11 }
   0xc   : > { %p1367_p8 = pneg %p1301_p6 }
   0xe   : > { %p1368_p9 = pnand %p1367_p8, %p1366_p7 }
  0x10   : > { %p1369_p10 = pneg %p1368_p9 }
  0x12   : > { %p1376_p0 = pnand %p1375_p13, %p1369_p10 }
  0x14   : > { %1379 = shalt.err (!%p1376_p0)
}
  0x15   : > { %s1408_s23 = smov [#allocation2]   ;;  %182 = sbr.rel (%p1458_p3) target bundleno = 2395 (0x95b), region = 32 }
  0x16   : > { %1303 = dma.vmem_to_smem (!%p1301_p6), %s157_s21, 16, %s1408_s23, [#allocation3]  }
  0x1c   : > { %1393 = dma.done.wait (%p1462_p4), [#allocation3], 16  }
  0x1d   : > { %1395 = vsyncadd (%p1462_p4), [#allocation3], 4294967280 }
  0x1e   : > { %188 = sfence }
  0x1f   : > { %p221_p1 = scmp.lt.s32.totalorder %s1398_s12, 1  ;;  %s1409_s29 = smov 64   ;;  %vm265_vm0 = vcmask 1048064   ;;  %v263_v40 = vlaneseq  ;;  %vm889_vm7 = vcmask 523264   ;;  %vm1087_vm8 = vcmask 7168  }
  0x20   : > { %s1410_s30 = smov 65   ;;  %s1411_s4 = smov 66  }
  0x21   : > { %s1481_s24 = scalar_select %p221_p1, %s1398_s12, 1  ;;  %v1571_v41 = vand.u32 127, %v263_v40 }
  0x22   : > { %s1412_s5 = smov 68   ;;  %s1413_s6 = smov 72  }
  0x23   : > { %s1232_s25 = sshll.u32 %s1481_s24, 6  ;;  %vm314_vm1 = vcmp.ge.s32.totalorder %v1571_v41, 1  ;;  %vm411_vm2 = vcmp.ge.s32.totalorder %v1571_v41, 2  ;;  %vm508_vm3 = vcmp.ge.s32.totalorder %v1571_v41, 4  ;;  %vm605_vm4 = vcmp.ge.s32.totalorder %v1571_v41, 8  ;;  %s1414_s7 = smov 80  }
  0x24   : > { %s1489_s28 = scalar_lea.vmem %s2177_s0, %s1232_s25  ;;  %vm702_vm5 = vcmp.ge.s32.totalorder %v1571_v41, 16  ;;  %s1416_s8 = smov 96   ;;  %vm799_vm6 = vcmp.ge.s32.totalorder %v1571_v41, 32 }
  0x25   : > { %v1492_v0 = vld [vmem:[%s1489_s28] sm:$0xff]  ;;  %v1495_v1 = vld [vmem:[%s1489_s28 + $0x8] sm:$0xff]  ;;  %v1512_v4 = vld [vmem:[%s1489_s28 + $0x10] sm:$0xff]  ;;  %s262_s9 = sld [smem:[#allocation2 + %s1398_s12]] }
  0x26   : > { %266 = vrot.lane.b32.xlu0 %v1492_v0, %s1409_s29  ;;  %269 = vrot.lane.b32.xlu1 %v1495_v1, %s1409_s29  ;;  %v1502_v2 = vld [vmem:[%s1489_s28 + $0x20] sm:$0xff]  ;;  %v1505_v3 = vld [vmem:[%s1489_s28 + $0x28] sm:$0xff] }
  0x27   : > { %v1515_v5 = vld [vmem:[%s1489_s28 + $0x30] sm:$0xff]  ;;  %v1522_v6 = vld [vmem:[%s1489_s28 + $0x18] sm:$0xff] }
  0x28   : > { %v1525_v7 = vld [vmem:[%s1489_s28 + $0x38] sm:$0xff] }
  0x2a   : > { %278 = vrot.lane.b32.xlu0 %v1502_v2, %s1409_s29  ;;  %281 = vrot.lane.b32.xlu1 %v1505_v3, %s1409_s29 }
  0x2e   : > { %272 = vrot.lane.b32.xlu0 %v1512_v4, %s1409_s29  ;;  %284 = vrot.lane.b32.xlu1 %v1515_v5, %s1409_s29 }
  0x32   : > { %275 = vrot.lane.b32.xlu0 %v1522_v6, %s1409_s29  ;;  %287 = vrot.lane.b32.xlu1 %v1525_v7, %s1409_s29 }
  0x98   : > { %v267_v8 = vpop.permute.xlu0 %266  ;;  %v270_v9 = vpop.permute.xlu1 %269 }
  0x99   : > { %v268_v10 = vsel %vm265_vm0, %v267_v8, %v1492_v0  ;;  %v271_v11 = vsel %vm265_vm0, %v270_v9, %v1495_v1 }
  0x9a   : > { %290 = vrot.lane.b32.xlu0 %v268_v10, %s1409_s29 }
  0x9c   : > { %v279_v12 = vpop.permute.xlu0 %278  ;;  %v282_v13 = vpop.permute.xlu1 %281 }
  0x9d   : > { %v280_v14 = vsel %vm265_vm0, %v279_v12, %v1502_v2  ;;  %v283_v15 = vsel %vm265_vm0, %v282_v13, %v1505_v3 }
  0x9e   : > { %292 = vrot.lane.b32.xlu0 %v271_v11, %s1409_s29  ;;  %298 = vrot.lane.b32.xlu1 %v280_v14, %s1409_s29 }
  0xa0   : > { %v273_v16 = vpop.permute.xlu0 %272  ;;  %v285_v17 = vpop.permute.xlu1 %284 }
  0xa1   : > { %v274_v18 = vsel %vm265_vm0, %v273_v16, %v1512_v4  ;;  %v286_v19 = vsel %vm265_vm0, %v285_v17, %v1515_v5 }
  0xa2   : > { %300 = vrot.lane.b32.xlu1 %v283_v15, %s1409_s29  ;;  %294 = vrot.lane.b32.xlu0 %v274_v18, %s1409_s29 }
  0xa4   : > { %v276_v20 = vpop.permute.xlu0 %275  ;;  %v288_v21 = vpop.permute.xlu1 %287 }
  0xa5   : > { %v277_v22 = vsel %vm265_vm0, %v276_v20, %v1522_v6  ;;  %v289_v23 = vsel %vm265_vm0, %v288_v21, %v1525_v7 }
  0xa6   : > { %302 = vrot.lane.b32.xlu1 %v286_v19, %s1409_s29  ;;  %296 = vrot.lane.b32.xlu0 %v277_v22, %s1409_s29 }
  0xaa   : > { %304 = vrot.lane.b32.xlu1 %v289_v23, %s1409_s29 }
 0x10c   : > { %v291_v24 = vpop.permute.xlu0 %290 }
 0x10d   : > { %v306_v25 = vsel %vm265_vm0, %v291_v24, %v1492_v0 }
 0x10e   : > { %323 = vrot.lane.b32.xlu0 %v306_v25, %s1410_s30 }
 0x110   : > { %v299_v26 = vpop.permute.xlu1 %298  ;;  %v293_v27 = vpop.permute.xlu0 %292 }
 0x111   : > { %v310_v28 = vsel %vm265_vm0, %v299_v26, %v1502_v2  ;;  %v307_v29 = vsel %vm265_vm0, %v293_v27, %v1495_v1 }
 0x112   : > { %331 = vrot.lane.b32.xlu1 %v310_v28, %s1410_s30  ;;  %325 = vrot.lane.b32.xlu0 %v307_v29, %s1410_s30 }
 0x114   : > { %v301_v30 = vpop.permute.xlu1 %300  ;;  %v295_v31 = vpop.permute.xlu0 %294 }
 0x115   : > { %v311_v32 = vsel %vm265_vm0, %v301_v30, %v1505_v3  ;;  %v308_v33 = vsel %vm265_vm0, %v295_v31, %v1512_v4 }
 0x116   : > { %333 = vrot.lane.b32.xlu1 %v311_v32, %s1410_s30  ;;  %327 = vrot.lane.b32.xlu0 %v308_v33, %s1410_s30 }
 0x118   : > { %v303_v34 = vpop.permute.xlu1 %302  ;;  %v297_v35 = vpop.permute.xlu0 %296 }
 0x119   : > { %v312_v36 = vsel %vm265_vm0, %v303_v34, %v1515_v5  ;;  %v309_v37 = vsel %vm265_vm0, %v297_v35, %v1522_v6 }
 0x11a   : > { %335 = vrot.lane.b32.xlu1 %v312_v36, %s1410_s30  ;;  %329 = vrot.lane.b32.xlu0 %v309_v37, %s1410_s30 }
 0x11c   : > { %v305_v38 = vpop.permute.xlu1 %304 }
 0x11d   : > { %v313_v39 = vsel %vm265_vm0, %v305_v38, %v1525_v7 }
 0x11e   : > { %337 = vrot.lane.b32.xlu1 %v313_v39, %s1410_s30 }
 0x180   : > { %v324_v42 = vpop.permute.xlu0 %323 }
 0x181   : > { %v347_v43 = vsel %vm314_vm1, %v324_v42, 0.0 }
 0x182   : > { %v1577_v44 = vadd.f32 %v347_v43, %v1492_v0 }
 0x184   : > { %v332_v45 = vpop.permute.xlu1 %331  ;;  %363 = vrot.lane.b32.xlu0 %v1577_v44, %s1409_s29  ;;  %v326_v46 = vpop.permute.xlu0 %325 }
 0x185   : > { %v351_v47 = vsel %vm314_vm1, %v332_v45, 0.0  ;;  %v348_v48 = vsel %vm314_vm1, %v326_v46, 0.0 }
 0x186   : > { %v1586_v49 = vadd.f32 %v351_v47, %v1502_v2  ;;  %v1589_v50 = vadd.f32 %v348_v48, %v1495_v1 }
 0x188   : > { %375 = vrot.lane.b32.xlu1 %v1586_v49, %s1409_s29  ;;  %v334_v51 = vpop.permute.xlu1 %333  ;;  %366 = vrot.lane.b32.xlu0 %v1589_v50, %s1409_s29  ;;  %v328_v52 = vpop.permute.xlu0 %327 }
 0x189   : > { %v352_v53 = vsel %vm314_vm1, %v334_v51, 0.0  ;;  %v349_v54 = vsel %vm314_vm1, %v328_v52, 0.0 }
 0x18a   : > { %v1600_v55 = vadd.f32 %v352_v53, %v1505_v3  ;;  %v1603_v56 = vadd.f32 %v349_v54, %v1512_v4 }
 0x18c   : > { %378 = vrot.lane.b32.xlu1 %v1600_v55, %s1409_s29  ;;  %v336_v57 = vpop.permute.xlu1 %335  ;;  %369 = vrot.lane.b32.xlu0 %v1603_v56, %s1409_s29  ;;  %v330_v58 = vpop.permute.xlu0 %329 }
 0x18d   : > { %v353_v59 = vsel %vm314_vm1, %v336_v57, 0.0  ;;  %v350_v60 = vsel %vm314_vm1, %v330_v58, 0.0 }
 0x18e   : > { %v1614_v61 = vadd.f32 %v353_v59, %v1515_v5  ;;  %v1617_v62 = vadd.f32 %v350_v60, %v1522_v6 }
 0x190   : > { %381 = vrot.lane.b32.xlu1 %v1614_v61, %s1409_s29  ;;  %v338_v63 = vpop.permute.xlu1 %337  ;;  %372 = vrot.lane.b32.xlu0 %v1617_v62, %s1409_s29 }
 0x191   : > { %v354_v1 = vsel %vm314_vm1, %v338_v63, 0.0 }
 0x192   : > { %v1626_v3 = vadd.f32 %v354_v1, %v1525_v7 }
 0x194   : > { %384 = vrot.lane.b32.xlu1 %v1626_v3, %s1409_s29 }
 0x1f6   : > { %v364_v4 = vpop.permute.xlu0 %363 }
 0x1f7   : > { %v365_v5 = vsel %vm265_vm0, %v364_v4, %v1577_v44 }
 0x1f8   : > { %387 = vrot.lane.b32.xlu0 %v365_v5, %s1409_s29 }
 0x1fa   : > { %v376_v6 = vpop.permute.xlu1 %375  ;;  %v367_v8 = vpop.permute.xlu0 %366 }
 0x1fb   : > { %v377_v9 = vsel %vm265_vm0, %v376_v6, %v1586_v49  ;;  %v368_v10 = vsel %vm265_vm0, %v367_v8, %v1589_v50 }
 0x1fc   : > { %395 = vrot.lane.b32.xlu1 %v377_v9, %s1409_s29  ;;  %389 = vrot.lane.b32.xlu0 %v368_v10, %s1409_s29 }
 0x1fe   : > { %v379_v7 = vpop.permute.xlu1 %378  ;;  %v370_v11 = vpop.permute.xlu0 %369 }
 0x1ff   : > { %v380_v12 = vsel %vm265_vm0, %v379_v7, %v1600_v55  ;;  %v371_v13 = vsel %vm265_vm0, %v370_v11, %v1603_v56 }
 0x200   : > { %397 = vrot.lane.b32.xlu1 %v380_v12, %s1409_s29  ;;  %391 = vrot.lane.b32.xlu0 %v371_v13, %s1409_s29 }
 0x202   : > { %v382_v14 = vpop.permute.xlu1 %381  ;;  %v373_v15 = vpop.permute.xlu0 %372 }
 0x203   : > { %v383_v16 = vsel %vm265_vm0, %v382_v14, %v1614_v61  ;;  %v374_v17 = vsel %vm265_vm0, %v373_v15, %v1617_v62 }
 0x204   : > { %399 = vrot.lane.b32.xlu1 %v383_v16, %s1409_s29  ;;  %393 = vrot.lane.b32.xlu0 %v374_v17, %s1409_s29 }
 0x206   : > { %v385_v18 = vpop.permute.xlu1 %384 }
 0x207   : > { %v386_v19 = vsel %vm265_vm0, %v385_v18, %v1626_v3 }
 0x208   : > { %401 = vrot.lane.b32.xlu1 %v386_v19, %s1409_s29 }
 0x26a   : > { %v388_v20 = vpop.permute.xlu0 %387 }
 0x26b   : > { %v403_v21 = vsel %vm265_vm0, %v388_v20, %v1577_v44 }
 0x26c   : > { %420 = vrot.lane.b32.xlu0 %v403_v21, %s1411_s4 }
 0x26e   : > { %v396_v22 = vpop.permute.xlu1 %395  ;;  %v390_v23 = vpop.permute.xlu0 %389 }
 0x26f   : > { %v407_v24 = vsel %vm265_vm0, %v396_v22, %v1586_v49  ;;  %v404_v25 = vsel %vm265_vm0, %v390_v23, %v1589_v50 }
 0x270   : > { %428 = vrot.lane.b32.xlu1 %v407_v24, %s1411_s4  ;;  %422 = vrot.lane.b32.xlu0 %v404_v25, %s1411_s4 }
 0x272   : > { %v398_v26 = vpop.permute.xlu1 %397  ;;  %v392_v27 = vpop.permute.xlu0 %391 }
 0x273   : > { %v408_v28 = vsel %vm265_vm0, %v398_v26, %v1600_v55  ;;  %v405_v29 = vsel %vm265_vm0, %v392_v27, %v1603_v56 }
 0x274   : > { %430 = vrot.lane.b32.xlu1 %v408_v28, %s1411_s4  ;;  %424 = vrot.lane.b32.xlu0 %v405_v29, %s1411_s4 }
 0x276   : > { %v400_v30 = vpop.permute.xlu1 %399  ;;  %v394_v31 = vpop.permute.xlu0 %393 }
 0x277   : > { %v409_v32 = vsel %vm265_vm0, %v400_v30, %v1614_v61  ;;  %v406_v33 = vsel %vm265_vm0, %v394_v31, %v1617_v62 }
 0x278   : > { %432 = vrot.lane.b32.xlu1 %v409_v32, %s1411_s4  ;;  %426 = vrot.lane.b32.xlu0 %v406_v33, %s1411_s4 }
 0x27a   : > { %v402_v34 = vpop.permute.xlu1 %401 }
 0x27b   : > { %v410_v35 = vsel %vm265_vm0, %v402_v34, %v1626_v3 }
 0x27c   : > { %434 = vrot.lane.b32.xlu1 %v410_v35, %s1411_s4 }
 0x2de   : > { %v421_v36 = vpop.permute.xlu0 %420 }
 0x2df   : > { %v444_v37 = vsel %vm411_vm2, %v421_v36, 0.0 }
 0x2e0   : > { %v1674_v38 = vadd.f32 %v444_v37, %v1577_v44 }
 0x2e2   : > { %v429_v39 = vpop.permute.xlu1 %428  ;;  %460 = vrot.lane.b32.xlu0 %v1674_v38, %s1409_s29  ;;  %v423_v40 = vpop.permute.xlu0 %422 }
 0x2e3   : > { %v448_v42 = vsel %vm411_vm2, %v429_v39, 0.0  ;;  %v445_v43 = vsel %vm411_vm2, %v423_v40, 0.0 }
 0x2e4   : > { %v1683_v45 = vadd.f32 %v448_v42, %v1586_v49  ;;  %v1686_v46 = vadd.f32 %v445_v43, %v1589_v50 }
 0x2e6   : > { %472 = vrot.lane.b32.xlu1 %v1683_v45, %s1409_s29  ;;  %v431_v44 = vpop.permute.xlu1 %430  ;;  %463 = vrot.lane.b32.xlu0 %v1686_v46, %s1409_s29  ;;  %v425_v47 = vpop.permute.xlu0 %424 }
 0x2e7   : > { %v449_v48 = vsel %vm411_vm2, %v431_v44, 0.0  ;;  %v446_v51 = vsel %vm411_vm2, %v425_v47, 0.0 }
 0x2e8   : > { %v1697_v49 = vadd.f32 %v449_v48, %v1600_v55  ;;  %v1700_v50 = vadd.f32 %v446_v51, %v1603_v56 }
 0x2ea   : > { %475 = vrot.lane.b32.xlu1 %v1697_v49, %s1409_s29  ;;  %v433_v52 = vpop.permute.xlu1 %432  ;;  %466 = vrot.lane.b32.xlu0 %v1700_v50, %s1409_s29  ;;  %v427_v53 = vpop.permute.xlu0 %426 }
 0x2eb   : > { %v450_v54 = vsel %vm411_vm2, %v433_v52, 0.0  ;;  %v447_v57 = vsel %vm411_vm2, %v427_v53, 0.0 }
 0x2ec   : > { %v1711_v55 = vadd.f32 %v450_v54, %v1614_v61  ;;  %v1714_v56 = vadd.f32 %v447_v57, %v1617_v62 }
 0x2ee   : > { %478 = vrot.lane.b32.xlu1 %v1711_v55, %s1409_s29  ;;  %v435_v58 = vpop.permute.xlu1 %434  ;;  %469 = vrot.lane.b32.xlu0 %v1714_v56, %s1409_s29 }
 0x2ef   : > { %v451_v59 = vsel %vm411_vm2, %v435_v58, 0.0 }
 0x2f0   : > { %v1723_v60 = vadd.f32 %v451_v59, %v1626_v3 }
 0x2f2   : > { %481 = vrot.lane.b32.xlu1 %v1723_v60, %s1409_s29 }
 0x354   : > { %v461_v61 = vpop.permute.xlu0 %460 }
 0x355   : > { %v462_v62 = vsel %vm265_vm0, %v461_v61, %v1674_v38 }
 0x356   : > { %484 = vrot.lane.b32.xlu0 %v462_v62, %s1409_s29 }
 0x358   : > { %v473_v63 = vpop.permute.xlu1 %472  ;;  %v464_v1 = vpop.permute.xlu0 %463 }
 0x359   : > { %v474_v4 = vsel %vm265_vm0, %v473_v63, %v1683_v45  ;;  %v465_v5 = vsel %vm265_vm0, %v464_v1, %v1686_v46 }
 0x35a   : > { %492 = vrot.lane.b32.xlu1 %v474_v4, %s1409_s29  ;;  %486 = vrot.lane.b32.xlu0 %v465_v5, %s1409_s29 }
 0x35c   : > { %v476_v3 = vpop.permute.xlu1 %475  ;;  %v467_v6 = vpop.permute.xlu0 %466 }
 0x35d   : > { %v477_v8 = vsel %vm265_vm0, %v476_v3, %v1697_v49  ;;  %v468_v9 = vsel %vm265_vm0, %v467_v6, %v1700_v50 }
 0x35e   : > { %494 = vrot.lane.b32.xlu1 %v477_v8, %s1409_s29  ;;  %488 = vrot.lane.b32.xlu0 %v468_v9, %s1409_s29 }
 0x360   : > { %v479_v10 = vpop.permute.xlu1 %478  ;;  %v470_v7 = vpop.permute.xlu0 %469 }
 0x361   : > { %v480_v11 = vsel %vm265_vm0, %v479_v10, %v1711_v55  ;;  %v471_v12 = vsel %vm265_vm0, %v470_v7, %v1714_v56 }
 0x362   : > { %496 = vrot.lane.b32.xlu1 %v480_v11, %s1409_s29  ;;  %490 = vrot.lane.b32.xlu0 %v471_v12, %s1409_s29 }
 0x364   : > { %v482_v13 = vpop.permute.xlu1 %481 }
 0x365   : > { %v483_v14 = vsel %vm265_vm0, %v482_v13, %v1723_v60 }
 0x366   : > { %498 = vrot.lane.b32.xlu1 %v483_v14, %s1409_s29 }
 0x3c8   : > { %v485_v15 = vpop.permute.xlu0 %484 }
 0x3c9   : > { %v500_v16 = vsel %vm265_vm0, %v485_v15, %v1674_v38 }
 0x3ca   : > { %517 = vrot.lane.b32.xlu0 %v500_v16, %s1412_s5 }
 0x3cc   : > { %v493_v17 = vpop.permute.xlu1 %492  ;;  %v487_v18 = vpop.permute.xlu0 %486 }
 0x3cd   : > { %v504_v19 = vsel %vm265_vm0, %v493_v17, %v1683_v45  ;;  %v501_v20 = vsel %vm265_vm0, %v487_v18, %v1686_v46 }
 0x3ce   : > { %525 = vrot.lane.b32.xlu1 %v504_v19, %s1412_s5  ;;  %519 = vrot.lane.b32.xlu0 %v501_v20, %s1412_s5 }
 0x3d0   : > { %v495_v21 = vpop.permute.xlu1 %494  ;;  %v489_v22 = vpop.permute.xlu0 %488 }
 0x3d1   : > { %v505_v23 = vsel %vm265_vm0, %v495_v21, %v1697_v49  ;;  %v502_v24 = vsel %vm265_vm0, %v489_v22, %v1700_v50 }
 0x3d2   : > { %527 = vrot.lane.b32.xlu1 %v505_v23, %s1412_s5  ;;  %521 = vrot.lane.b32.xlu0 %v502_v24, %s1412_s5 }
 0x3d4   : > { %v497_v25 = vpop.permute.xlu1 %496  ;;  %v491_v26 = vpop.permute.xlu0 %490 }
 0x3d5   : > { %v506_v27 = vsel %vm265_vm0, %v497_v25, %v1711_v55  ;;  %v503_v28 = vsel %vm265_vm0, %v491_v26, %v1714_v56 }
 0x3d6   : > { %529 = vrot.lane.b32.xlu1 %v506_v27, %s1412_s5  ;;  %523 = vrot.lane.b32.xlu0 %v503_v28, %s1412_s5 }
 0x3d8   : > { %v499_v29 = vpop.permute.xlu1 %498 }
 0x3d9   : > { %v507_v30 = vsel %vm265_vm0, %v499_v29, %v1723_v60 }
 0x3da   : > { %531 = vrot.lane.b32.xlu1 %v507_v30, %s1412_s5 }
 0x43c   : > { %v518_v31 = vpop.permute.xlu0 %517 }
 0x43d   : > { %v541_v32 = vsel %vm508_vm3, %v518_v31, 0.0 }
 0x43e   : > { %v1771_v33 = vadd.f32 %v541_v32, %v1674_v38 }
 0x440   : > { %v526_v34 = vpop.permute.xlu1 %525  ;;  %557 = vrot.lane.b32.xlu0 %v1771_v33, %s1409_s29  ;;  %v520_v35 = vpop.permute.xlu0 %519 }
 0x441   : > { %v545_v36 = vsel %vm508_vm3, %v526_v34, 0.0  ;;  %v542_v37 = vsel %vm508_vm3, %v520_v35, 0.0 }
 0x442   : > { %v1780_v39 = vadd.f32 %v545_v36, %v1683_v45  ;;  %v1783_v40 = vadd.f32 %v542_v37, %v1686_v46 }
 0x444   : > { %569 = vrot.lane.b32.xlu1 %v1780_v39, %s1409_s29  ;;  %v528_v38 = vpop.permute.xlu1 %527  ;;  %560 = vrot.lane.b32.xlu0 %v1783_v40, %s1409_s29  ;;  %v522_v42 = vpop.permute.xlu0 %521 }
 0x445   : > { %v546_v43 = vsel %vm508_vm3, %v528_v38, 0.0  ;;  %v543_v44 = vsel %vm508_vm3, %v522_v42, 0.0 }
 0x446   : > { %v1794_v45 = vadd.f32 %v546_v43, %v1697_v49  ;;  %v1797_v46 = vadd.f32 %v543_v44, %v1700_v50 }
 0x448   : > { %572 = vrot.lane.b32.xlu1 %v1794_v45, %s1409_s29  ;;  %v530_v47 = vpop.permute.xlu1 %529  ;;  %563 = vrot.lane.b32.xlu0 %v1797_v46, %s1409_s29  ;;  %v524_v48 = vpop.permute.xlu0 %523 }
 0x449   : > { %v547_v51 = vsel %vm508_vm3, %v530_v47, 0.0  ;;  %v544_v52 = vsel %vm508_vm3, %v524_v48, 0.0 }
 0x44a   : > { %v1808_v49 = vadd.f32 %v547_v51, %v1711_v55  ;;  %v1811_v50 = vadd.f32 %v544_v52, %v1714_v56 }
 0x44c   : > { %575 = vrot.lane.b32.xlu1 %v1808_v49, %s1409_s29  ;;  %v532_v53 = vpop.permute.xlu1 %531  ;;  %566 = vrot.lane.b32.xlu0 %v1811_v50, %s1409_s29 }
 0x44d   : > { %v548_v54 = vsel %vm508_vm3, %v532_v53, 0.0 }
 0x44e   : > { %v1820_v57 = vadd.f32 %v548_v54, %v1723_v60 }
 0x450   : > { %578 = vrot.lane.b32.xlu1 %v1820_v57, %s1409_s29 }
 0x4b2   : > { %v558_v55 = vpop.permute.xlu0 %557 }
 0x4b3   : > { %v559_v56 = vsel %vm265_vm0, %v558_v55, %v1771_v33 }
 0x4b4   : > { %581 = vrot.lane.b32.xlu0 %v559_v56, %s1409_s29 }
 0x4b6   : > { %v570_v58 = vpop.permute.xlu1 %569  ;;  %v561_v59 = vpop.permute.xlu0 %560 }
 0x4b7   : > { %v571_v61 = vsel %vm265_vm0, %v570_v58, %v1780_v39  ;;  %v562_v62 = vsel %vm265_vm0, %v561_v59, %v1783_v40 }
 0x4b8   : > { %589 = vrot.lane.b32.xlu1 %v571_v61, %s1409_s29  ;;  %583 = vrot.lane.b32.xlu0 %v562_v62, %s1409_s29 }
 0x4ba   : > { %v573_v60 = vpop.permute.xlu1 %572  ;;  %v564_v63 = vpop.permute.xlu0 %563 }
 0x4bb   : > { %v574_v1 = vsel %vm265_vm0, %v573_v60, %v1794_v45  ;;  %v565_v4 = vsel %vm265_vm0, %v564_v63, %v1797_v46 }
 0x4bc   : > { %591 = vrot.lane.b32.xlu1 %v574_v1, %s1409_s29  ;;  %585 = vrot.lane.b32.xlu0 %v565_v4, %s1409_s29 }
 0x4be   : > { %v576_v5 = vpop.permute.xlu1 %575  ;;  %v567_v3 = vpop.permute.xlu0 %566 }
 0x4bf   : > { %v577_v6 = vsel %vm265_vm0, %v576_v5, %v1808_v49  ;;  %v568_v8 = vsel %vm265_vm0, %v567_v3, %v1811_v50 }
 0x4c0   : > { %593 = vrot.lane.b32.xlu1 %v577_v6, %s1409_s29  ;;  %587 = vrot.lane.b32.xlu0 %v568_v8, %s1409_s29 }
 0x4c2   : > { %v579_v9 = vpop.permute.xlu1 %578 }
 0x4c3   : > { %v580_v10 = vsel %vm265_vm0, %v579_v9, %v1820_v57 }
 0x4c4   : > { %595 = vrot.lane.b32.xlu1 %v580_v10, %s1409_s29 }
 0x526   : > { %v582_v7 = vpop.permute.xlu0 %581 }
 0x527   : > { %v597_v11 = vsel %vm265_vm0, %v582_v7, %v1771_v33 }
 0x528   : > { %614 = vrot.lane.b32.xlu0 %v597_v11, %s1413_s6 }
 0x52a   : > { %v590_v12 = vpop.permute.xlu1 %589  ;;  %v584_v13 = vpop.permute.xlu0 %583 }
 0x52b   : > { %v601_v14 = vsel %vm265_vm0, %v590_v12, %v1780_v39  ;;  %v598_v15 = vsel %vm265_vm0, %v584_v13, %v1783_v40 }
 0x52c   : > { %622 = vrot.lane.b32.xlu1 %v601_v14, %s1413_s6  ;;  %616 = vrot.lane.b32.xlu0 %v598_v15, %s1413_s6 }
 0x52e   : > { %v592_v16 = vpop.permute.xlu1 %591  ;;  %v586_v17 = vpop.permute.xlu0 %585 }
 0x52f   : > { %v602_v18 = vsel %vm265_vm0, %v592_v16, %v1794_v45  ;;  %v599_v19 = vsel %vm265_vm0, %v586_v17, %v1797_v46 }
 0x530   : > { %624 = vrot.lane.b32.xlu1 %v602_v18, %s1413_s6  ;;  %618 = vrot.lane.b32.xlu0 %v599_v19, %s1413_s6 }
 0x532   : > { %v594_v20 = vpop.permute.xlu1 %593  ;;  %v588_v21 = vpop.permute.xlu0 %587 }
 0x533   : > { %v603_v22 = vsel %vm265_vm0, %v594_v20, %v1808_v49  ;;  %v600_v23 = vsel %vm265_vm0, %v588_v21, %v1811_v50 }
 0x534   : > { %626 = vrot.lane.b32.xlu1 %v603_v22, %s1413_s6  ;;  %620 = vrot.lane.b32.xlu0 %v600_v23, %s1413_s6 }
 0x536   : > { %v596_v24 = vpop.permute.xlu1 %595 }
 0x537   : > { %v604_v25 = vsel %vm265_vm0, %v596_v24, %v1820_v57 }
 0x538   : > { %628 = vrot.lane.b32.xlu1 %v604_v25, %s1413_s6 }
 0x59a   : > { %v615_v26 = vpop.permute.xlu0 %614 }
 0x59b   : > { %v638_v27 = vsel %vm605_vm4, %v615_v26, 0.0 }
 0x59c   : > { %v1868_v28 = vadd.f32 %v638_v27, %v1771_v33 }
 0x59e   : > { %v623_v29 = vpop.permute.xlu1 %622  ;;  %654 = vrot.lane.b32.xlu0 %v1868_v28, %s1409_s29  ;;  %v617_v30 = vpop.permute.xlu0 %616 }
 0x59f   : > { %v642_v31 = vsel %vm605_vm4, %v623_v29, 0.0  ;;  %v639_v32 = vsel %vm605_vm4, %v617_v30, 0.0 }
 0x5a0   : > { %v1877_v34 = vadd.f32 %v642_v31, %v1780_v39  ;;  %v1880_v35 = vadd.f32 %v639_v32, %v1783_v40 }
 0x5a2   : > { %666 = vrot.lane.b32.xlu1 %v1877_v34, %s1409_s29  ;;  %v625_v33 = vpop.permute.xlu1 %624  ;;  %657 = vrot.lane.b32.xlu0 %v1880_v35, %s1409_s29  ;;  %v619_v36 = vpop.permute.xlu0 %618 }
 0x5a3   : > { %v643_v37 = vsel %vm605_vm4, %v625_v33, 0.0  ;;  %v640_v38 = vsel %vm605_vm4, %v619_v36, 0.0 }
 0x5a4   : > { %v1891_v39 = vadd.f32 %v643_v37, %v1794_v45  ;;  %v1894_v40 = vadd.f32 %v640_v38, %v1797_v46 }
 0x5a6   : > { %669 = vrot.lane.b32.xlu1 %v1891_v39, %s1409_s29  ;;  %v627_v42 = vpop.permute.xlu1 %626  ;;  %660 = vrot.lane.b32.xlu0 %v1894_v40, %s1409_s29  ;;  %v621_v43 = vpop.permute.xlu0 %620 }
 0x5a7   : > { %v644_v44 = vsel %vm605_vm4, %v627_v42, 0.0  ;;  %v641_v47 = vsel %vm605_vm4, %v621_v43, 0.0 }
 0x5a8   : > { %v1905_v45 = vadd.f32 %v644_v44, %v1808_v49  ;;  %v1908_v46 = vadd.f32 %v641_v47, %v1811_v50 }
 0x5aa   : > { %672 = vrot.lane.b32.xlu1 %v1905_v45, %s1409_s29  ;;  %v629_v48 = vpop.permute.xlu1 %628  ;;  %663 = vrot.lane.b32.xlu0 %v1908_v46, %s1409_s29 }
 0x5ab   : > { %v645_v51 = vsel %vm605_vm4, %v629_v48, 0.0 }
 0x5ac   : > { %v1917_v52 = vadd.f32 %v645_v51, %v1820_v57 }
 0x5ae   : > { %675 = vrot.lane.b32.xlu1 %v1917_v52, %s1409_s29 }
 0x610   : > { %v655_v49 = vpop.permute.xlu0 %654 }
 0x611   : > { %v656_v50 = vsel %vm265_vm0, %v655_v49, %v1868_v28 }
 0x612   : > { %678 = vrot.lane.b32.xlu0 %v656_v50, %s1409_s29 }
 0x614   : > { %v667_v53 = vpop.permute.xlu1 %666  ;;  %v658_v54 = vpop.permute.xlu0 %657 }
 0x615   : > { %v668_v55 = vsel %vm265_vm0, %v667_v53, %v1877_v34  ;;  %v659_v56 = vsel %vm265_vm0, %v658_v54, %v1880_v35 }
 0x616   : > { %686 = vrot.lane.b32.xlu1 %v668_v55, %s1409_s29  ;;  %680 = vrot.lane.b32.xlu0 %v659_v56, %s1409_s29 }
 0x618   : > { %v670_v57 = vpop.permute.xlu1 %669  ;;  %v661_v58 = vpop.permute.xlu0 %660 }
 0x619   : > { %v671_v59 = vsel %vm265_vm0, %v670_v57, %v1891_v39  ;;  %v662_v61 = vsel %vm265_vm0, %v661_v58, %v1894_v40 }
 0x61a   : > { %688 = vrot.lane.b32.xlu1 %v671_v59, %s1409_s29  ;;  %682 = vrot.lane.b32.xlu0 %v662_v61, %s1409_s29 }
 0x61c   : > { %v673_v62 = vpop.permute.xlu1 %672  ;;  %v664_v60 = vpop.permute.xlu0 %663 }
 0x61d   : > { %v674_v63 = vsel %vm265_vm0, %v673_v62, %v1905_v45  ;;  %v665_v1 = vsel %vm265_vm0, %v664_v60, %v1908_v46  ;;  %v1415_v60 = vmov 1.0|1.0  }
 0x61e   : > { %690 = vrot.lane.b32.xlu1 %v674_v63, %s1409_s29  ;;  %684 = vrot.lane.b32.xlu0 %v665_v1, %s1409_s29 }
 0x61f   : > { %1278 = vmatprep.subr.bf16.mxu0 %v1415_v60  ;;  %1286 = vmatprep.subr.bf16.mxu1 %v1415_v60 }
 0x620   : > { %v676_v4 = vpop.permute.xlu1 %675  ;;  %1279 = vmatpush3.bf16.msra.mxu0 %v1415_v60  ;;  %1290 = vmatpush3.bf16.msra.mxu1 %v1415_v60 }
 0x621   : > { %v677_v5 = vsel %vm265_vm0, %v676_v4, %v1917_v52  ;;  %1280 = vmatprep.subr.bf16.mxu0 %v1415_v60  ;;  %1287 = vmatprep.subr.bf16.mxu1 %v1415_v60 }
 0x622   : > { %692 = vrot.lane.b32.xlu1 %v677_v5, %s1409_s29 }
 0x624   : > { %1281 = vmatpush3.bf16.msra.mxu0 %v1415_v60  ;;  %1291 = vmatpush3.bf16.msra.mxu1 %v1415_v60 }
 0x625   : > { %1282 = vmatprep.subr.bf16.mxu0 %v1415_v60  ;;  %1288 = vmatprep.subr.bf16.mxu1 %v1415_v60 }
 0x628   : > { %1283 = vmatpush3.bf16.msra.mxu0 %v1415_v60  ;;  %1292 = vmatpush3.bf16.msra.mxu1 %v1415_v60 }
 0x629   : > { %1284 = vmatprep.subr.bf16.mxu0 %v1415_v60  ;;  %1289 = vmatprep.subr.bf16.mxu1 %v1415_v60 }
 0x62c   : > { %1285 = vmatpush3.bf16.msra.mxu0 %v1415_v60  ;;  %1293 = vmatpush3.bf16.msra.mxu1 %v1415_v60 }
 0x684   : > { %v679_v3 = vpop.permute.xlu0 %678 }
 0x685   : > { %v694_v6 = vsel %vm265_vm0, %v679_v3, %v1868_v28 }
 0x686   : > { %711 = vrot.lane.b32.xlu0 %v694_v6, %s1414_s7 }
 0x688   : > { %v687_v8 = vpop.permute.xlu1 %686  ;;  %v681_v9 = vpop.permute.xlu0 %680 }
 0x689   : > { %v698_v10 = vsel %vm265_vm0, %v687_v8, %v1877_v34  ;;  %v695_v7 = vsel %vm265_vm0, %v681_v9, %v1880_v35 }
 0x68a   : > { %719 = vrot.lane.b32.xlu1 %v698_v10, %s1414_s7  ;;  %713 = vrot.lane.b32.xlu0 %v695_v7, %s1414_s7 }
 0x68c   : > { %v689_v11 = vpop.permute.xlu1 %688  ;;  %v683_v12 = vpop.permute.xlu0 %682 }
 0x68d   : > { %v699_v13 = vsel %vm265_vm0, %v689_v11, %v1891_v39  ;;  %v696_v14 = vsel %vm265_vm0, %v683_v12, %v1894_v40 }
 0x68e   : > { %721 = vrot.lane.b32.xlu1 %v699_v13, %s1414_s7  ;;  %715 = vrot.lane.b32.xlu0 %v696_v14, %s1414_s7 }
 0x690   : > { %v691_v15 = vpop.permute.xlu1 %690  ;;  %v685_v16 = vpop.permute.xlu0 %684 }
 0x691   : > { %v700_v17 = vsel %vm265_vm0, %v691_v15, %v1905_v45  ;;  %v697_v18 = vsel %vm265_vm0, %v685_v16, %v1908_v46 }
 0x692   : > { %723 = vrot.lane.b32.xlu1 %v700_v17, %s1414_s7  ;;  %717 = vrot.lane.b32.xlu0 %v697_v18, %s1414_s7  ;;  %v2059_v17 = vstv %s262_s9 }
 0x693   : > { %1339 = vrcp.f32 %v2059_v17 }
 0x694   : > { %v693_v19 = vpop.permute.xlu1 %692 }
 0x695   : > { %v701_v20 = vsel %vm265_vm0, %v693_v19, %v1917_v52 }
 0x696   : > { %725 = vrot.lane.b32.xlu1 %v701_v20, %s1414_s7  ;;  %s2144_s7 = scalar_lea.vmem %s2180_s3, %s1232_s25 }
 0x69d   : > { %v1340_v18 = vpop.eup %1339 }
 0x69e   : > { %1294 = vpush %v1340_v18 }
 0x6cf   : > { %s1295_s4 = spop %1294 }
 0x6f8   : > { %v712_v21 = vpop.permute.xlu0 %711 }
 0x6f9   : > { %v735_v22 = vsel %vm702_vm5, %v712_v21, 0.0 }
 0x6fa   : > { %v1965_v23 = vadd.f32 %v735_v22, %v1868_v28 }
 0x6fc   : > { %v720_v24 = vpop.permute.xlu1 %719  ;;  %751 = vrot.lane.b32.xlu0 %v1965_v23, %s1409_s29  ;;  %v714_v25 = vpop.permute.xlu0 %713 }
 0x6fd   : > { %v739_v26 = vsel %vm702_vm5, %v720_v24, 0.0  ;;  %v736_v27 = vsel %vm702_vm5, %v714_v25, 0.0 }
 0x6fe   : > { %v1974_v29 = vadd.f32 %v739_v26, %v1877_v34  ;;  %v1977_v30 = vadd.f32 %v736_v27, %v1880_v35 }
 0x700   : > { %763 = vrot.lane.b32.xlu1 %v1974_v29, %s1409_s29  ;;  %v722_v28 = vpop.permute.xlu1 %721  ;;  %754 = vrot.lane.b32.xlu0 %v1977_v30, %s1409_s29  ;;  %v716_v31 = vpop.permute.xlu0 %715 }
 0x701   : > { %v740_v32 = vsel %vm702_vm5, %v722_v28, 0.0  ;;  %v737_v33 = vsel %vm702_vm5, %v716_v31, 0.0 }
 0x702   : > { %v1988_v34 = vadd.f32 %v740_v32, %v1891_v39  ;;  %v1991_v35 = vadd.f32 %v737_v33, %v1894_v40 }
 0x704   : > { %766 = vrot.lane.b32.xlu1 %v1988_v34, %s1409_s29  ;;  %v724_v36 = vpop.permute.xlu1 %723  ;;  %757 = vrot.lane.b32.xlu0 %v1991_v35, %s1409_s29  ;;  %v718_v37 = vpop.permute.xlu0 %717 }
 0x705   : > { %v741_v38 = vsel %vm702_vm5, %v724_v36, 0.0  ;;  %v738_v42 = vsel %vm702_vm5, %v718_v37, 0.0 }
 0x706   : > { %v2002_v39 = vadd.f32 %v741_v38, %v1905_v45  ;;  %v2005_v40 = vadd.f32 %v738_v42, %v1908_v46 }
 0x708   : > { %769 = vrot.lane.b32.xlu1 %v2002_v39, %s1409_s29  ;;  %v726_v43 = vpop.permute.xlu1 %725  ;;  %760 = vrot.lane.b32.xlu0 %v2005_v40, %s1409_s29 }
 0x709   : > { %v742_v44 = vsel %vm702_vm5, %v726_v43, 0.0 }
 0x70a   : > { %v2014_v47 = vadd.f32 %v742_v44, %v1917_v52 }
 0x70c   : > { %772 = vrot.lane.b32.xlu1 %v2014_v47, %s1409_s29 }
 0x76e   : > { %v752_v45 = vpop.permute.xlu0 %751 }
 0x76f   : > { %v753_v46 = vsel %vm265_vm0, %v752_v45, %v1965_v23  ;;  %v254_v45 = vld [vmem:[%s2178_s1] sm:$0xff] }
 0x770   : > { %775 = vrot.lane.b32.xlu0 %v753_v46, %s1409_s29  ;;  %v1358_v46 = vld [vmem:[%s1489_s28] sm:$0xff] }
 0x772   : > { %v764_v48 = vpop.permute.xlu1 %763  ;;  %v755_v51 = vpop.permute.xlu0 %754 }
 0x773   : > { %v765_v49 = vsel %vm265_vm0, %v764_v48, %v1974_v29  ;;  %v756_v50 = vsel %vm265_vm0, %v755_v51, %v1977_v30 }
 0x774   : > { %783 = vrot.lane.b32.xlu1 %v765_v49, %s1409_s29  ;;  %777 = vrot.lane.b32.xlu0 %v756_v50, %s1409_s29  ;;  %v1359_v49 = vld [vmem:[%s1489_s28 + $0x28] sm:$0xff] }
 0x776   : > { %v767_v52 = vpop.permute.xlu1 %766  ;;  %v758_v53 = vpop.permute.xlu0 %757 }
 0x777   : > { %v768_v54 = vsel %vm265_vm0, %v767_v52, %v1988_v34  ;;  %v759_v55 = vsel %vm265_vm0, %v758_v53, %v1991_v35  ;;  %v1360_v52 = vld [vmem:[%s1489_s28 + $0x10] sm:$0xff] }
 0x778   : > { %785 = vrot.lane.b32.xlu1 %v768_v54, %s1409_s29  ;;  %779 = vrot.lane.b32.xlu0 %v759_v55, %s1409_s29 }
 0x77a   : > { %v770_v56 = vpop.permute.xlu1 %769  ;;  %v761_v57 = vpop.permute.xlu0 %760 }
 0x77b   : > { %v771_v58 = vsel %vm265_vm0, %v770_v56, %v2002_v39  ;;  %v762_v59 = vsel %vm265_vm0, %v761_v57, %v2005_v40 }
 0x77c   : > { %787 = vrot.lane.b32.xlu1 %v771_v58, %s1409_s29  ;;  %781 = vrot.lane.b32.xlu0 %v762_v59, %s1409_s29  ;;  %v255_v58 = vld [vmem:[%s2178_s1 + $0x8] sm:$0xff] }
 0x77e   : > { %v773_v61 = vpop.permute.xlu1 %772 }
 0x77f   : > { %v774_v62 = vsel %vm265_vm0, %v773_v61, %v2014_v47 }
 0x780   : > { %789 = vrot.lane.b32.xlu1 %v774_v62, %s1409_s29 }
 0x7e2   : > { %v776_v63 = vpop.permute.xlu0 %775 }
 0x7e3   : > { %v791_v1 = vsel %vm265_vm0, %v776_v63, %v1965_v23  ;;  %v258_v63 = vld [vmem:[%s2178_s1 + $0x20] sm:$0xff] }
 0x7e4   : > { %808 = vrot.lane.b32.xlu0 %v791_v1, %s1416_s8 }
 0x7e6   : > { %v784_v4 = vpop.permute.xlu1 %783  ;;  %v778_v5 = vpop.permute.xlu0 %777 }
 0x7e7   : > { %v795_v3 = vsel %vm265_vm0, %v784_v4, %v1974_v29  ;;  %v792_v6 = vsel %vm265_vm0, %v778_v5, %v1977_v30  ;;  %v1361_v4 = vld [vmem:[%s1489_s28 + $0x20] sm:$0xff] }
 0x7e8   : > { %816 = vrot.lane.b32.xlu1 %v795_v3, %s1416_s8  ;;  %810 = vrot.lane.b32.xlu0 %v792_v6, %s1416_s8 }
 0x7ea   : > { %v786_v8 = vpop.permute.xlu1 %785  ;;  %v780_v9 = vpop.permute.xlu0 %779 }
 0x7eb   : > { %v796_v10 = vsel %vm265_vm0, %v786_v8, %v1988_v34  ;;  %v793_v7 = vsel %vm265_vm0, %v780_v9, %v1991_v35  ;;  %v1362_v8 = vld [vmem:[%s1489_s28 + $0x30] sm:$0xff] }
 0x7ec   : > { %818 = vrot.lane.b32.xlu1 %v796_v10, %s1416_s8  ;;  %812 = vrot.lane.b32.xlu0 %v793_v7, %s1416_s8 }
 0x7ee   : > { %v788_v11 = vpop.permute.xlu1 %787  ;;  %v782_v12 = vpop.permute.xlu0 %781 }
 0x7ef   : > { %v797_v13 = vsel %vm265_vm0, %v788_v11, %v2002_v39  ;;  %v794_v14 = vsel %vm265_vm0, %v782_v12, %v2005_v40  ;;  %v1363_v11 = vld [vmem:[%s1489_s28 + $0x18] sm:$0xff] }
 0x7f0   : > { %820 = vrot.lane.b32.xlu1 %v797_v13, %s1416_s8  ;;  %814 = vrot.lane.b32.xlu0 %v794_v14, %s1416_s8  ;;  %v259_v14 = vld [vmem:[%s2178_s1 + $0x28] sm:$0xff] }
 0x7f2   : > { %v790_v15 = vpop.permute.xlu1 %789 }
 0x7f3   : > { %v798_v16 = vsel %vm265_vm0, %v790_v15, %v2014_v47 }
 0x7f4   : > { %822 = vrot.lane.b32.xlu1 %v798_v16, %s1416_s8 }
 0x856   : > { %v809_v19 = vpop.permute.xlu0 %808 }
 0x857   : > { %v832_v20 = vsel %vm799_vm6, %v809_v19, 0.0 }
 0x858   : > { %v840_v21 = vadd.f32 %v832_v20, %v1965_v23  ;;  %v1357_v23 = vld [vmem:[%s1489_s28 + $0x8] sm:$0xff] }
 0x85a   : > { %v848_v22 = vsub.f32 %v840_v21, %v1492_v0  ;;  %v817_v24 = vpop.permute.xlu1 %816  ;;  %v811_v25 = vpop.permute.xlu0 %810  ;;  %v1364_v21 = vld [vmem:[%s1489_s28 + $0x38] sm:$0xff] }
 0x85b   : > { %v836_v26 = vsel %vm799_vm6, %v817_v24, 0.0  ;;  %v833_v27 = vsel %vm799_vm6, %v811_v25, 0.0 }
 0x85c   : > { %v857_v28 = vsub.f32 %v2059_v17, %v848_v22  ;;  %v844_v31 = vadd.f32 %v836_v26, %v1974_v29  ;;  %v841_v32 = vadd.f32 %v833_v27, %v1977_v30  ;;  %v260_v27 = vld [vmem:[%s2178_s1 + $0x30] sm:$0xff] }
 0x85e   : > { %v852_v33 = vsub.f32 %v844_v31, %v1502_v2  ;;  %v849_v0 = vsub.f32 %v841_v32, %v1357_v23  ;;  %v819_v36 = vpop.permute.xlu1 %818  ;;  %v813_v37 = vpop.permute.xlu0 %812  ;;  %v865_v38 = vmax.f32 %v857_v28, 0.0 }
 0x85f   : > { %v837_v42 = vsel %vm799_vm6, %v819_v36, 0.0  ;;  %v834_v43 = vsel %vm799_vm6, %v813_v37, 0.0  ;;  %v261_v36 = vld [vmem:[%s2178_s1 + $0x38] sm:$0xff] }
 0x860   : > { %v861_v44 = vsub.f32 %v2059_v17, %v852_v33  ;;  %v858_v29 = vsub.f32 %v2059_v17, %v849_v0  ;;  %v845_v30 = vadd.f32 %v837_v42, %v1988_v34  ;;  %v842_v2 = vadd.f32 %v834_v43, %v1991_v35 }
 0x861   : > { %v873_v48 = vmin.f32 %v865_v38, %v1358_v46  ;;  %v1022_v38 = vstv %s1295_s4 }
 0x862   : > { %v866_v51 = vmax.f32 %v858_v29, 0.0  ;;  %v853_v50 = vsub.f32 %v845_v30, %v1359_v49  ;;  %v850_v53 = vsub.f32 %v842_v2, %v1360_v52  ;;  %v821_v54 = vpop.permute.xlu1 %820  ;;  %v815_v55 = vpop.permute.xlu0 %814  ;;  %v869_v56 = vmax.f32 %v861_v44, 0.0 }
 0x863   : > { %v838_v34 = vsel %vm799_vm6, %v821_v54, 0.0  ;;  %v835_v35 = vsel %vm799_vm6, %v815_v55, 0.0  ;;  %v881_v57 = vmul.f32 %v873_v48, %v254_v45 }
 0x864   : > { %v874_v59 = vmin.f32 %v866_v51, %v1357_v23  ;;  %v862_v61 = vsub.f32 %v2059_v17, %v853_v50  ;;  %v859_v62 = vsub.f32 %v2059_v17, %v850_v53  ;;  %v846_v60 = vadd.f32 %v838_v34, %v2002_v39 }
 0x865   : > { %v843_v1 = vadd.f32 %v835_v35, %v2005_v40  ;;  %1266 = vmatprep.mubr.msk.f32.mxu0 %vm889_vm7, %v881_v57  ;;  %v877_v5 = vmin.f32 %v869_v56, %v1361_v4  ;;  %v256_v40 = vld [vmem:[%s2178_s1 + $0x10] sm:$0xff] }
 0x866   : > { %v870_v3 = vmax.f32 %v862_v61, 0.0  ;;  %v867_v6 = vmax.f32 %v859_v62, 0.0  ;;  %v854_v9 = vsub.f32 %v846_v60, %v1362_v8  ;;  %v823_v10 = vpop.permute.xlu1 %822  ;;  %v882_v7 = vmul.f32 %v874_v59, %v255_v58 }
 0x867   : > { %v851_v12 = vsub.f32 %v843_v1, %v1363_v11  ;;  %v839_v39 = vsel %vm799_vm6, %v823_v10, 0.0  ;;  %v885_v13 = vmul.f32 %v877_v5, %v258_v63 }
 0x868   : > { %v878_v15 = vmin.f32 %v870_v3, %v1359_v49  ;;  %v875_v16 = vmin.f32 %v867_v6, %v1360_v52  ;;  %v863_v18 = vsub.f32 %v2059_v17, %v854_v9  ;;  %v847_v19 = vadd.f32 %v839_v39, %v2014_v47  ;;  %1267 = vmatmul.mubr.msk.f32.vlgmr.msra.gmra.mrb[0].mxu0 %vm889_vm7, %v882_v7  ;;  %v257_v47 = vld [vmem:[%s2178_s1 + $0x18] sm:$0xff] }
 0x869   : > { %v860_v41 = vsub.f32 %v2059_v17, %v851_v12  ;;  %1272 = vmatprep.mubr.msk.f32.mxu1 %vm889_vm7, %v885_v13 }
 0x86a   : > { %v871_v20 = vmax.f32 %v863_v18, 0.0  ;;  %v855_v22 = vsub.f32 %v847_v19, %v1364_v21  ;;  %v883_v24 = vmul.f32 %v875_v16, %v256_v40  ;;  %v886_v25 = vmul.f32 %v878_v15, %v259_v14 }
 0x86b   : > { %v868_v26 = vmax.f32 %v860_v41, 0.0 }
 0x86c   : > { %v879_v28 = vmin.f32 %v871_v20, %v1362_v8  ;;  %v864_v31 = vsub.f32 %v2059_v17, %v855_v22  ;;  %1269 = vmatprep.mubr.msk.f32.mxu0 %vm889_vm7, %v883_v24  ;;  %1273 = vmatmul.mubr.msk.f32.vlgmr.msra.gmra.mrb[0].mxu1 %vm889_vm7, %v886_v25 }
 0x86d   : > { %v876_v32 = vmin.f32 %v868_v26, %v1363_v11 }
 0x86e   : > { %v872_v33 = vmax.f32 %v864_v31, 0.0  ;;  %v887_v23 = vmul.f32 %v879_v28, %v260_v27 }
 0x86f   : > { %v884_v0 = vmul.f32 %v876_v32, %v257_v47 }
 0x870   : > { %v880_v37 = vmin.f32 %v872_v33, %v1364_v21  ;;  %1275 = vmatprep.mubr.msk.f32.mxu1 %vm889_vm7, %v887_v23 }
 0x871   : > { %1270 = vmatmul.mubr.msk.f32.gmra.mrb[2].mxu0 %vm889_vm7, %v884_v0 }
 0x872   : > { %v888_v17 = vmul.f32 %v880_v37, %v261_v36 }
 0x874   : > { %1276 = vmatmul.mubr.msk.f32.gmra.mrb[2].mxu1 %vm889_vm7, %v888_v17 }
 0x93b   : > { %v1268_v42 = vpop.f32.mrb[0].mxu0 }
 0x93c   : > { %v1024_v43 = vmul.f32 %v1268_v42, %v1022_v38  ;;  %v980_v44 = vpop.f32.mrb[1].mxu0 }
 0x93d   : > { %v1023_v29 = vmul.f32 %v1022_v38, %v980_v44 }
 0x93e   : > { %1341 = vrsqrt.f32 %v1024_v43  ;;  %vm1040_vm9 = vcmp.eq.f32.partialorder %v1024_v43, inf  ;;  %vm1042_vm10 = vcmp.eq.f32.partialorder %v1024_v43, 0.0  ;;  %v1043_v57 = vand.u32 2147483648, %v1024_v43 }
 0x93f   : > { %1343 = vrsqrt.f32 %v1023_v29  ;;  %v1274_v30 = vpop.f32.mrb[0].mxu1  ;;  %vm1033_vm11 = vcmp.eq.f32.partialorder %v1023_v29, inf  ;;  %v1036_v61 = vand.u32 2147483648, %v1023_v29  ;;  %vm1035_vm12 = vcmp.eq.f32.partialorder %v1023_v29, 0.0 }
 0x940   : > { %v1028_v2 = vmul.f32 %v1274_v30, %v1022_v38  ;;  %v1000_v45 = vpop.f32.mrb[1].mxu1 }
 0x941   : > { %v1027_v46 = vmul.f32 %v1022_v38, %v1000_v45 }
 0x942   : > { %1345 = vrsqrt.f32 %v1028_v2  ;;  %vm1068_vm13 = vcmp.eq.f32.partialorder %v1028_v2, inf  ;;  %v1071_v3 = vand.u32 2147483648, %v1028_v2  ;;  %vm1070_vm14 = vcmp.eq.f32.partialorder %v1028_v2, 0.0 }
 0x943   : > { %1347 = vrsqrt.f32 %v1027_v46  ;;  %vm1061_vm15 = vcmp.eq.f32.partialorder %v1027_v46, inf  ;;  %v1064_v9 = vand.u32 2147483648, %v1027_v46  ;;  %vm1063_vm0 = vcmp.eq.f32.partialorder %v1027_v46, 0.0 }
 0x944   : > { %v1271_v48 = vpop.f32.mrb[2].mxu0 }
 0x945   : > { %v1026_v51 = vmul.f32 %v1271_v48, %v1022_v38  ;;  %v990_v49 = vpop.f32.mrb[3].mxu0 }
 0x946   : > { %v1025_v50 = vmul.f32 %v1022_v38, %v990_v49 }
 0x947   : > { %1349 = vrsqrt.f32 %v1026_v51  ;;  %v1277_v52 = vpop.f32.mrb[2].mxu1  ;;  %vm1054_vm1 = vcmp.eq.f32.partialorder %v1026_v51, inf  ;;  %v1057_v40 = vand.u32 2147483648, %v1026_v51  ;;  %vm1056_vm2 = vcmp.eq.f32.partialorder %v1026_v51, 0.0 }
 0x948   : > { %v1342_v53 = vpop.eup %1341  ;;  %1351 = vrsqrt.f32 %v1025_v50  ;;  %v1010_v54 = vpop.f32.mrb[3].mxu1  ;;  %v1030_v34 = vmul.f32 %v1277_v52, %v1022_v38  ;;  %vm1047_vm3 = vcmp.eq.f32.partialorder %v1025_v50, inf  ;;  %v1050_v16 = vand.u32 2147483648, %v1025_v50 }
 0x949   : > { %v1344_v55 = vpop.eup %1343  ;;  %v1039_v56 = vmul.f32 %v1342_v53, %v1024_v43  ;;  %v2137_v35 = vmul.f32 %v1022_v38, %v1010_v54  ;;  %vm1049_vm4 = vcmp.eq.f32.partialorder %v1025_v50, 0.0 }
 0x94a   : > { %v1032_v58 = vmul.f32 %v1344_v55, %v1023_v29  ;;  %1353 = vrsqrt.f32 %v1030_v34  ;;  %vm1082_vm5 = vcmp.eq.f32.partialorder %v1030_v34, inf  ;;  %v1085_v24 = vand.u32 2147483648, %v1030_v34 }
 0x94b   : > { %v1041_v59 = vsel %vm1040_vm9, %v1024_v43, %v1039_v56  ;;  %1355 = vrsqrt.f32 %v2137_v35  ;;  %vm1084_vm6 = vcmp.eq.f32.partialorder %v1030_v34, 0.0  ;;  %vm1075_vm7 = vcmp.eq.f32.partialorder %v2137_v35, inf }
 0x94c   : > { %v1346_v62 = vpop.eup %1345  ;;  %v1044_v60 = vsel %vm1042_vm10, %v1043_v57, %v1041_v59  ;;  %v1034_v63 = vsel %vm1033_vm11, %v1023_v29, %v1032_v58  ;;  %v1078_v27 = vand.u32 2147483648, %v2137_v35  ;;  %vm1077_vm9 = vcmp.eq.f32.partialorder %v2137_v35, 0.0 }
 0x94d   : > { %v1348_v1 = vpop.eup %1347  ;;  %1089 = vst.msk [vmem:[%s2144_s7 + $0x8] sm:$0xff] %vm1087_vm8, %v1044_v60  ;;  %v1037_v4 = vsel %vm1035_vm12, %v1036_v61, %v1034_v63  ;;  %v1067_v5 = vmul.f32 %v1346_v62, %v1028_v2 }
 0x94e   : > { %1088 = vst.msk [vmem:[%s2144_s7] sm:$0xff] %vm1087_vm8, %v1037_v4  ;;  %v1060_v6 = vmul.f32 %v1348_v1, %v1027_v46 }
 0x94f   : > { %v1069_v8 = vsel %vm1068_vm13, %v1028_v2, %v1067_v5 }
 0x950   : > { %v1072_v10 = vsel %vm1070_vm14, %v1071_v3, %v1069_v8  ;;  %v1062_v7 = vsel %vm1061_vm15, %v1027_v46, %v1060_v6 }
 0x951   : > { %v1350_v11 = vpop.eup %1349  ;;  %1093 = vst.msk [vmem:[%s2144_s7 + $0x28] sm:$0xff] %vm1087_vm8, %v1072_v10  ;;  %v1065_v12 = vsel %vm1063_vm0, %v1064_v9, %v1062_v7 }
 0x952   : > { %v1352_v39 = vpop.eup %1351  ;;  %1092 = vst.msk [vmem:[%s2144_s7 + $0x20] sm:$0xff] %vm1087_vm8, %v1065_v12  ;;  %v1053_v13 = vmul.f32 %v1350_v11, %v1026_v51 }
 0x953   : > { %v1046_v14 = vmul.f32 %v1352_v39, %v1025_v50 }
 0x954   : > { %v1055_v15 = vsel %vm1054_vm1, %v1026_v51, %v1053_v13  ;;  %v1354_v18 = vpop.eup %1353 }
 0x955   : > { %v1058_v19 = vsel %vm1056_vm2, %v1057_v40, %v1055_v15  ;;  %v1048_v41 = vsel %vm1047_vm3, %v1025_v50, %v1046_v14  ;;  %v1356_v20 = vpop.eup %1355  ;;  %v1081_v22 = vmul.f32 %v1354_v18, %v1030_v34 }
 0x956   : > { %1091 = vst.msk [vmem:[%s2144_s7 + $0x18] sm:$0xff] %vm1087_vm8, %v1058_v19  ;;  %v1051_v21 = vsel %vm1049_vm4, %v1050_v16, %v1048_v41  ;;  %v1074_v25 = vmul.f32 %v1356_v20, %v2137_v35 }
 0x957   : > { %1090 = vst.msk [vmem:[%s2144_s7 + $0x10] sm:$0xff] %vm1087_vm8, %v1051_v21  ;;  %v1083_v26 = vsel %vm1082_vm5, %v1030_v34, %v1081_v22 }
 0x958   : > { %v1086_v28 = vsel %vm1084_vm6, %v1085_v24, %v1083_v26  ;;  %v1076_v31 = vsel %vm1075_vm7, %v2137_v35, %v1074_v25 }
 0x959   : > { %1095 = vst.msk [vmem:[%s2144_s7 + $0x38] sm:$0xff] %vm1087_vm8, %v1086_v28  ;;  %v1079_v47 = vsel %vm1077_vm9, %v1078_v27, %v1076_v31 }
 0x95a   : > { %1094 = vst.msk [vmem:[%s2144_s7 + $0x30] sm:$0xff] %vm1087_vm8, %v1079_v47 }
 0x95b PF: > { %s14_s14 = sadd.s32 1, %s1406_s14   ;;  %s2183_s12 = smov %s1402_s13 }
 0x95c   : > { %p11_p2 = scmp.ge.s32.totalorder %s14_s14, 4   ;;  %s2184_s13 = smov %s2186_s16 }
 0x95e   :  { %13 = sbr.rel (!%p11_p2) target bundleno = 2 (0x2), region = 70 }
 0x965   :  { %1126 = vsyncpa [#allocation3], 1 }
 0x966   :  { %1128 = vsyncpa [#allocation3 + $0x1], 1 }

// kernel: ec_cnn_dtm_forward.18
= control target key start
LH: loop header
LB: loop body
LE: loop exit
PB: predicated region body
PF: predicated region fallthrough
CT: control target
= control target key end

     0   :  { %v134_v0 = vmov 0.0|0.0   ;;  %vm135_vm0 = vmmov 0   ;;  %v136_v4 = vmov 0.0   ;;  %vm26_vm1 = vcmask 261120   ;;  %s178_s1 = inlined_call_operand.vmem [shape: f32[32,32], index: 1, kind: input, shape index: {}]   ;;  %s179_s0 = inlined_call_operand.vmem [shape: f32[2,32], index: 0, kind: input, shape index: {}]   ;;  %s180_s2 = inlined_call_operand.vmem [shape: f32[1,32], index: 2, kind: input, shape index: {}]   ;;  %s181_s3 = inlined_call_operand.vmem [shape: f32[2,32], index: 3, kind: output, shape index: {}]  }
   0x1   :  { %125 = vmatprep.subr.bf16.mxu0 %v134_v0  ;;  %v15_v1 = vld [vmem:[%s178_s1] sm:$0xff]  ;;  %v16_v2 = vld [vmem:[%s178_s1 + $0x8] sm:$0xff]  ;;  %v17_v3 = vld [vmem:[%s178_s1 + $0x10] sm:$0xff]  ;;  %122 = vmatprep.mubr.msk.f32.mxu0 %vm135_vm0, %v136_v4  ;;  %vm101_vm2 = vcmask 254976  }
   0x2   :  { %v126_v5 = vpack.c.bf16 %v16_v2, %v15_v1  ;;  %v18_v6 = vld [vmem:[%s178_s1 + $0x18] sm:$0xff]  ;;  %v14_v8 = vld [vmem:[%s179_s0] sm:$0x3] }
   0x3   :  { %v129_v7 = vpack.c.bf16 %v18_v6, %v17_v3  ;;  %v107_v9 = vld [vmem:[%s180_s2] ss:$0 sm:$0xff] }
   0x4   :  { %127 = vmatpush3.bf16.msra.mxu0 %v126_v5 }
   0x5   :  { %128 = vmatprep.subr.bf16.mxu0 %v134_v0 }
   0x8   :  { %130 = vmatpush3.bf16.msra.mxu0 %v129_v7 }
   0xb   :  { %123 = vmatmul.mubr.msk.f32.vlgmr.msra.gmra.mrb[0].mxu0 %vm26_vm1, %v14_v8 }
  0xde   :  { %v96_v10 = vpop.f32.mrb[0].mxu0 }
  0xdf   :  { %v97_v11 = vadd.f32 %v107_v9, %v96_v10  ;;  %v124_v12 = vpop.f32.mrb[1].mxu0 }
  0xe1   :  { %v100_v13 = vmax.f32 %v97_v11, 0.0 }
  0xe3   :  { %102 = vst.msk [vmem:[%s181_s3] sm:$0x3] %vm101_vm2, %v100_v13 }

// kernel: ec_cnn_dtm_forward.17
= control target key start
LH: loop header
LB: loop body
LE: loop exit
PB: predicated region body
PF: predicated region fallthrough
CT: control target
= control target key end

     0   :  { %7 = vsyncpa [#allocation3], 0  ;;  %s1386_s9 = smov 0   ;;  %s2325_s0 = inlined_call_operand.vmem [shape: f32[2,9,9], index: 0, kind: input, shape index: {}]   ;;  %s2326_s1 = inlined_call_operand.vmem [shape: f32[32], index: 1, kind: input, shape index: {}]   ;;  %s2327_s2 = inlined_call_operand.vmem [shape: f32[2,1,32], index: 2, kind: output, shape index: {}]  }
   0x1 LB: > { %s1213_s10 = sadd.s32 4294967295, %s1366_s9   ;;  %p1215_p0 = scmp.ge.s32.totalorder %s1366_s9, 1  ;;  %s1366_s9 = sphi %s1386_s9, %s13_s9  }
   0x2   : > { %p91_p1 = scmp.lt.s32.totalorder %s1366_s9, 3  ;;  %s104_s13 = sshll.u32 %s2326_s1, 4  ;;  %s105_s13 = int_to_ptr.vmem [resolvable:$true] %s104_s13 }
   0x3   : > { %p1328_p3 = scmp.eq.s32.totalorder %s1213_s10, 0  ;;  %s1341_s15 = scalar_lea.vmem %s105_s13, 16 }
   0x4   : > { %p1397_p2 = pnand %p1215_p0, %p91_p1  ;;  %p1342_p6 = scmp.ne.s32.totalorder %s105_s13, %s1341_s15 }
   0x5   : > { %p1349_p10 = scmp.lt.s32.totalorder %s105_s13, %s105_s13  ;;  %p1350_p11 = scmp.lt.s32.totalorder %s1341_s15, %s1341_s15 }
   0x6   : > { %p1324_p4 = pneg %p1397_p2 }
   0x7   : > { %p1351_p12 = por %p1350_p11, %p1349_p10 }
   0x8   : > { %p1325_p5 = pnand %p1328_p3, %p1324_p4 }
   0xa   : > { %p1343_p7 = pneg %p1325_p5 }
   0xc   : > { %p1344_p8 = pnand %p1343_p7, %p1342_p6 }
   0xe   : > { %p1345_p9 = pneg %p1344_p8 }
  0x10   : > { %p1352_p13 = pnand %p1351_p12, %p1345_p9 }
  0x12   : > { %1355 = shalt.err (!%p1352_p13)
}
  0x13   : > { %s1368_s16 = smov [#allocation2]   ;;  %125 = sbr.rel (%p1397_p2) target bundleno = 455 (0x1c7), region = 28 }
  0x14   : > { %1327 = dma.vmem_to_smem (!%p1325_p5), %s105_s13, 16, %s1368_s16, [#allocation3]  }
  0x1a   : > { %1361 = dma.done.wait (%p1328_p3), [#allocation3], 16  }
  0x1b   : > { %1363 = vsyncadd (%p1328_p3), [#allocation3], 4294967280 }
  0x1c   : > { %131 = sfence }
  0x1d   : > { %p146_p0 = scmp.lt.s32.totalorder %s1213_s10, 1  ;;  %s1369_s21 = smov 127   ;;  %vm201_vm4 = vcmask 64512   ;;  %v2334_v7 = vmov 0.0  }
  0x1e   : > { %s1223_s22 = sld [smem:[#allocation2 + $0x2]]  ;;  %s191_s23 = sld [smem:[#allocation2]] }
  0x1f   : > { %s2467_s10 = smov (!%p146_p0, %s1213_s10), 1  ;;  %s1232_s24 = sld [smem:[#allocation2 + $0xb]] }
  0x20   : > { %s1255_s17 = sshll.u32 %s2467_s10, 4  ;;  %s1222_s25 = sld [smem:[#allocation2 + $0x1]] }
  0x21   : > { %s150_s20 = scalar_lea.vmem %s2325_s0, %s1255_s17  ;;  %s1234_s26 = sld [smem:[#allocation2 + $0xd]] }
  0x22   : > { %v1414_v0 = vld [vmem:[%s150_s20] sm:$0xff]  ;;  %s1224_s27 = sld [smem:[#allocation2 + $0x3]]  ;;  %s1236_s28 = sld [smem:[#allocation2 + $0xf]] }
  0x23   : > { %157 = vrot.lane.b32.xlu0 %v1414_v0, %s1369_s21  ;;  %v1417_v1 = vld [vmem:[%s150_s20 + $0x1] sm:$0xff]  ;;  %s1434_s29 = sld [smem:[#allocation2 + $0x4]]  ;;  %s1446_s30 = sld [smem:[#allocation2 + $0x11]] }
  0x24   : > { %v1420_v2 = vstv %s1223_s22  ;;  %v1422_v3 = vstv %s191_s23  ;;  %v1426_v4 = vmax.f32 %v1414_v0, %v1417_v1  ;;  %s1458_s3 = sld [smem:[#allocation2 + $0x5]]  ;;  %s1469_s4 = sld [smem:[#allocation2 + $0x13]] }
  0x25   : > { %vm254_vm0 = vcmp.le.f32.partialorder %v1414_v0, %v1420_v2  ;;  %vm193_vm1 = vcmp.le.f32.partialorder %v1414_v0, %v1422_v3  ;;  %v1432_v5 = vstv %s1232_s24  ;;  %s1486_s5 = sld [smem:[#allocation2 + $0x6]]  ;;  %s1505_s6 = sld [smem:[#allocation2 + $0x15]] }
  0x26   : > { %2365 = vst [vmem:[#allocation5_spill] sm:$0xff] %v1426_v4  ;;  %vm256_vm2 = vcmp.le.f32.partialorder %v1426_v4, %v1420_v2  ;;  %vm195_vm3 = vcmp.le.f32.partialorder %v1426_v4, %v1422_v3  ;;  %v1440_v6 = vstv %s1222_s25  ;;  %v258_v8 = vsel %vm254_vm0, 1.0, %v2334_v7  ;;  %s1524_s7 = sld [smem:[#allocation2 + $0x7]]  ;;  %s1554_s11 = sld [smem:[#allocation2 + $0x8]] }
  0x27   : > { %163 = vrot.lane.b32.xlu0 %v1417_v1, %s1369_s21  ;;  %v197_v9 = vsel %vm193_vm1, 1.0, %v2334_v7  ;;  %vm524_vm5 = vcmp.le.f32.partialorder %v1414_v0, %v1432_v5  ;;  %vm526_vm6 = vcmp.le.f32.partialorder %v1426_v4, %v1432_v5  ;;  %v1450_v10 = vstv %s1234_s26  ;;  %s1536_s8 = sld [smem:[#allocation2 + $0x17]]  ;;  %s1573_s12 = sld [smem:[#allocation2 + $0x19]] }
  0x28   : > { %v260_v11 = vsel %vm256_vm2, -1.0, %v2334_v7  ;;  %v199_v12 = vsel %vm195_vm3, -1.0, %v2334_v7  ;;  %vm224_vm7 = vcmp.le.f32.partialorder %v1414_v0, %v1440_v6  ;;  %vm226_vm8 = vcmp.le.f32.partialorder %v1426_v4, %v1440_v6  ;;  %s1586_s13 = sld [smem:[#allocation2 + $0x9]]  ;;  %s1604_s14 = sld [smem:[#allocation2 + $0x1b]] }
  0x29   : > { %v1461_v13 = vsel %vm201_vm4, %v258_v8, 0.0  ;;  %v1464_v14 = vsel %vm201_vm4, %v197_v9, 0.0  ;;  %v528_v15 = vsel %vm524_vm5, 1.0, %v2334_v7  ;;  %v1467_v16 = vstv %s1224_s27  ;;  %s1614_s15 = sld [smem:[#allocation2 + $0xa]]  ;;  %s1652_s16 = sld [smem:[#allocation2 + $0x1d]] }
  0x2a   : > { %v530_v17 = vsel %vm526_vm6, -1.0, %v2334_v7  ;;  %vm584_vm9 = vcmp.le.f32.partialorder %v1414_v0, %v1450_v10  ;;  %vm586_vm10 = vcmp.le.f32.partialorder %v1426_v4, %v1450_v10  ;;  %v1476_v18 = vstv %s1236_s28  ;;  %s1661_s17 = sld [smem:[#allocation2 + $0xc]]  ;;  %s1672_s18 = sld [smem:[#allocation2 + $0x1f]] }
  0x2b   : > { %v1479_v19 = vsel %vm201_vm4, %v260_v11, 0.0  ;;  %v1482_v20 = vsel %vm201_vm4, %v199_v12, 0.0  ;;  %v228_v21 = vsel %vm224_vm7, 1.0, %v2334_v7  ;;  %v230_v22 = vsel %vm226_vm8, -1.0, %v2334_v7  ;;  %s1682_s19 = sld [smem:[#allocation2 + $0xe]]  ;;  %s1702_s20 = sld [smem:[#allocation2 + $0x10]] }
  0x2c   : > { %v1489_v23 = vsel %vm201_vm4, %v528_v15, 0.0  ;;  %vm284_vm11 = vcmp.le.f32.partialorder %v1414_v0, %v1467_v16  ;;  %vm286_vm12 = vcmp.le.f32.partialorder %v1426_v4, %v1467_v16  ;;  %v1496_v24 = vstv %s1434_s29  ;;  %s1711_s21 = sld [smem:[#allocation2 + $0x12]]  ;;  %s1757_s22 = sld [smem:[#allocation2 + $0x14]] }
  0x2d   : > { %v1499_v25 = vsel %vm201_vm4, %v530_v17, 0.0  ;;  %v588_v26 = vsel %vm584_vm9, 1.0, %v2334_v7  ;;  %v590_v27 = vsel %vm586_vm10, -1.0, %v2334_v7  ;;  %vm644_vm13 = vcmp.le.f32.partialorder %v1414_v0, %v1476_v18  ;;  %s1768_s23 = sld [smem:[#allocation2 + $0x16]]  ;;  %s1781_s24 = sld [smem:[#allocation2 + $0x18]] }
  0x2e   : > { %v1508_v28 = vsel %vm201_vm4, %v228_v21, 0.0  ;;  %v1511_v29 = vsel %vm201_vm4, %v230_v22, 0.0  ;;  %vm646_vm14 = vcmp.le.f32.partialorder %v1426_v4, %v1476_v18  ;;  %v1516_v30 = vstv %s1446_s30  ;;  %s1783_s25 = sld [smem:[#allocation2 + $0x1a]]  ;;  %s1793_s26 = sld [smem:[#allocation2 + $0x1c]] }
  0x2f   : > { %v288_v31 = vsel %vm284_vm11, 1.0, %v2334_v7  ;;  %v290_v32 = vsel %vm286_vm12, -1.0, %v2334_v7  ;;  %vm314_vm15 = vcmp.le.f32.partialorder %v1414_v0, %v1496_v24  ;;  %vm316_vm0 = vcmp.le.f32.partialorder %v1426_v4, %v1496_v24  ;;  %s1815_s27 = sld [smem:[#allocation2 + $0x1e]] }
  0x30   : > { %v1527_v33 = vsel %vm201_vm4, %v588_v26, 0.0  ;;  %v1530_v34 = vsel %vm201_vm4, %v590_v27, 0.0  ;;  %v648_v35 = vsel %vm644_vm13, 1.0, %v2334_v7  ;;  %v1534_v36 = vstv %s1458_s3 }
  0x31   : > { %v650_v37 = vsel %vm646_vm14, -1.0, %v2334_v7  ;;  %vm704_vm1 = vcmp.le.f32.partialorder %v1414_v0, %v1516_v30  ;;  %vm706_vm2 = vcmp.le.f32.partialorder %v1426_v4, %v1516_v30  ;;  %v1544_v38 = vstv %s1469_s4 }
  0x32   : > { %v1547_v39 = vsel %vm201_vm4, %v288_v31, 0.0  ;;  %v1550_v40 = vsel %vm201_vm4, %v290_v32, 0.0  ;;  %v318_v41 = vsel %vm314_vm15, 1.0, %v2334_v7  ;;  %v320_v42 = vsel %vm316_vm0, -1.0, %v2334_v7 }
  0x33   : > { %v1557_v43 = vsel %vm201_vm4, %v648_v35, 0.0  ;;  %vm344_vm3 = vcmp.le.f32.partialorder %v1414_v0, %v1534_v36  ;;  %vm346_vm5 = vcmp.le.f32.partialorder %v1426_v4, %v1534_v36  ;;  %v1564_v44 = vstv %s1486_s5 }
  0x34   : > { %v1567_v45 = vsel %vm201_vm4, %v650_v37, 0.0  ;;  %v708_v46 = vsel %vm704_vm1, 1.0, %v2334_v7  ;;  %v710_v47 = vsel %vm706_vm2, -1.0, %v2334_v7  ;;  %vm764_vm6 = vcmp.le.f32.partialorder %v1414_v0, %v1544_v38 }
  0x35   : > { %v1576_v48 = vsel %vm201_vm4, %v318_v41, 0.0  ;;  %v1579_v49 = vsel %vm201_vm4, %v320_v42, 0.0  ;;  %vm766_vm7 = vcmp.le.f32.partialorder %v1426_v4, %v1544_v38  ;;  %v1584_v50 = vstv %s1505_s6 }
  0x36   : > { %v348_v51 = vsel %vm344_vm3, 1.0, %v2334_v7  ;;  %v350_v52 = vsel %vm346_vm5, -1.0, %v2334_v7  ;;  %vm374_vm8 = vcmp.le.f32.partialorder %v1414_v0, %v1564_v44  ;;  %vm376_vm9 = vcmp.le.f32.partialorder %v1426_v4, %v1564_v44 }
  0x37   : > { %v1595_v53 = vsel %vm201_vm4, %v708_v46, 0.0  ;;  %v1598_v54 = vsel %vm201_vm4, %v710_v47, 0.0  ;;  %v768_v55 = vsel %vm764_vm6, 1.0, %v2334_v7  ;;  %v1602_v56 = vstv %s1524_s7 }
  0x38   : > { %v770_v57 = vsel %vm766_vm7, -1.0, %v2334_v7  ;;  %vm824_vm10 = vcmp.le.f32.partialorder %v1414_v0, %v1584_v50  ;;  %vm826_vm11 = vcmp.le.f32.partialorder %v1426_v4, %v1584_v50  ;;  %v1612_v58 = vstv %s1536_s8 }
  0x39   : > { %v1617_v59 = vsel %vm201_vm4, %v348_v51, 0.0  ;;  %v1620_v60 = vsel %vm201_vm4, %v350_v52, 0.0  ;;  %v378_v61 = vsel %vm374_vm8, 1.0, %v2334_v7  ;;  %v380_v62 = vsel %vm376_vm9, -1.0, %v2334_v7 }
  0x3a   : > { %v1625_v63 = vsel %vm201_vm4, %v768_v55, 0.0  ;;  %vm404_vm12 = vcmp.le.f32.partialorder %v1414_v0, %v1602_v56  ;;  %vm406_vm13 = vcmp.le.f32.partialorder %v1426_v4, %v1602_v56  ;;  %v1632_v8 = vstv %s1554_s11 }
  0x3b   : > { %v1635_v9 = vsel %vm201_vm4, %v770_v57, 0.0  ;;  %v828_v11 = vsel %vm824_vm10, 1.0, %v2334_v7  ;;  %v830_v12 = vsel %vm826_vm11, -1.0, %v2334_v7  ;;  %vm884_vm14 = vcmp.le.f32.partialorder %v1414_v0, %v1612_v58 }
  0x3c   : > { %v1642_v15 = vsel %vm201_vm4, %v378_v61, 0.0  ;;  %v1645_v17 = vsel %vm201_vm4, %v380_v62, 0.0  ;;  %vm886_vm15 = vcmp.le.f32.partialorder %v1426_v4, %v1612_v58  ;;  %v1650_v21 = vstv %s1573_s12 }
  0x3d   : > { %2366 = vst [vmem:[#allocation6_spill] sm:$0xff] %v1650_v21  ;;  %v408_v22 = vsel %vm404_vm12, 1.0, %v2334_v7  ;;  %v410_v26 = vsel %vm406_vm13, -1.0, %v2334_v7  ;;  %vm434_vm0 = vcmp.le.f32.partialorder %v1414_v0, %v1632_v8  ;;  %v1659_v27 = vstv %s1586_s13 }
  0x3e   : > { %2367 = vst [vmem:[#allocation7_spill] sm:$0xff] %v1659_v27  ;;  %v1664_v31 = vsel %vm201_vm4, %v828_v11, 0.0  ;;  %v1667_v32 = vsel %vm201_vm4, %v830_v12, 0.0  ;;  %v888_v35 = vsel %vm884_vm14, 1.0, %v2334_v7  ;;  %vm436_vm1 = vcmp.le.f32.partialorder %v1426_v4, %v1632_v8 }
  0x3f   : > { %v890_v37 = vsel %vm886_vm15, -1.0, %v2334_v7  ;;  %vm944_vm2 = vcmp.le.f32.partialorder %v1414_v0, %v1650_v21  ;;  %vm946_vm3 = vcmp.le.f32.partialorder %v1426_v4, %v1650_v21  ;;  %v1680_v41 = vstv %s1604_s14 }
  0x40   : > { %2368 = vst [vmem:[#allocation8_spill] sm:$0xff] %v1680_v41  ;;  %v1685_v42 = vsel %vm201_vm4, %v408_v22, 0.0  ;;  %v438_v46 = vsel %vm434_vm0, 1.0, %v2334_v7  ;;  %vm464_vm5 = vcmp.le.f32.partialorder %v1414_v0, %v1659_v27  ;;  %v1691_v47 = vstv %s1614_s15 }
  0x41   : > { %2369 = vst [vmem:[#allocation9_spill] sm:$0xff] %v1691_v47  ;;  %v1694_v51 = vsel %vm201_vm4, %v410_v26, 0.0  ;;  %v1697_v52 = vsel %vm201_vm4, %v888_v35, 0.0  ;;  %v440_v55 = vsel %vm436_vm1, -1.0, %v2334_v7  ;;  %vm466_vm6 = vcmp.le.f32.partialorder %v1426_v4, %v1659_v27 }
  0x42   : > { %2370 = vst [vmem:[#allocation10_spill] sm:$0xff] %v1694_v51  ;;  %2371 = vst [vmem:[#allocation11_spill] sm:$0xff] %v1697_v52  ;;  %v1705_v57 = vsel %vm201_vm4, %v890_v37, 0.0  ;;  %v948_v61 = vsel %vm944_vm2, 1.0, %v2334_v7  ;;  %v950_v62 = vsel %vm946_vm3, -1.0, %v2334_v7  ;;  %vm1004_vm7 = vcmp.le.f32.partialorder %v1414_v0, %v1680_v41 }
  0x43   : > { %2372 = vst [vmem:[#allocation12_spill] sm:$0xff] %v1705_v57  ;;  %v1714_v11 = vsel %vm201_vm4, %v438_v46, 0.0  ;;  %v468_v12 = vsel %vm464_vm5, 1.0, %v2334_v7  ;;  %vm1006_vm8 = vcmp.le.f32.partialorder %v1426_v4, %v1680_v41  ;;  %vm494_vm9 = vcmp.le.f32.partialorder %v1414_v0, %v1691_v47 }
  0x44   : > { %2373 = vst [vmem:[#allocation13_spill] sm:$0xff] %v1714_v11  ;;  %v1722_v22 = vsel %vm201_vm4, %v440_v55, 0.0  ;;  %v470_v26 = vsel %vm466_vm6, -1.0, %v2334_v7  ;;  %vm496_vm10 = vcmp.le.f32.partialorder %v1426_v4, %v1691_v47  ;;  %v1728_v35 = vstv %s1652_s16 }
  0x45   : > { %2374 = vst [vmem:[#allocation14_spill] sm:$0xff] %v1722_v22  ;;  %2375 = vst [vmem:[#allocation15_spill] sm:$0xff] %v1728_v35  ;;  %v1731_v37 = vsel %vm201_vm4, %v948_v61, 0.0  ;;  %v1734_v46 = vsel %vm201_vm4, %v950_v62, 0.0  ;;  %v1008_v41 = vsel %vm1004_vm7, 1.0, %v2334_v7  ;;  %v1738_v27 = vstv %s1661_s17 }
  0x46   : > { %2376 = vst [vmem:[#allocation16_spill] sm:$0xff] %v1731_v37  ;;  %2377 = vst [vmem:[#allocation17_spill] sm:$0xff] %v1734_v46  ;;  %v1741_v55 = vsel %vm201_vm4, %v468_v12, 0.0  ;;  %v1010_v22 = vsel %vm1006_vm8, -1.0, %v2334_v7  ;;  %v498_v47 = vsel %vm494_vm9, 1.0, %v2334_v7  ;;  %v1746_v11 = vstv %s1672_s18 }
  0x47   : > { %2378 = vst [vmem:[#allocation18_spill] sm:$0xff] %v1738_v27  ;;  %2379 = vst [vmem:[#allocation19_spill] sm:$0xff] %v1741_v55  ;;  %v1749_v61 = vsel %vm201_vm4, %v470_v26, 0.0  ;;  %v500_v62 = vsel %vm496_vm10, -1.0, %v2334_v7  ;;  %vm1064_vm11 = vcmp.le.f32.partialorder %v1414_v0, %v1728_v35  ;;  %v1755_v46 = vstv %s1682_s19 }
  0x48   : > { %2380 = vst [vmem:[#allocation20_spill] sm:$0xff] %v1746_v11  ;;  %2381 = vst [vmem:[#allocation21_spill] sm:$0xff] %v1749_v61  ;;  %v1760_v12 = vsel %vm201_vm4, %v1008_v41, 0.0  ;;  %vm1066_vm12 = vcmp.le.f32.partialorder %v1426_v4, %v1728_v35  ;;  %vm554_vm13 = vcmp.le.f32.partialorder %v1414_v0, %v1738_v27  ;;  %vm556_vm14 = vcmp.le.f32.partialorder %v1426_v4, %v1738_v27 }
  0x49   : > { %2382 = vst [vmem:[#allocation22_spill] sm:$0xff] %v1755_v46  ;;  %2383 = vst [vmem:[#allocation23_spill] sm:$0xff] %v1760_v12  ;;  %v1771_v26 = vsel %vm201_vm4, %v1010_v22, 0.0  ;;  %v1774_v7 = vsel %vm201_vm4, %v498_v47, 0.0  ;;  %vm1124_vm15 = vcmp.le.f32.partialorder %v1414_v0, %v1746_v11  ;;  %v1779_v41 = vstv %s1702_s20 }
  0x4a   : > { %2384 = vst [vmem:[#allocation24_spill] sm:$0xff] %v1771_v26  ;;  %2385 = vst [vmem:[#allocation25_spill] sm:$0xff] %v1774_v7  ;;  %v2387_v35 = vmov 0.0   ;;  %vm1126_vm0 = vcmp.le.f32.partialorder %v1426_v4, %v1746_v11  ;;  %vm614_vm1 = vcmp.le.f32.partialorder %v1414_v0, %v1755_v46  ;;  %v1791_v22 = vstv %s1711_s21 }
  0x4b   : > { %2386 = vst [vmem:[#allocation26_spill] sm:$0xff] %v1779_v41  ;;  %v1068_v12 = vsel %vm1064_vm11, 1.0, %v2387_v35  ;;  %2388 = vst [vmem:[#allocation27_spill] sm:$0xff] %v1791_v22  ;;  %v1070_v47 = vsel %vm1066_vm12, -1.0, %v2387_v35  ;;  %v558_v27 = vsel %vm554_vm13, 1.0, %v2387_v35  ;;  %v560_v7 = vsel %vm556_vm14, -1.0, %v2387_v35 }
  0x4c   : > { %vm616_vm2 = vcmp.le.f32.partialorder %v1426_v4, %v1755_v46  ;;  %v1801_v26 = vsel %vm201_vm4, %v500_v62, 0.0  ;;  %v1128_v11 = vsel %vm1124_vm15, 1.0, %v2387_v35  ;;  %vm674_vm3 = vcmp.le.f32.partialorder %v1414_v0, %v1779_v41 }
  0x4d   : > { %2389 = vst [vmem:[#allocation28_spill] sm:$0xff] %v1801_v26  ;;  %vm676_vm5 = vcmp.le.f32.partialorder %v1426_v4, %v1779_v41  ;;  %v1809_v61 = vsel %vm201_vm4, %v1068_v12, 0.0  ;;  %v1130_v55 = vsel %vm1126_vm0, -1.0, %v2387_v35  ;;  %v618_v46 = vsel %vm614_vm1, 1.0, %v2387_v35 }
  0x4e   : > { %2390 = vst [vmem:[#allocation29_spill] sm:$0xff] %v1809_v61  ;;  %vm734_vm6 = vcmp.le.f32.partialorder %v1414_v0, %v1791_v22  ;;  %v1818_v62 = vsel %vm201_vm4, %v1070_v47, 0.0  ;;  %v1821_v41 = vsel %vm201_vm4, %v558_v27, 0.0  ;;  %v1824_v12 = vsel %vm201_vm4, %v560_v7, 0.0 }
  0x4f   : > { %2391 = vst [vmem:[#allocation30_spill] sm:$0xff] %v1818_v62  ;;  %2392 = vst [vmem:[#allocation31_spill] sm:$0xff] %v1821_v41  ;;  %v620_v61 = vsel %vm616_vm2, -1.0, %v2387_v35  ;;  %v1828_v26 = vsel %vm201_vm4, %v1128_v11, 0.0  ;;  %v678_v37 = vsel %vm674_vm3, 1.0, %v2387_v35  ;;  %v680_v57 = vsel %vm676_vm5, -1.0, %v2387_v35 }
  0x50   : > { %2393 = vst [vmem:[#allocation32_spill] sm:$0xff] %v1824_v12  ;;  %2394 = vst [vmem:[#allocation33_spill] sm:$0xff] %v1828_v26  ;;  %v1833_v21 = vstv %s1757_s22  ;;  %v1836_v47 = vsel %vm201_vm4, %v1130_v55, 0.0  ;;  %v1839_v27 = vsel %vm201_vm4, %v618_v46, 0.0  ;;  %v738_v7 = vsel %vm734_vm6, 1.0, %v2387_v35 }
  0x51   : > { %2395 = vst [vmem:[#allocation34_spill] sm:$0xff] %v1833_v21  ;;  %2396 = vst [vmem:[#allocation35_spill] sm:$0xff] %v1836_v47  ;;  %v1843_v12 = vstv %s1768_s23  ;;  %v1846_v41 = vsel %vm201_vm4, %v620_v61, 0.0  ;;  %vm736_vm7 = vcmp.le.f32.partialorder %v1426_v4, %v1791_v22  ;;  %v1851_v11 = vstv %s1781_s24 }
  0x52   : > { %2397 = vst [vmem:[#allocation36_spill] sm:$0xff] %v1839_v27  ;;  %2398 = vst [vmem:[#allocation37_spill] sm:$0xff] %v1843_v12  ;;  %v1854_v26 = vstv %s1783_s25  ;;  %v1857_v55 = vsel %vm201_vm4, %v678_v37, 0.0  ;;  %v1860_v46 = vsel %vm201_vm4, %v680_v57, 0.0  ;;  %vm794_vm8 = vcmp.le.f32.partialorder %v1414_v0, %v1833_v21 }
  0x53   : > { %2399 = vst [vmem:[#allocation38_spill] sm:$0xff] %v1846_v41  ;;  %2400 = vst [vmem:[#allocation39_spill] sm:$0xff] %v1851_v11  ;;  %v1865_v27 = vstv %s1793_s26  ;;  %v1868_v61 = vsel %vm201_vm4, %v738_v7, 0.0  ;;  %vm796_vm9 = vcmp.le.f32.partialorder %v1426_v4, %v1833_v21  ;;  %vm854_vm10 = vcmp.le.f32.partialorder %v1414_v0, %v1843_v12 }
  0x54   : > { %2401 = vst [vmem:[#allocation40_spill] sm:$0xff] %v1854_v26  ;;  %2402 = vst [vmem:[#allocation41_spill] sm:$0xff] %v1857_v55  ;;  %vm856_vm11 = vcmp.le.f32.partialorder %v1426_v4, %v1843_v12  ;;  %v740_v57 = vsel %vm736_vm7, -1.0, %v2387_v35  ;;  %vm914_vm12 = vcmp.le.f32.partialorder %v1414_v0, %v1851_v11  ;;  %vm916_vm13 = vcmp.le.f32.partialorder %v1426_v4, %v1851_v11 }
  0x55   : > { %2403 = vst [vmem:[#allocation42_spill] sm:$0xff] %v1860_v46  ;;  %2404 = vst [vmem:[#allocation43_spill] sm:$0xff] %v1865_v27  ;;  %vm974_vm14 = vcmp.le.f32.partialorder %v1414_v0, %v1854_v26  ;;  %vm976_vm15 = vcmp.le.f32.partialorder %v1426_v4, %v1854_v26  ;;  %vm1034_vm0 = vcmp.le.f32.partialorder %v1414_v0, %v1865_v27  ;;  %v1890_v37 = vstv %s1815_s27 }
  0x56   : > { %2405 = vst [vmem:[#allocation44_spill] sm:$0xff] %v1868_v61  ;;  %vm1036_vm1 = vcmp.le.f32.partialorder %v1426_v4, %v1865_v27  ;;  %2406 = vst [vmem:[#allocation45_spill] sm:$0xff] %v1890_v37  ;;  %v798_v7 = vsel %vm794_vm8, 1.0, %v2387_v35  ;;  %v800_v12 = vsel %vm796_vm9, -1.0, %v2387_v35  ;;  %v858_v11 = vsel %vm854_vm10, 1.0, %v2387_v35 }
  0x57   : > { %v860_v61 = vsel %vm856_vm11, -1.0, %v2387_v35  ;;  %v1897_v46 = vsel %vm201_vm4, %v740_v57, 0.0  ;;  %v918_v26 = vsel %vm914_vm12, 1.0, %v2387_v35  ;;  %v920_v21 = vsel %vm916_vm13, -1.0, %v2387_v35 }
  0x58   : > { %2407 = vst [vmem:[#allocation46_spill] sm:$0xff] %v1897_v46  ;;  %v978_v55 = vsel %vm974_vm14, 1.0, %v2387_v35  ;;  %v980_v27 = vsel %vm976_vm15, -1.0, %v2387_v35  ;;  %v1038_v41 = vsel %vm1034_vm0, 1.0, %v2387_v35  ;;  %v1040_v22 = vsel %vm1036_vm1, -1.0, %v2387_v35 }
  0x59   : > { %vm1094_vm2 = vcmp.le.f32.partialorder %v1414_v0, %v1890_v37  ;;  %v1908_v4 = vsel %vm201_vm4, %v798_v7, 0.0  ;;  %v1911_v57 = vsel %vm201_vm4, %v800_v12, 0.0  ;;  %v1914_v46 = vsel %vm201_vm4, %v858_v11, 0.0 }
  0x5a   : > { %v1917_v62 = vsel %vm201_vm4, %v860_v61, 0.0  ;;  %v1923_v51 = vsel %vm201_vm4, %v918_v26, 0.0  ;;  %v1926_v37 = vsel %vm201_vm4, %v920_v21, 0.0  ;;  %v1929_v7 = vsel %vm201_vm4, %v978_v55, 0.0 }
  0x5b   : > { %2408 = vst [vmem:[#allocation47_spill] sm:$0xff] %v1917_v62  ;;  %2409 = vst [vmem:[#allocation48_spill] sm:$0xff] %v1923_v51  ;;  %v1932_v12 = vsel %vm201_vm4, %v980_v27, 0.0  ;;  %v1935_v11 = vsel %vm201_vm4, %v1038_v41, 0.0  ;;  %v1938_v61 = vsel %vm201_vm4, %v1040_v22, 0.0 }
  0x5c   : > { %2410 = vst [vmem:[#allocation49_spill] sm:$0xff] %v1926_v37  ;;  %2411 = vst [vmem:[#allocation50_spill] sm:$0xff] %v1929_v7 }
  0x5d   : > { %2412 = vst [vmem:[#allocation51_spill] sm:$0xff] %v1932_v12  ;;  %2413 = vst [vmem:[#allocation52_spill] sm:$0xff] %v1935_v11 }
  0x5e   : > { %2414 = vst [vmem:[#allocation53_spill] sm:$0xff] %v1938_v61 }
  0x95   : > { %v158_v47 = vpop.permute.xlu0 %157 }
  0x96   : > { %v1920_v52 = vmax.f32 %v1414_v0, %v158_v47  ;;  %v1941_v0 = vsel %vm1094_vm2, 1.0, %v2387_v35 }
  0x97   : > { %2415 = vst [vmem:[#allocation54_spill] sm:$0xff] %v1941_v0 }
  0x98   : > { %vm255_vm3 = vcmp.le.f32.partialorder %v1920_v52, %v1420_v2  ;;  %vm194_vm5 = vcmp.le.f32.partialorder %v1920_v52, %v1422_v3  ;;  %vm525_vm6 = vcmp.le.f32.partialorder %v1920_v52, %v1432_v5  ;;  %vm225_vm7 = vcmp.le.f32.partialorder %v1920_v52, %v1440_v6 }
  0x99   : > { %v164_v21 = vpop.permute.xlu0 %163  ;;  %v259_v26 = vsel %vm255_vm3, -1.0, %v2387_v35  ;;  %v198_v41 = vsel %vm194_vm5, -1.0, %v2387_v35  ;;  %v529_v22 = vsel %vm525_vm6, -1.0, %v2387_v35  ;;  %v229_v47 = vsel %vm225_vm7, -1.0, %v2387_v35 }
  0x9a   : > { %v166_v27 = vmax.f32 %v1417_v1, %v164_v21  ;;  %v263_v55 = vsel %vm201_vm4, %v259_v26, 0.0  ;;  %v203_v61 = vsel %vm201_vm4, %v198_v41, 0.0  ;;  %v533_v0 = vsel %vm201_vm4, %v529_v22, 0.0 }
  0x9b   : > { %v264_v11 = vadd.f32 %v263_v55, %v1461_v13  ;;  %v204_v12 = vadd.f32 %v203_v61, %v1464_v14  ;;  %v534_v7 = vadd.f32 %v533_v0, %v1489_v23  ;;  %v233_v37 = vsel %vm201_vm4, %v229_v47, 0.0 }
  0x9c   : > { %v1964_v51 = vmax.f32 %v1920_v52, %v166_v27  ;;  %v234_v62 = vadd.f32 %v233_v37, %v1508_v28  ;;  %vm585_vm8 = vcmp.le.f32.partialorder %v1920_v52, %v1450_v10  ;;  %vm285_vm9 = vcmp.le.f32.partialorder %v1920_v52, %v1467_v16 }
  0x9d   : > { %v266_v1 = vadd.f32 %v1479_v19, %v264_v11  ;;  %v206_v13 = vadd.f32 %v1482_v20, %v204_v12  ;;  %v536_v14 = vadd.f32 %v1499_v25, %v534_v7  ;;  %v589_v23 = vsel %vm585_vm8, -1.0, %v2387_v35 }
  0x9e   : > { %vm257_vm10 = vcmp.le.f32.partialorder %v1964_v51, %v1420_v2  ;;  %vm196_vm11 = vcmp.le.f32.partialorder %v1964_v51, %v1422_v3  ;;  %vm527_vm12 = vcmp.le.f32.partialorder %v1964_v51, %v1432_v5  ;;  %vm227_vm13 = vcmp.le.f32.partialorder %v1964_v51, %v1440_v6 }
  0x9f   : > { %v261_v19 = vsel %vm257_vm10, 1.0, %v2387_v35  ;;  %v200_v20 = vsel %vm196_vm11, 1.0, %v2387_v35  ;;  %v531_v25 = vsel %vm527_vm12, 1.0, %v2387_v35  ;;  %v231_v28 = vsel %vm227_vm13, 1.0, %v2387_v35 }
  0xa0   : > { %v267_v37 = vsel %vm201_vm4, %v261_v19, 0.0  ;;  %v207_v2 = vsel %vm201_vm4, %v200_v20, 0.0  ;;  %v537_v3 = vsel %vm201_vm4, %v531_v25, 0.0  ;;  %v236_v7 = vadd.f32 %v1511_v29, %v234_v62 }
  0xa1   : > { %v268_v5 = vadd.f32 %v267_v37, %v266_v1  ;;  %v208_v12 = vadd.f32 %v207_v2, %v206_v13  ;;  %v538_v11 = vadd.f32 %v537_v3, %v536_v14  ;;  %v237_v6 = vsel %vm201_vm4, %v231_v28, 0.0 }
  0xa2   : > { %v238_v61 = vadd.f32 %v237_v6, %v236_v7  ;;  %vm587_vm14 = vcmp.le.f32.partialorder %v1964_v51, %v1450_v10  ;;  %v593_v0 = vsel %vm201_vm4, %v589_v23, 0.0  ;;  %vm287_vm15 = vcmp.le.f32.partialorder %v1964_v51, %v1467_v16 }
  0xa3   : > { %269 = vadd.xlane.f32.xlu0 %v268_v5  ;;  %209 = vadd.xlane.f32.xlu1 %v208_v12  ;;  %v591_v21 = vsel %vm587_vm14, 1.0, %v2387_v35  ;;  %v594_v29 = vadd.f32 %v593_v0, %v1527_v33  ;;  %v289_v62 = vsel %vm285_vm9, -1.0, %v2387_v35  ;;  %v291_v26 = vsel %vm287_vm15, 1.0, %v2387_v35 }
  0xa4   : > { %v597_v10 = vsel %vm201_vm4, %v591_v21, 0.0  ;;  %v293_v41 = vsel %vm201_vm4, %v289_v62, 0.0  ;;  %v297_v22 = vsel %vm201_vm4, %v291_v26, 0.0  ;;  %vm645_vm0 = vcmp.le.f32.partialorder %v1920_v52, %v1476_v18 }
  0xa5   : > { %v596_v47 = vadd.f32 %v1530_v34, %v594_v29  ;;  %v294_v33 = vadd.f32 %v293_v41, %v1547_v39  ;;  %vm647_vm1 = vcmp.le.f32.partialorder %v1964_v51, %v1476_v18  ;;  %v649_v16 = vsel %vm645_vm0, -1.0, %v2387_v35 }
  0xa6   : > { %v651_v27 = vsel %vm647_vm1, 1.0, %v2387_v35  ;;  %v653_v55 = vsel %vm201_vm4, %v649_v16, 0.0  ;;  %vm315_vm2 = vcmp.le.f32.partialorder %v1920_v52, %v1496_v24  ;;  %vm317_vm3 = vcmp.le.f32.partialorder %v1964_v51, %v1496_v24 }
  0xa7   : > { %539 = vadd.xlane.f32.xlu0 %v538_v11  ;;  %239 = vadd.xlane.f32.xlu1 %v238_v61  ;;  %v598_v34 = vadd.f32 %v597_v10, %v596_v47  ;;  %v296_v39 = vadd.f32 %v1550_v40, %v294_v33  ;;  %v654_v1 = vadd.f32 %v653_v55, %v1557_v43  ;;  %v657_v18 = vsel %vm201_vm4, %v651_v27, 0.0 }
  0xa8   : > { %v319_v13 = vsel %vm315_vm2, -1.0, %v2387_v35  ;;  %v321_v14 = vsel %vm317_vm3, 1.0, %v2387_v35  ;;  %vm705_vm5 = vcmp.le.f32.partialorder %v1920_v52, %v1516_v30  ;;  %vm707_vm6 = vcmp.le.f32.partialorder %v1964_v51, %v1516_v30 }
  0xa9   : > { %v298_v24 = vadd.f32 %v297_v22, %v296_v39  ;;  %v656_v23 = vadd.f32 %v1567_v45, %v654_v1  ;;  %v323_v19 = vsel %vm201_vm4, %v319_v13, 0.0  ;;  %v327_v40 = vsel %vm201_vm4, %v321_v14, 0.0  ;;  %v2416_v1 = vld [vmem:[#allocation10_spill] sm:$0xff]  ;;  %v2417_v13 = vld [vmem:[#allocation11_spill] sm:$0xff] }
  0xaa   : > { %v324_v43 = vadd.f32 %v323_v19, %v1576_v48  ;;  %v709_v20 = vsel %vm705_vm5, -1.0, %v2387_v35  ;;  %v711_v25 = vsel %vm707_vm6, 1.0, %v2387_v35  ;;  %vm345_vm7 = vcmp.le.f32.partialorder %v1920_v52, %v1534_v36  ;;  %v2419_v19 = vld [vmem:[#allocation12_spill] sm:$0xff] }
  0xab   : > { %599 = vadd.xlane.f32.xlu0 %v598_v34  ;;  %299 = vadd.xlane.f32.xlu1 %v298_v24  ;;  %v658_v28 = vadd.f32 %v657_v18, %v656_v23  ;;  %v713_v30 = vsel %vm201_vm4, %v709_v20, 0.0  ;;  %v717_v45 = vsel %vm201_vm4, %v711_v25, 0.0  ;;  %vm347_vm8 = vcmp.le.f32.partialorder %v1964_v51, %v1534_v36  ;;  %v2418_v23 = vld [vmem:[#allocation6_spill] sm:$0xff]  ;;  %v2420_v25 = vld [vmem:[#allocation13_spill] sm:$0xff] }
  0xac   : > { %v326_v37 = vadd.f32 %v1579_v49, %v324_v43  ;;  %v714_v48 = vadd.f32 %v713_v30, %v1595_v53  ;;  %v349_v2 = vsel %vm345_vm7, -1.0, %v2387_v35  ;;  %v351_v3 = vsel %vm347_vm8, 1.0, %v2387_v35 }
  0xad   : > { %v353_v7 = vsel %vm201_vm4, %v349_v2, 0.0  ;;  %v357_v5 = vsel %vm201_vm4, %v351_v3, 0.0  ;;  %vm765_vm9 = vcmp.le.f32.partialorder %v1920_v52, %v1544_v38  ;;  %vm767_vm10 = vcmp.le.f32.partialorder %v1964_v51, %v1544_v38 }
  0xae   : > { %v328_v12 = vadd.f32 %v327_v40, %v326_v37  ;;  %v716_v36 = vadd.f32 %v1598_v54, %v714_v48  ;;  %v354_v49 = vadd.f32 %v353_v7, %v1617_v59  ;;  %v769_v53 = vsel %vm765_vm9, -1.0, %v2387_v35  ;;  %v2421_v37 = vld [vmem:[#allocation7_spill] sm:$0xff]  ;;  %v2422_v7 = vld [vmem:[#allocation14_spill] sm:$0xff] }
  0xaf   : > { %659 = vadd.xlane.f32.xlu0 %v658_v28  ;;  %v771_v11 = vsel %vm767_vm10, 1.0, %v2387_v35  ;;  %v773_v6 = vsel %vm201_vm4, %v769_v53, 0.0  ;;  %vm375_vm11 = vcmp.le.f32.partialorder %v1920_v52, %v1564_v44  ;;  %vm377_vm12 = vcmp.le.f32.partialorder %v1964_v51, %v1564_v44 }
  0xb0   : > { %329 = vadd.xlane.f32.xlu1 %v328_v12  ;;  %v718_v38 = vadd.f32 %v717_v45, %v716_v36  ;;  %v356_v61 = vadd.f32 %v1620_v60, %v354_v49  ;;  %v774_v54 = vadd.f32 %v773_v6, %v1625_v63  ;;  %v777_v59 = vsel %vm201_vm4, %v771_v11, 0.0  ;;  %v2423_v12 = vld [vmem:[#allocation16_spill] sm:$0xff] }
  0xb1   : > { %v379_v0 = vsel %vm375_vm11, -1.0, %v2387_v35  ;;  %v381_v21 = vsel %vm377_vm12, 1.0, %v2387_v35  ;;  %vm825_vm13 = vcmp.le.f32.partialorder %v1920_v52, %v1584_v50  ;;  %vm827_vm14 = vcmp.le.f32.partialorder %v1964_v51, %v1584_v50 }
  0xb2   : > { %v358_v29 = vadd.f32 %v357_v5, %v356_v61  ;;  %v776_v44 = vadd.f32 %v1635_v9, %v774_v54  ;;  %v383_v62 = vsel %vm201_vm4, %v379_v0, 0.0  ;;  %v387_v60 = vsel %vm201_vm4, %v381_v21, 0.0  ;;  %v2425_v54 = vld [vmem:[#allocation17_spill] sm:$0xff]  ;;  %v2426_v0 = vld [vmem:[#allocation19_spill] sm:$0xff] }
  0xb3   : > { %719 = vadd.xlane.f32.xlu0 %v718_v38  ;;  %v384_v63 = vadd.f32 %v383_v62, %v1642_v15  ;;  %v829_v26 = vsel %vm825_vm13, -1.0, %v2387_v35  ;;  %v831_v10 = vsel %vm827_vm14, 1.0, %v2387_v35  ;;  %vm405_vm15 = vcmp.le.f32.partialorder %v1920_v52, %v1602_v56  ;;  %v2424_v38 = vld [vmem:[#allocation8_spill] sm:$0xff] }
  0xb4   : > { %359 = vadd.xlane.f32.xlu1 %v358_v29  ;;  %v778_v41 = vadd.f32 %v777_v59, %v776_v44  ;;  %v833_v50 = vsel %vm201_vm4, %v829_v26, 0.0  ;;  %v837_v9 = vsel %vm201_vm4, %v831_v10, 0.0  ;;  %vm407_vm0 = vcmp.le.f32.partialorder %v1964_v51, %v1602_v56  ;;  %v2428_v26 = vld [vmem:[#allocation21_spill] sm:$0xff] }
  0xb5   : > { %v386_v22 = vadd.f32 %v1645_v17, %v384_v63  ;;  %v834_v15 = vadd.f32 %v833_v50, %v1664_v31  ;;  %v409_v47 = vsel %vm405_vm15, -1.0, %v2387_v35  ;;  %v411_v33 = vsel %vm407_vm0, 1.0, %v2387_v35 }
  0xb6   : > { %v413_v16 = vsel %vm201_vm4, %v409_v47, 0.0  ;;  %v417_v27 = vsel %vm201_vm4, %v411_v33, 0.0  ;;  %vm885_vm1 = vcmp.le.f32.partialorder %v1920_v52, %v1612_v58  ;;  %vm887_vm2 = vcmp.le.f32.partialorder %v1964_v51, %v1612_v58  ;;  %v2430_v47 = vld [vmem:[#allocation15_spill] sm:$0xff] }
  0xb7   : > { %779 = vadd.xlane.f32.xlu0 %v778_v41  ;;  %v388_v56 = vadd.f32 %v387_v60, %v386_v22  ;;  %v836_v17 = vadd.f32 %v1667_v32, %v834_v15  ;;  %v414_v31 = vadd.f32 %v413_v16, %v1685_v42  ;;  %v889_v55 = vsel %vm885_vm1, -1.0, %v2387_v35  ;;  %v2427_v60 = vld [vmem:[#allocation9_spill] sm:$0xff]  ;;  %v2429_v41 = vld [vmem:[#allocation23_spill] sm:$0xff]  ;;  %v2431_v16 = vld [vmem:[#allocation24_spill] sm:$0xff] }
  0xb8   : > { %v891_v34 = vsel %vm887_vm2, 1.0, %v2387_v35  ;;  %v893_v39 = vsel %vm201_vm4, %v889_v55, 0.0  ;;  %vm435_vm3 = vcmp.le.f32.partialorder %v1920_v52, %v1632_v8  ;;  %vm437_vm5 = vcmp.le.f32.partialorder %v1964_v51, %v1632_v8 }
  0xb9   : > { %389 = vadd.xlane.f32.xlu1 %v388_v56  ;;  %v838_v58 = vadd.f32 %v837_v9, %v836_v17  ;;  %v416_v18 = vadd.f32 %v2416_v1, %v414_v31  ;;  %v894_v32 = vadd.f32 %v893_v39, %v2417_v13  ;;  %v897_v42 = vsel %vm201_vm4, %v891_v34, 0.0  ;;  %v2432_v31 = vld [vmem:[#allocation25_spill] sm:$0xff] }
  0xba   : > { %v439_v14 = vsel %vm435_vm3, -1.0, %v2387_v35  ;;  %v441_v24 = vsel %vm437_vm5, 1.0, %v2387_v35  ;;  %vm945_vm6 = vcmp.le.f32.partialorder %v1920_v52, %v2418_v23  ;;  %vm947_vm7 = vcmp.le.f32.partialorder %v1964_v51, %v2418_v23 }
  0xbb   : > { %839 = vadd.xlane.f32.xlu0 %v838_v58  ;;  %v418_v8 = vadd.f32 %v417_v27, %v416_v18  ;;  %v896_v40 = vadd.f32 %v2419_v19, %v894_v32  ;;  %v443_v43 = vsel %vm201_vm4, %v439_v14, 0.0  ;;  %v447_v20 = vsel %vm201_vm4, %v441_v24, 0.0  ;;  %v2433_v58 = vld [vmem:[#allocation18_spill] sm:$0xff]  ;;  %v2434_v32 = vld [vmem:[#allocation28_spill] sm:$0xff]  ;;  %v2435_v14 = vld [vmem:[#allocation29_spill] sm:$0xff] }
  0xbc   : > { %v444_v28 = vadd.f32 %v443_v43, %v2420_v25  ;;  %v949_v30 = vsel %vm945_vm6, -1.0, %v2387_v35  ;;  %v951_v45 = vsel %vm947_vm7, 1.0, %v2387_v35  ;;  %vm465_vm8 = vcmp.le.f32.partialorder %v1920_v52, %v2421_v37  ;;  %v2436_v43 = vld [vmem:[#allocation20_spill] sm:$0xff]  ;;  %v2437_v25 = vld [vmem:[#allocation30_spill] sm:$0xff] }
  0xbd   : > { %419 = vadd.xlane.f32.xlu1 %v418_v8  ;;  %v898_v48 = vadd.f32 %v897_v42, %v896_v40  ;;  %v953_v2 = vsel %vm201_vm4, %v949_v30, 0.0  ;;  %v957_v3 = vsel %vm201_vm4, %v951_v45, 0.0  ;;  %vm467_vm9 = vcmp.le.f32.partialorder %v1964_v51, %v2421_v37  ;;  %v2438_v30 = vld [vmem:[#allocation31_spill] sm:$0xff] }
  0xbe   : > { %v446_v5 = vadd.f32 %v2422_v7, %v444_v28  ;;  %v954_v36 = vadd.f32 %v953_v2, %v2423_v12  ;;  %v469_v49 = vsel %vm465_vm8, -1.0, %v2387_v35  ;;  %v471_v53 = vsel %vm467_vm9, 1.0, %v2387_v35  ;;  %v2440_v2 = vld [vmem:[#allocation5_spill] sm:$0xff] }
  0xbf   : > { %899 = vadd.xlane.f32.xlu0 %v898_v48  ;;  %v473_v11 = vsel %vm201_vm4, %v469_v49, 0.0  ;;  %v477_v6 = vsel %vm201_vm4, %v471_v53, 0.0  ;;  %vm1005_vm10 = vcmp.le.f32.partialorder %v1920_v52, %v2424_v38  ;;  %vm1007_vm11 = vcmp.le.f32.partialorder %v1964_v51, %v2424_v38  ;;  %v2439_v48 = vld [vmem:[#allocation45_spill] sm:$0xff] }
  0xc0   : > { %v448_v61 = vadd.f32 %v447_v20, %v446_v5  ;;  %v956_v59 = vadd.f32 %v2425_v54, %v954_v36  ;;  %v474_v21 = vadd.f32 %v473_v11, %v2426_v0  ;;  %v1009_v29 = vsel %vm1005_vm10, -1.0, %v2387_v35  ;;  %v2441_v5 = vld [vmem:[#allocation22_spill] sm:$0xff]  ;;  %v2442_v36 = vld [vmem:[#allocation32_spill] sm:$0xff]  ;;  %v2443_v53 = vld [vmem:[#allocation33_spill] sm:$0xff] }
  0xc1   : > { %v1011_v44 = vsel %vm1007_vm11, 1.0, %v2387_v35  ;;  %v1013_v62 = vsel %vm201_vm4, %v1009_v29, 0.0  ;;  %vm495_vm12 = vcmp.le.f32.partialorder %v1920_v52, %v2427_v60  ;;  %vm497_vm13 = vcmp.le.f32.partialorder %v1964_v51, %v2427_v60  ;;  %v2444_v54 = vld [vmem:[#allocation26_spill] sm:$0xff]  ;;  %v2445_v0 = vld [vmem:[#allocation35_spill] sm:$0xff] }
  0xc2   : > { %449 = vadd.xlane.f32.xlu1 %v448_v61  ;;  %v958_v63 = vadd.f32 %v957_v3, %v956_v59  ;;  %v476_v10 = vadd.f32 %v2428_v26, %v474_v21  ;;  %v1014_v50 = vadd.f32 %v1013_v62, %v2429_v41  ;;  %v1017_v9 = vsel %vm201_vm4, %v1011_v44, 0.0  ;;  %v2446_v62 = vld [vmem:[#allocation36_spill] sm:$0xff] }
  0xc3   : > { %v499_v22 = vsel %vm495_vm12, -1.0, %v2387_v35  ;;  %v501_v15 = vsel %vm497_vm13, 1.0, %v2387_v35  ;;  %vm1065_vm14 = vcmp.le.f32.partialorder %v1920_v52, %v2430_v47  ;;  %vm1067_vm15 = vcmp.le.f32.partialorder %v1964_v51, %v2430_v47  ;;  %v2449_v47 = vld [vmem:[#allocation41_spill] sm:$0xff] }
  0xc4   : > { %959 = vadd.xlane.f32.xlu0 %v958_v63  ;;  %v478_v33 = vadd.f32 %v477_v6, %v476_v10  ;;  %v1016_v27 = vadd.f32 %v2431_v16, %v1014_v50  ;;  %v503_v56 = vsel %vm201_vm4, %v499_v22, 0.0  ;;  %v507_v17 = vsel %vm201_vm4, %v501_v15, 0.0  ;;  %v2447_v10 = vld [vmem:[#allocation27_spill] sm:$0xff]  ;;  %v2448_v22 = vld [vmem:[#allocation38_spill] sm:$0xff] }
  0xc5   : > { %v504_v55 = vadd.f32 %v503_v56, %v2432_v31  ;;  %v1069_v34 = vsel %vm1065_vm14, -1.0, %v2387_v35  ;;  %v1071_v39 = vsel %vm1067_vm15, 1.0, %v2387_v35  ;;  %vm555_vm0 = vcmp.le.f32.partialorder %v1920_v52, %v2433_v58  ;;  %v2450_v31 = vld [vmem:[#allocation34_spill] sm:$0xff] }
  0xc6   : > { %479 = vadd.xlane.f32.xlu1 %v478_v33  ;;  %v1018_v1 = vadd.f32 %v1017_v9, %v1016_v27  ;;  %v1073_v18 = vsel %vm201_vm4, %v1069_v34, 0.0  ;;  %v1077_v13 = vsel %vm201_vm4, %v1071_v39, 0.0  ;;  %vm557_vm1 = vcmp.le.f32.partialorder %v1964_v51, %v2433_v58  ;;  %v2451_v34 = vld [vmem:[#allocation42_spill] sm:$0xff]  ;;  %v2452_v58 = vld [vmem:[#allocation44_spill] sm:$0xff] }
  0xc7   : > { %v506_v42 = vadd.f32 %v2434_v32, %v504_v55  ;;  %v1074_v24 = vadd.f32 %v1073_v18, %v2435_v14  ;;  %v559_v23 = vsel %vm555_vm0, -1.0, %v2387_v35  ;;  %v561_v8 = vsel %vm557_vm1, 1.0, %v2387_v35 }
  0xc8   : > { %1019 = vadd.xlane.f32.xlu0 %v1018_v1  ;;  %v563_v19 = vsel %vm201_vm4, %v559_v23, 0.0  ;;  %v567_v40 = vsel %vm201_vm4, %v561_v8, 0.0  ;;  %vm1125_vm2 = vcmp.le.f32.partialorder %v1920_v52, %v2436_v43  ;;  %vm1127_vm3 = vcmp.le.f32.partialorder %v1964_v51, %v2436_v43 }
  0xc9   : > { %v508_v20 = vadd.f32 %v507_v17, %v506_v42  ;;  %v1076_v28 = vadd.f32 %v2437_v25, %v1074_v24  ;;  %v564_v45 = vadd.f32 %v563_v19, %v2438_v30  ;;  %v1129_v37 = vsel %vm1125_vm2, -1.0, %v2387_v35  ;;  %v2453_v42 = vld [vmem:[#allocation37_spill] sm:$0xff]  ;;  %v2454_v24 = vld [vmem:[#allocation46_spill] sm:$0xff] }
  0xca   : > { %vm1096_vm5 = vcmp.le.f32.partialorder %v2440_v2, %v2439_v48  ;;  %v1131_v3 = vsel %vm1127_vm3, 1.0, %v2387_v35  ;;  %v1133_v7 = vsel %vm201_vm4, %v1129_v37, 0.0  ;;  %vm615_vm6 = vcmp.le.f32.partialorder %v1920_v52, %v2441_v5 }
  0xcb   : > { %vm617_vm7 = vcmp.le.f32.partialorder %v1964_v51, %v2441_v5  ;;  %509 = vadd.xlane.f32.xlu1 %v508_v20  ;;  %v1078_v12 = vadd.f32 %v1077_v13, %v1076_v28  ;;  %v566_v49 = vadd.f32 %v2442_v36, %v564_v45  ;;  %v1134_v11 = vadd.f32 %v1133_v7, %v2443_v53  ;;  %v2455_v20 = vld [vmem:[#allocation39_spill] sm:$0xff] }
  0xcc   : > { %v1137_v6 = vsel %vm201_vm4, %v1131_v3, 0.0  ;;  %v619_v38 = vsel %vm615_vm6, -1.0, %v2387_v35  ;;  %v621_v61 = vsel %vm617_vm7, 1.0, %v2387_v35  ;;  %vm675_vm8 = vcmp.le.f32.partialorder %v1920_v52, %v2444_v54  ;;  %v2456_v3 = vld [vmem:[#allocation40_spill] sm:$0xff] }
  0xcd   : > { %vm677_vm9 = vcmp.le.f32.partialorder %v1964_v51, %v2444_v54  ;;  %1079 = vadd.xlane.f32.xlu0 %v1078_v12  ;;  %v568_v59 = vadd.f32 %v567_v40, %v566_v49  ;;  %v1136_v21 = vadd.f32 %v2445_v0, %v1134_v11  ;;  %v623_v29 = vsel %vm201_vm4, %v619_v38, 0.0  ;;  %v2457_v12 = vld [vmem:[#allocation47_spill] sm:$0xff] }
  0xce   : > { %v627_v44 = vsel %vm201_vm4, %v621_v61, 0.0  ;;  %v624_v60 = vadd.f32 %v623_v29, %v2446_v62  ;;  %v679_v63 = vsel %vm675_vm8, -1.0, %v2387_v35  ;;  %v681_v26 = vsel %vm677_vm9, 1.0, %v2387_v35  ;;  %v2459_v61 = vld [vmem:[#allocation43_spill] sm:$0xff] }
  0xcf   : > { %vm735_vm10 = vcmp.le.f32.partialorder %v1920_v52, %v2447_v10  ;;  %569 = vadd.xlane.f32.xlu1 %v568_v59  ;;  %v1138_v41 = vadd.f32 %v1137_v6, %v1136_v21  ;;  %v683_v50 = vsel %vm201_vm4, %v679_v63, 0.0  ;;  %v687_v9 = vsel %vm201_vm4, %v681_v26, 0.0  ;;  %v2460_v59 = vld [vmem:[#allocation49_spill] sm:$0xff]  ;;  %v2461_v21 = vld [vmem:[#allocation50_spill] sm:$0xff]  ;;  %v2462_v26 = vld [vmem:[#allocation51_spill] sm:$0xff] }
  0xd0   : > { %vm737_vm11 = vcmp.le.f32.partialorder %v1964_v51, %v2447_v10  ;;  %v626_v15 = vadd.f32 %v2448_v22, %v624_v60  ;;  %v684_v33 = vadd.f32 %v683_v50, %v2449_v47  ;;  %v739_v16 = vsel %vm735_vm10, -1.0, %v2387_v35 }
  0xd1   : > { %v741_v27 = vsel %vm737_vm11, 1.0, %v2387_v35  ;;  %1139 = vadd.xlane.f32.xlu0 %v1138_v41  ;;  %v743_v56 = vsel %vm201_vm4, %v739_v16, 0.0  ;;  %vm795_vm12 = vcmp.le.f32.partialorder %v1920_v52, %v2450_v31  ;;  %vm797_vm13 = vcmp.le.f32.partialorder %v1964_v51, %v2450_v31  ;;  %v2463_v41 = vld [vmem:[#allocation52_spill] sm:$0xff] }
  0xd2   : > { %v747_v17 = vsel %vm201_vm4, %v741_v27, 0.0  ;;  %v628_v55 = vadd.f32 %v627_v44, %v626_v15  ;;  %v686_v39 = vadd.f32 %v2451_v34, %v684_v33  ;;  %v744_v1 = vadd.f32 %v743_v56, %v2452_v58 }
  0xd3   : > { %v799_v18 = vsel %vm795_vm12, -1.0, %v2387_v35  ;;  %v801_v13 = vsel %vm797_vm13, 1.0, %v2387_v35  ;;  %vm855_vm14 = vcmp.le.f32.partialorder %v1920_v52, %v2453_v42  ;;  %vm857_vm15 = vcmp.le.f32.partialorder %v1964_v51, %v2453_v42 }
  0xd4   : > { %v803_v32 = vsel %vm201_vm4, %v799_v18, 0.0  ;;  %629 = vadd.xlane.f32.xlu1 %v628_v55  ;;  %v688_v14 = vadd.f32 %v687_v9, %v686_v39  ;;  %v746_v23 = vadd.f32 %v2454_v24, %v744_v1  ;;  %v1100_v19 = vsel %vm1096_vm5, -1.0, %v2387_v35  ;;  %v2464_v9 = vld [vmem:[#allocation54_spill] sm:$0xff] }
  0xd5   : > { %v804_v8 = vadd.f32 %v803_v32, %v1908_v4  ;;  %v859_v40 = vsel %vm855_vm14, -1.0, %v2387_v35  ;;  %v861_v43 = vsel %vm857_vm15, 1.0, %v2387_v35  ;;  %vm915_vm0 = vcmp.le.f32.partialorder %v1920_v52, %v2455_v20 }
  0xd6   : > { %vm917_vm1 = vcmp.le.f32.partialorder %v1964_v51, %v2455_v20  ;;  %v748_v25 = vadd.f32 %v747_v17, %v746_v23  ;;  %v807_v4 = vsel %vm201_vm4, %v801_v13, 0.0  ;;  %v863_v30 = vsel %vm201_vm4, %v859_v40, 0.0 }
  0xd7   : > { %v806_v28 = vadd.f32 %v1911_v57, %v804_v8  ;;  %v864_v45 = vadd.f32 %v863_v30, %v1914_v46  ;;  %v919_v37 = vsel %vm915_vm0, -1.0, %v2387_v35  ;;  %v921_v2 = vsel %vm917_vm1, 1.0, %v2387_v35  ;;  %v2458_v46 = vld [vmem:[#allocation48_spill] sm:$0xff] }
  0xd8   : > { %vm975_vm2 = vcmp.le.f32.partialorder %v1920_v52, %v2456_v3  ;;  %689 = vadd.xlane.f32.xlu1 %v688_v14  ;;  %v867_v7 = vsel %vm201_vm4, %v861_v43, 0.0  ;;  %v923_v5 = vsel %vm201_vm4, %v919_v37, 0.0  ;;  %v927_v57 = vsel %vm201_vm4, %v921_v2, 0.0 }
  0xd9   : > { %vm977_vm3 = vcmp.le.f32.partialorder %v1964_v51, %v2456_v3  ;;  %v866_v36 = vadd.f32 %v2457_v12, %v864_v45  ;;  %v924_v49 = vadd.f32 %v923_v5, %v2458_v46  ;;  %v979_v53 = vsel %vm975_vm2, -1.0, %v2387_v35 }
  0xda   : > { %v981_v11 = vsel %vm977_vm3, 1.0, %v2387_v35  ;;  %v983_v6 = vsel %vm201_vm4, %v979_v53, 0.0  ;;  %vm1035_vm5 = vcmp.le.f32.partialorder %v1920_v52, %v2459_v61  ;;  %vm1037_vm6 = vcmp.le.f32.partialorder %v1964_v51, %v2459_v61 }
  0xdb   : > { %v987_v38 = vsel %vm201_vm4, %v981_v11, 0.0  ;;  %v868_v54 = vadd.f32 %v867_v7, %v866_v36  ;;  %v926_v0 = vadd.f32 %v2460_v59, %v924_v49  ;;  %v984_v29 = vadd.f32 %v983_v6, %v2461_v21 }
  0xdc   : > { %v1039_v44 = vsel %vm1035_vm5, -1.0, %v2387_v35  ;;  %749 = vadd.xlane.f32.xlu1 %v748_v25  ;;  %v1041_v62 = vsel %vm1037_vm6, 1.0, %v2387_v35  ;;  %vm1095_vm7 = vcmp.le.f32.partialorder %v1920_v52, %v2439_v48  ;;  %vm1097_vm8 = vcmp.le.f32.partialorder %v1964_v51, %v2439_v48  ;;  %v2465_v52 = vld [vmem:[#allocation53_spill] sm:$0xff] }
  0xdd   : > { %v1043_v60 = vsel %vm201_vm4, %v1039_v44, 0.0  ;;  %v928_v63 = vadd.f32 %v927_v57, %v926_v0  ;;  %v986_v10 = vadd.f32 %v2462_v26, %v984_v29  ;;  %v1102_v22 = vsel %vm201_vm4, %v2464_v9, 0.0 }
  0xde   : > { %v1044_v50 = vadd.f32 %v1043_v60, %v2463_v41  ;;  %v808_v15 = vadd.f32 %v807_v4, %v806_v28  ;;  %v1047_v47 = vsel %vm201_vm4, %v1041_v62, 0.0  ;;  %v1099_v33 = vsel %vm1095_vm7, -1.0, %v2387_v35 }
  0xdf   : > { %v1101_v16 = vsel %vm1097_vm8, 1.0, %v2387_v35  ;;  %v988_v27 = vadd.f32 %v987_v38, %v986_v10  ;;  %v1103_v51 = vsel %vm201_vm4, %v1099_v33, 0.0  ;;  %v1105_v48 = vsel %vm201_vm4, %v1100_v19, 0.0 }
  0xe0   : > { %v1046_v56 = vadd.f32 %v2465_v52, %v1044_v50  ;;  %809 = vadd.xlane.f32.xlu1 %v808_v15  ;;  %v1104_v17 = vadd.f32 %v1103_v51, %v1102_v22  ;;  %v1107_v55 = vsel %vm201_vm4, %v1101_v16, 0.0 }
  0xe2   : > { %v1048_v31 = vadd.f32 %v1047_v47, %v1046_v56  ;;  %v1106_v34 = vadd.f32 %v1105_v48, %v1104_v17 }
  0xe4   : > { %869 = vadd.xlane.f32.xlu1 %v868_v54  ;;  %v1108_v39 = vadd.f32 %v1107_v55, %v1106_v34 }
  0xe8   : > { %929 = vadd.xlane.f32.xlu1 %v928_v63 }
  0xec   : > { %989 = vadd.xlane.f32.xlu1 %v988_v27 }
  0xf0   : > { %1049 = vadd.xlane.f32.xlu1 %v1048_v31 }
  0xf4   : > { %1109 = vadd.xlane.f32.xlu1 %v1108_v39 }
 0x130   : > { %v270_v35 = vpop.xlane.xlu0 %269  ;;  %v210_v58 = vpop.xlane.xlu1 %209 }
 0x131   : > { %v271_v1 = vrot.slane %v270_v35, 4  ;;  %v211_v18 = vrot.slane %v210_v58, 4 }
 0x133   : > { %v272_v13 = vadd.f32 %v271_v1, %v270_v35  ;;  %v212_v32 = vadd.f32 %v211_v18, %v210_v58 }
 0x134   : > { %v240_v42 = vpop.xlane.xlu1 %239  ;;  %v540_v28 = vpop.xlane.xlu0 %539 }
 0x135   : > { %v273_v14 = vrot.slane %v272_v13, 2  ;;  %v213_v24 = vrot.slane %v212_v32, 2  ;;  %v241_v23 = vrot.slane %v240_v42, 4  ;;  %v541_v27 = vrot.slane %v540_v28, 4 }
 0x137   : > { %v242_v8 = vadd.f32 %v241_v23, %v240_v42  ;;  %v214_v19 = vadd.f32 %v213_v24, %v212_v32  ;;  %v274_v43 = vadd.f32 %v273_v14, %v272_v13  ;;  %v542_v39 = vadd.f32 %v541_v27, %v540_v28 }
 0x138   : > { %v300_v40 = vpop.xlane.xlu1 %299  ;;  %v600_v46 = vpop.xlane.xlu0 %599 }
 0x139   : > { %v243_v20 = vrot.slane %v242_v8, 2  ;;  %v301_v25 = vrot.slane %v300_v40, 4  ;;  %v215_v4 = vrot.slane %v214_v19, 1  ;;  %v275_v2 = vrot.slane %v274_v43, 1 }
 0x13a   : > { %v601_v1 = vrot.slane %v600_v46, 4  ;;  %v543_v24 = vrot.slane %v542_v39, 2 }
 0x13b   : > { %v302_v30 = vadd.f32 %v301_v25, %v300_v40  ;;  %v244_v45 = vadd.f32 %v243_v20, %v242_v8  ;;  %v216_v37 = vadd.f32 %v215_v4, %v214_v19  ;;  %v276_v53 = vadd.f32 %v275_v2, %v274_v43 }
 0x13c   : > { %v660_v21 = vpop.xlane.xlu0 %659  ;;  %v602_v23 = vadd.f32 %v601_v1, %v600_v46 }
 0x13d   : > { %v303_v3 = vrot.slane %v302_v30, 2  ;;  %v330_v7 = vpop.xlane.xlu1 %329  ;;  %v245_v5 = vrot.slane %v244_v45, 1  ;;  %1256 = vpush %v216_v37  ;;  %v661_v8 = vrot.slane %v660_v21, 4 }
 0x13e   : > { %v331_v57 = vrot.slane %v330_v7, 4 }
 0x13f   : > { %v246_v12 = vadd.f32 %v245_v5, %v244_v45  ;;  %v304_v36 = vadd.f32 %v303_v3, %v302_v30  ;;  %v603_v45 = vrot.slane %v602_v23, 2  ;;  %v662_v37 = vadd.f32 %v661_v8, %v660_v21 }
 0x140   : > { %v332_v49 = vadd.f32 %v331_v57, %v330_v7  ;;  %v720_v15 = vpop.xlane.xlu0 %719  ;;  %v544_v7 = vadd.f32 %v543_v24, %v542_v39 }
 0x141   : > { %v360_v11 = vpop.xlane.xlu1 %359  ;;  %1258 = vpush %v246_v12  ;;  %v305_v6 = vrot.slane %v304_v36, 1  ;;  %v721_v5 = vrot.slane %v720_v15, 4 }
 0x142   : > { %v333_v38 = vrot.slane %v332_v49, 2  ;;  %v361_v61 = vrot.slane %v360_v11, 4  ;;  %1260 = vpush %v276_v53 }
 0x143   : > { %v306_v54 = vadd.f32 %v305_v6, %v304_v36  ;;  %v545_v6 = vrot.slane %v544_v7, 1 }
 0x144   : > { %v362_v59 = vadd.f32 %v361_v61, %v360_v11  ;;  %v334_v0 = vadd.f32 %v333_v38, %v332_v49  ;;  %v780_v55 = vpop.xlane.xlu0 %779  ;;  %v663_v11 = vrot.slane %v662_v37, 2  ;;  %v604_v38 = vadd.f32 %v603_v45, %v602_v23 }
 0x145   : > { %1262 = vpush %v306_v54  ;;  %v722_v61 = vadd.f32 %v721_v5, %v720_v15  ;;  %v781_v54 = vrot.slane %v780_v55, 4 }
 0x146   : > { %v363_v29 = vrot.slane %v362_v59, 2  ;;  %v390_v44 = vpop.xlane.xlu1 %389  ;;  %v335_v62 = vrot.slane %v334_v0, 1 }
 0x147   : > { %v391_v60 = vrot.slane %v390_v44, 4 }
 0x148   : > { %v336_v63 = vadd.f32 %v335_v62, %v334_v0  ;;  %v364_v26 = vadd.f32 %v363_v29, %v362_v59  ;;  %v840_v19 = vpop.xlane.xlu0 %839 }
 0x149   : > { %v392_v10 = vadd.f32 %v391_v60, %v390_v44 }
 0x14a   : > { %v420_v41 = vpop.xlane.xlu1 %419  ;;  %1264 = vpush %v336_v63  ;;  %v365_v50 = vrot.slane %v364_v26, 1 }
 0x14b   : > { %v393_v9 = vrot.slane %v392_v10, 2  ;;  %v421_v22 = vrot.slane %v420_v41, 4 }
 0x14c   : > { %v366_v47 = vadd.f32 %v365_v50, %v364_v26  ;;  %v900_v36 = vpop.xlane.xlu0 %899  ;;  %v546_v26 = vadd.f32 %v545_v6, %v544_v7  ;;  %v782_v50 = vadd.f32 %v781_v54, %v780_v55 }
 0x14d   : > { %v422_v33 = vadd.f32 %v421_v22, %v420_v41  ;;  %v394_v16 = vadd.f32 %v393_v9, %v392_v10  ;;  %v605_v10 = vrot.slane %v604_v38, 1  ;;  %v723_v41 = vrot.slane %v722_v61, 2 }
 0x14e   : > { %1266 = vpush %v366_v47  ;;  %v664_v47 = vadd.f32 %v663_v11, %v662_v37  ;;  %v901_v27 = vrot.slane %v900_v36, 4 }
 0x14f   : > { %v423_v52 = vrot.slane %v422_v33, 2  ;;  %v450_v56 = vpop.xlane.xlu1 %449  ;;  %v395_v51 = vrot.slane %v394_v16, 1  ;;  %v724_v39 = vadd.f32 %v723_v41, %v722_v61  ;;  %v189_v61 = vlaneseq }
 0x150   : > { %v451_v48 = vrot.slane %v450_v56, 4 }
 0x151   : > { %v396_v17 = vadd.f32 %v395_v51, %v394_v16  ;;  %v424_v31 = vadd.f32 %v423_v52, %v422_v33  ;;  %v960_v60 = vpop.xlane.xlu0 %959  ;;  %v841_v33 = vrot.slane %v840_v19, 4  ;;  %v606_v51 = vadd.f32 %v605_v10, %v604_v38 }
 0x152   : > { %v452_v34 = vadd.f32 %v451_v48, %v450_v56 }
 0x153   : > { %v480_v35 = vpop.xlane.xlu1 %479  ;;  %1268 = vpush %v396_v17  ;;  %v425_v58 = vrot.slane %v424_v31, 1  ;;  %v783_v17 = vrot.slane %v782_v50, 2 }
 0x154   : > { %v453_v18 = vrot.slane %v452_v34, 2  ;;  %v481_v13 = vrot.slane %v480_v35, 4 }
 0x155   : > { %v426_v32 = vadd.f32 %v425_v58, %v424_v31  ;;  %v1020_v55 = vpop.xlane.xlu0 %1019 }
 0x156   : > { %v482_v42 = vadd.f32 %v481_v13, %v480_v35  ;;  %v454_v14 = vadd.f32 %v453_v18, %v452_v34  ;;  %v665_v34 = vrot.slane %v664_v47, 1  ;;  %v842_v35 = vadd.f32 %v841_v33, %v840_v19 }
 0x157   : > { %1270 = vpush %v426_v32  ;;  %v902_v13 = vadd.f32 %v901_v27, %v900_v36  ;;  %v961_v32 = vrot.slane %v960_v60, 4  ;;  %v1021_v7 = vrot.slane %v1020_v55, 4 }
 0x158   : > { %v483_v40 = vrot.slane %v482_v42, 2  ;;  %v510_v43 = vpop.xlane.xlu1 %509  ;;  %v455_v20 = vrot.slane %v454_v14, 1  ;;  %v666_v8 = vadd.f32 %v665_v34, %v664_v47 }
 0x159   : > { %v511_v25 = vrot.slane %v510_v43, 4  ;;  %v903_v19 = vrot.slane %v902_v13, 2 }
 0x15a   : > { %v456_v4 = vadd.f32 %v455_v20, %v454_v14  ;;  %v484_v28 = vadd.f32 %v483_v40, %v482_v42  ;;  %v725_v40 = vrot.slane %v724_v39, 1  ;;  %v843_v20 = vrot.slane %v842_v35, 2  ;;  %v1080_v45 = vpop.xlane.xlu0 %1079 }
 0x15b   : > { %v512_v30 = vadd.f32 %v511_v25, %v510_v43  ;;  %v784_v43 = vadd.f32 %v783_v17, %v782_v50  ;;  %v904_v11 = vadd.f32 %v903_v19, %v902_v13  ;;  %v2277_v50 = vand.u32 127, %v189_v61 }
 0x15c   : > { %v570_v2 = vpop.xlane.xlu1 %569  ;;  %1272 = vpush %v456_v4  ;;  %v485_v3 = vrot.slane %v484_v28, 1 }
 0x15d   : > { %v513_v57 = vrot.slane %v512_v30, 2  ;;  %v571_v12 = vrot.slane %v570_v2, 4  ;;  %v905_v41 = vrot.slane %v904_v11, 1  ;;  %vm248_vm4 = vcmp.eq.s32.totalorder %v2277_v50, 1 }
 0x15e   : > { %v486_v46 = vadd.f32 %v485_v3, %v484_v28  ;;  %vm218_vm9 = vcmp.eq.s32.totalorder %v2277_v50, 0  ;;  %vm278_vm10 = vcmp.eq.s32.totalorder %v2277_v50, 2  ;;  %vm308_vm11 = vcmp.eq.s32.totalorder %v2277_v50, 3 }
 0x15f   : > { %v572_v49 = vadd.f32 %v571_v12, %v570_v2  ;;  %v514_v53 = vadd.f32 %v513_v57, %v512_v30  ;;  %v962_v30 = vadd.f32 %v961_v32, %v960_v60  ;;  %v726_v57 = vadd.f32 %v725_v40, %v724_v39 }
 0x160   : > { %1274 = vpush %v486_v46  ;;  %v785_v12 = vrot.slane %v784_v43, 1  ;;  %vm338_vm12 = vcmp.eq.s32.totalorder %v2277_v50, 4  ;;  %vm368_vm13 = vcmp.eq.s32.totalorder %v2277_v50, 5  ;;  %vm398_vm14 = vcmp.eq.s32.totalorder %v2277_v50, 6 }
 0x161   : > { %v573_v59 = vrot.slane %v572_v49, 2  ;;  %v630_v0 = vpop.xlane.xlu1 %629  ;;  %v515_v21 = vrot.slane %v514_v53, 1  ;;  %v963_v6 = vrot.slane %v962_v30, 2  ;;  %vm428_vm15 = vcmp.eq.s32.totalorder %v2277_v50, 7 }
 0x162   : > { %v631_v29 = vrot.slane %v630_v0, 4  ;;  %vm458_vm0 = vcmp.eq.s32.totalorder %v2277_v50, 8  ;;  %vm488_vm1 = vcmp.eq.s32.totalorder %v2277_v50, 9  ;;  %vm518_vm2 = vcmp.eq.s32.totalorder %v2277_v50, 10 }
 0x163   : > { %v516_v44 = vadd.f32 %v515_v21, %v514_v53  ;;  %v574_v62 = vadd.f32 %v573_v59, %v572_v49  ;;  %v844_v53 = vadd.f32 %v843_v20, %v842_v35  ;;  %v1022_v59 = vadd.f32 %v1021_v7, %v1020_v55 }
 0x164   : > { %v632_v63 = vadd.f32 %v631_v29, %v630_v0  ;;  %v1081_v0 = vrot.slane %v1080_v45, 4  ;;  %v786_v29 = vadd.f32 %v785_v12, %v784_v43  ;;  %v964_v47 = vadd.f32 %v963_v6, %v962_v30 }
 0x165   : > { %v690_v9 = vpop.xlane.xlu1 %689  ;;  %1276 = vpush %v516_v44  ;;  %v575_v22 = vrot.slane %v574_v62, 1  ;;  %v1023_v33 = vrot.slane %v1022_v59, 2  ;;  %vm548_vm3 = vcmp.eq.s32.totalorder %v2277_v50, 11  ;;  %vm578_vm5 = vcmp.eq.s32.totalorder %v2277_v50, 12 }
 0x166   : > { %v633_v16 = vrot.slane %v632_v63, 2  ;;  %v691_v15 = vrot.slane %v690_v9, 4  ;;  %1278 = vpush %v546_v26  ;;  %v845_v26 = vrot.slane %v844_v53, 1  ;;  %v965_v55 = vrot.slane %v964_v47, 1 }
 0x167   : > { %v576_v52 = vadd.f32 %v575_v22, %v574_v62  ;;  %v1140_v62 = vpop.xlane.xlu0 %1139  ;;  %v1024_v32 = vadd.f32 %v1023_v33, %v1022_v59  ;;  %vm608_vm6 = vcmp.eq.s32.totalorder %v2277_v50, 13  ;;  %vm638_vm7 = vcmp.eq.s32.totalorder %v2277_v50, 14 }
 0x168   : > { %v692_v56 = vadd.f32 %v691_v15, %v690_v9  ;;  %v634_v48 = vadd.f32 %v633_v16, %v632_v63  ;;  %v1082_v16 = vadd.f32 %v1081_v0, %v1080_v45  ;;  %v1141_v15 = vrot.slane %v1140_v62, 4 }
 0x169   : > { %v750_v31 = vpop.xlane.xlu1 %749  ;;  %1280 = vpush %v576_v52  ;;  %v1025_v19 = vrot.slane %v1024_v32, 1  ;;  %vm668_vm8 = vcmp.eq.s32.totalorder %v2277_v50, 15 }
 0x16a   : > { %v693_v58 = vrot.slane %v692_v56, 2  ;;  %v751_v1 = vrot.slane %v750_v31, 4  ;;  %1282 = vpush %v606_v51  ;;  %v635_v18 = vrot.slane %v634_v48, 1 }
 0x16c   : > { %v752_v42 = vadd.f32 %v751_v1, %v750_v31  ;;  %v636_v14 = vadd.f32 %v635_v18, %v634_v48  ;;  %v694_v24 = vadd.f32 %v693_v58, %v692_v56  ;;  %v846_v48 = vadd.f32 %v845_v26, %v844_v53 }
 0x16d   : > { %v810_v23 = vpop.xlane.xlu1 %809  ;;  %v906_v31 = vadd.f32 %v905_v41, %v904_v11  ;;  %v1083_v58 = vrot.slane %v1082_v16, 2  ;;  %v1142_v1 = vadd.f32 %v1141_v15, %v1140_v62  ;;  %v1026_v53 = vadd.f32 %v1025_v19, %v1024_v32 }
 0x16e   : > { %v753_v25 = vrot.slane %v752_v42, 2  ;;  %v811_v4 = vrot.slane %v810_v23, 4  ;;  %1284 = vpush %v636_v14  ;;  %v695_v28 = vrot.slane %v694_v24, 1  ;;  %s2279_s28 = spop %1256 }
 0x16f   : > { %1286 = vpush %v666_v8  ;;  %v1084_v30 = vadd.f32 %v1083_v58, %v1082_v16 }
 0x170   : > { %v812_v37 = vadd.f32 %v811_v4, %v810_v23  ;;  %v696_v2 = vadd.f32 %v695_v28, %v694_v24  ;;  %v754_v3 = vadd.f32 %v753_v25, %v752_v42  ;;  %v219_v23 = vstv %s2279_s28 }
 0x171   : > { %v870_v5 = vpop.xlane.xlu1 %869  ;;  %v1143_v25 = vrot.slane %v1142_v1, 2  ;;  %v966_v28 = vadd.f32 %v965_v55, %v964_v47  ;;  %v220_v45 = vsel %vm218_vm9, %v219_v23, 0.0  ;;  %v1085_v11 = vrot.slane %v1084_v30, 1 }
 0x172   : > { %v813_v36 = vrot.slane %v812_v37, 2  ;;  %v871_v46 = vrot.slane %v870_v5, 4  ;;  %1288 = vpush %v696_v2  ;;  %v755_v49 = vrot.slane %v754_v3, 1  ;;  %s1259_s29 = spop %1258  ;;  %vm728_vm9 = vcmp.eq.s32.totalorder %v2277_v50, 17 }
 0x173   : > { %1290 = vpush %v726_v57  ;;  %v249_v18 = vstv %s1259_s29  ;;  %s1261_s30 = spop %1260  ;;  %v1086_v62 = vadd.f32 %v1085_v11, %v1084_v30 }
 0x174   : > { %v872_v38 = vadd.f32 %v871_v46, %v870_v5  ;;  %v756_v54 = vadd.f32 %v755_v49, %v754_v3  ;;  %v814_v44 = vadd.f32 %v813_v36, %v812_v37  ;;  %v250_v8 = vsel %vm248_vm4, %v249_v18, 0.0 }
 0x175   : > { %v930_v21 = vpop.xlane.xlu1 %929  ;;  %v251_v7 = vadd.f32 %v250_v8, %v220_v45  ;;  %v279_v5 = vstv %s1261_s30  ;;  %v1144_v46 = vadd.f32 %v1143_v25, %v1142_v1  ;;  %vm698_vm4 = vcmp.eq.s32.totalorder %v2277_v50, 16 }
 0x176   : > { %v873_v60 = vrot.slane %v872_v38, 2  ;;  %v931_v63 = vrot.slane %v930_v21, 4  ;;  %1292 = vpush %v756_v54  ;;  %v815_v10 = vrot.slane %v814_v44, 1  ;;  %s1263_s3 = spop %1262  ;;  %v280_v6 = vsel %vm278_vm10, %v279_v5, 0.0 }
 0x177   : > { %1294 = vpush %v786_v29  ;;  %v309_v49 = vstv %s1263_s3  ;;  %v281_v54 = vadd.f32 %v280_v6, %v251_v7  ;;  %vm758_vm10 = vcmp.eq.s32.totalorder %v2277_v50, 18 }
 0x178   : > { %v932_v9 = vadd.f32 %v931_v63, %v930_v21  ;;  %v874_v22 = vadd.f32 %v873_v60, %v872_v38  ;;  %v816_v52 = vadd.f32 %v815_v10, %v814_v44  ;;  %v310_v0 = vsel %vm308_vm11, %v309_v49, 0.0 }
 0x179   : > { %v990_v27 = vpop.xlane.xlu1 %989  ;;  %v1145_v60 = vrot.slane %v1144_v46, 1  ;;  %v311_v10 = vadd.f32 %v310_v0, %v281_v54  ;;  %vm788_vm11 = vcmp.eq.s32.totalorder %v2277_v50, 19 }
 0x17a   : > { %v933_v56 = vrot.slane %v932_v9, 2  ;;  %v991_v51 = vrot.slane %v990_v27, 4  ;;  %v875_v17 = vrot.slane %v874_v22, 1  ;;  %1296 = vpush %v816_v52 }
 0x17b   : > { %1298 = vpush %v846_v48  ;;  %s1265_s4 = spop %1264  ;;  %v1146_v16 = vadd.f32 %v1145_v60, %v1144_v46 }
 0x17c   : > { %v992_v34 = vadd.f32 %v991_v51, %v990_v27  ;;  %v876_v39 = vadd.f32 %v875_v17, %v874_v22  ;;  %v934_v35 = vadd.f32 %v933_v56, %v932_v9  ;;  %v339_v59 = vstv %s1265_s4 }
 0x17d   : > { %v1050_v13 = vpop.xlane.xlu1 %1049  ;;  %v340_v63 = vsel %vm338_vm12, %v339_v59, 0.0  ;;  %vm818_vm12 = vcmp.eq.s32.totalorder %v2277_v50, 20 }
 0x17e   : > { %v993_v42 = vrot.slane %v992_v34, 2  ;;  %v1051_v14 = vrot.slane %v1050_v13, 4  ;;  %1300 = vpush %v876_v39  ;;  %v935_v24 = vrot.slane %v934_v35, 1  ;;  %v341_v47 = vadd.f32 %v340_v63, %v311_v10 }
 0x17f   : > { %1302 = vpush %v906_v31  ;;  %s1267_s5 = spop %1266 }
 0x180   : > { %v1052_v40 = vadd.f32 %v1051_v14, %v1050_v13  ;;  %v936_v43 = vadd.f32 %v935_v24, %v934_v35  ;;  %v994_v20 = vadd.f32 %v993_v42, %v992_v34  ;;  %v369_v44 = vstv %s1267_s5 }
 0x181   : > { %v1110_v4 = vpop.xlane.xlu1 %1109  ;;  %v370_v9 = vsel %vm368_vm13, %v369_v44, 0.0  ;;  %vm848_vm13 = vcmp.eq.s32.totalorder %v2277_v50, 21 }
 0x182   : > { %v1053_v37 = vrot.slane %v1052_v40, 2  ;;  %v1111_v2 = vrot.slane %v1110_v4, 4  ;;  %1304 = vpush %v936_v43  ;;  %v995_v3 = vrot.slane %v994_v20, 1  ;;  %v371_v27 = vadd.f32 %v370_v9, %v341_v47 }
 0x183   : > { %1306 = vpush %v966_v28 }
 0x184   : > { %v1112_v57 = vadd.f32 %v1111_v2, %v1110_v4  ;;  %v996_v12 = vadd.f32 %v995_v3, %v994_v20  ;;  %v1054_v36 = vadd.f32 %v1053_v37, %v1052_v40  ;;  %s1269_s6 = spop %1268 }
 0x185   : > { %v399_v41 = vstv %s1269_s6 }
 0x186   : > { %v1113_v38 = vrot.slane %v1112_v57, 2  ;;  %1308 = vpush %v996_v12  ;;  %v1055_v61 = vrot.slane %v1054_v36, 1  ;;  %v400_v15 = vsel %vm398_vm14, %v399_v41, 0.0  ;;  %vm878_vm14 = vcmp.eq.s32.totalorder %v2277_v50, 22 }
 0x187   : > { %1310 = vpush %v1026_v53  ;;  %v401_v51 = vadd.f32 %v400_v15, %v371_v27 }
 0x188   : > { %v1114_v21 = vadd.f32 %v1113_v38, %v1112_v57  ;;  %v1056_v29 = vadd.f32 %v1055_v61, %v1054_v36  ;;  %s1271_s7 = spop %1270 }
 0x189   : > { %v429_v33 = vstv %s1271_s7 }
 0x18a   : > { %1312 = vpush %v1056_v29  ;;  %v1115_v26 = vrot.slane %v1114_v21, 1  ;;  %v430_v56 = vsel %vm428_vm15, %v429_v33, 0.0  ;;  %vm908_vm15 = vcmp.eq.s32.totalorder %v2277_v50, 23 }
 0x18b   : > { %1314 = vpush %v1086_v62  ;;  %v431_v31 = vadd.f32 %v430_v56, %v401_v51 }
 0x18c   : > { %v1116_v22 = vadd.f32 %v1115_v26, %v1114_v21 }
 0x18d   : > { %s1273_s8 = spop %1272 }
 0x18e   : > { %1316 = vpush %v1116_v22  ;;  %v459_v52 = vstv %s1273_s8  ;;  %s153_s8 = scalar_lea.vmem %s2327_s2, %s2467_s10 }
 0x18f   : > { %1318 = vpush %v1146_v16  ;;  %v460_v48 = vsel %vm458_vm0, %v459_v52, 0.0  ;;  %vm938_vm0 = vcmp.eq.s32.totalorder %v2277_v50, 24 }
 0x190   : > { %v461_v39 = vadd.f32 %v460_v48, %v431_v31 }
 0x191   : > { %s1275_s11 = spop %1274 }
 0x192   : > { %v489_v17 = vstv %s1275_s11 }
 0x193   : > { %v490_v34 = vsel %vm488_vm1, %v489_v17, 0.0  ;;  %vm968_vm1 = vcmp.eq.s32.totalorder %v2277_v50, 25 }
 0x194   : > { %v491_v35 = vadd.f32 %v490_v34, %v461_v39 }
 0x196   : > { %s1277_s12 = spop %1276 }
 0x197   : > { %v519_v55 = vstv %s1277_s12  ;;  %s1279_s13 = spop %1278 }
 0x198   : > { %v520_v58 = vsel %vm518_vm2, %v519_v55, 0.0  ;;  %v549_v1 = vstv %s1279_s13  ;;  %vm998_vm2 = vcmp.eq.s32.totalorder %v2277_v50, 26 }
 0x199   : > { %v521_v18 = vadd.f32 %v520_v58, %v491_v35  ;;  %v550_v13 = vsel %vm548_vm3, %v549_v1, 0.0  ;;  %vm1028_vm3 = vcmp.eq.s32.totalorder %v2277_v50, 27 }
 0x19a   : > { %s1281_s14 = spop %1280 }
 0x19b   : > { %v551_v32 = vadd.f32 %v550_v13, %v521_v18  ;;  %v579_v42 = vstv %s1281_s14  ;;  %s1283_s15 = spop %1282 }
 0x19c   : > { %v580_v14 = vsel %vm578_vm5, %v579_v42, 0.0  ;;  %v609_v24 = vstv %s1283_s15  ;;  %vm1058_vm5 = vcmp.eq.s32.totalorder %v2277_v50, 28 }
 0x19d   : > { %v581_v23 = vadd.f32 %v580_v14, %v551_v32  ;;  %v610_v8 = vsel %vm608_vm6, %v609_v24, 0.0  ;;  %vm1088_vm6 = vcmp.eq.s32.totalorder %v2277_v50, 29 }
 0x19f   : > { %v611_v40 = vadd.f32 %v610_v8, %v581_v23  ;;  %s1285_s16 = spop %1284 }
 0x1a0   : > { %v639_v43 = vstv %s1285_s16  ;;  %s1287_s17 = spop %1286 }
 0x1a1   : > { %v640_v20 = vsel %vm638_vm7, %v639_v43, 0.0  ;;  %v669_v25 = vstv %s1287_s17  ;;  %vm1118_vm7 = vcmp.eq.s32.totalorder %v2277_v50, 30 }
 0x1a2   : > { %v641_v4 = vadd.f32 %v640_v20, %v611_v40  ;;  %v670_v28 = vsel %vm668_vm8, %v669_v25, 0.0  ;;  %vm1148_vm8 = vcmp.eq.s32.totalorder %v2277_v50, 31 }
 0x1a3   : > { %s1289_s18 = spop %1288 }
 0x1a4   : > { %v671_v19 = vadd.f32 %v670_v28, %v641_v4  ;;  %v699_v30 = vstv %s1289_s18  ;;  %s1291_s19 = spop %1290 }
 0x1a5   : > { %v700_v45 = vsel %vm698_vm4, %v699_v30, 0.0  ;;  %v729_v37 = vstv %s1291_s19  ;;  %vm1152_vm4 = vcmask 253952  }
 0x1a6   : > { %v701_v2 = vadd.f32 %v700_v45, %v671_v19  ;;  %v730_v3 = vsel %vm728_vm9, %v729_v37, 0.0 }
 0x1a7   : > { %s1293_s20 = spop %1292 }
 0x1a8   : > { %v731_v7 = vadd.f32 %v730_v3, %v701_v2  ;;  %v759_v5 = vstv %s1293_s20  ;;  %s1295_s21 = spop %1294 }
 0x1a9   : > { %v760_v57 = vsel %vm758_vm10, %v759_v5, 0.0  ;;  %v789_v12 = vstv %s1295_s21 }
 0x1aa   : > { %v761_v36 = vadd.f32 %v760_v57, %v731_v7  ;;  %v790_v46 = vsel %vm788_vm11, %v789_v12, 0.0 }
 0x1ab   : > { %s1297_s22 = spop %1296 }
 0x1ac   : > { %v791_v49 = vadd.f32 %v790_v46, %v761_v36  ;;  %v819_v53 = vstv %s1297_s22  ;;  %s1299_s23 = spop %1298 }
 0x1ad   : > { %v820_v11 = vsel %vm818_vm12, %v819_v53, 0.0  ;;  %v849_v6 = vstv %s1299_s23 }
 0x1ae   : > { %v821_v38 = vadd.f32 %v820_v11, %v791_v49  ;;  %v850_v61 = vsel %vm848_vm13, %v849_v6, 0.0 }
 0x1af   : > { %s1301_s24 = spop %1300 }
 0x1b0   : > { %v879_v54 = vstv %s1301_s24  ;;  %s1303_s25 = spop %1302  ;;  %v851_v59 = vadd.f32 %v850_v61, %v821_v38 }
 0x1b1   : > { %v880_v0 = vsel %vm878_vm14, %v879_v54, 0.0  ;;  %v909_v21 = vstv %s1303_s25 }
 0x1b2   : > { %v881_v29 = vadd.f32 %v880_v0, %v851_v59  ;;  %v910_v44 = vsel %vm908_vm15, %v909_v21, 0.0 }
 0x1b3   : > { %s1305_s26 = spop %1304 }
 0x1b4   : > { %v939_v62 = vstv %s1305_s26  ;;  %s1307_s27 = spop %1306  ;;  %v911_v60 = vadd.f32 %v910_v44, %v881_v29 }
 0x1b5   : > { %v940_v63 = vsel %vm938_vm0, %v939_v62, 0.0  ;;  %v969_v26 = vstv %s1307_s27 }
 0x1b6   : > { %v941_v10 = vadd.f32 %v940_v63, %v911_v60  ;;  %v970_v41 = vsel %vm968_vm1, %v969_v26, 0.0 }
 0x1b7   : > { %s1309_s28 = spop %1308 }
 0x1b8   : > { %v999_v9 = vstv %s1309_s28  ;;  %s1311_s29 = spop %1310  ;;  %v971_v22 = vadd.f32 %v970_v41, %v941_v10 }
 0x1b9   : > { %v1000_v47 = vsel %vm998_vm2, %v999_v9, 0.0  ;;  %v1029_v33 = vstv %s1311_s29 }
 0x1ba   : > { %v1001_v16 = vadd.f32 %v1000_v47, %v971_v22  ;;  %v1030_v15 = vsel %vm1028_vm3, %v1029_v33, 0.0 }
 0x1bb   : > { %s1313_s30 = spop %1312 }
 0x1bc   : > { %v1059_v27 = vstv %s1313_s30  ;;  %s1315_s3 = spop %1314  ;;  %v1031_v52 = vadd.f32 %v1030_v15, %v1001_v16 }
 0x1bd   : > { %v1060_v56 = vsel %vm1058_vm5, %v1059_v27, 0.0  ;;  %v1089_v51 = vstv %s1315_s3 }
 0x1be   : > { %v1061_v48 = vadd.f32 %v1060_v56, %v1031_v52  ;;  %v1090_v17 = vsel %vm1088_vm6, %v1089_v51, 0.0 }
 0x1bf   : > { %s1317_s4 = spop %1316 }
 0x1c0   : > { %v1119_v31 = vstv %s1317_s4  ;;  %s1319_s5 = spop %1318  ;;  %v1091_v34 = vadd.f32 %v1090_v17, %v1061_v48 }
 0x1c1   : > { %v1120_v39 = vsel %vm1118_vm7, %v1119_v31, 0.0  ;;  %v1149_v35 = vstv %s1319_s5 }
 0x1c2   : > { %v1121_v55 = vadd.f32 %v1120_v39, %v1091_v34  ;;  %v1150_v58 = vsel %vm1148_vm8, %v1149_v35, 0.0 }
 0x1c4   : > { %v1151_v1 = vadd.f32 %v1150_v58, %v1121_v55 }
 0x1c6   : > { %1153 = vst.msk [vmem:[%s153_s8] sm:$0x1] %vm1152_vm4, %v1151_v1 }
 0x1c7 PF: > { %s13_s9 = sadd.s32 1, %s1366_s9  }
 0x1c8   : > { %p10_p1 = scmp.ge.s32.totalorder %s13_s9, 4  }
 0x1ca   :  { %12 = sbr.rel (!%p10_p1) target bundleno = 1 (0x1), region = 63 }
 0x1d1   :  { %1171 = vsyncpa [#allocation3], 1 }
 0x1d2   :  { %1173 = vsyncpa [#allocation3 + $0x1], 1 }

// kernel: ec_cnn_dtm_forward.20
= control target key start
LH: loop header
LB: loop body
LE: loop exit
PB: predicated region body
PF: predicated region fallthrough
CT: control target
= control target key end

     0   :  { %v195_v0 = vmov 0.0|0.0   ;;  %vm196_vm0 = vmmov 0   ;;  %v197_v4 = vmov 0.0   ;;  %vm109_vm1 = vcmask 517120   ;;  %s275_s1 = inlined_call_operand.vmem [shape: f32[128,64], index: 1, kind: input, shape index: {}]   ;;  %s276_s0 = inlined_call_operand.vmem [shape: f32[2,128], index: 0, kind: input, shape index: {}]   ;;  %s277_s2 = inlined_call_operand.vmem [shape: f32[1,64], index: 2, kind: input, shape index: {}]   ;;  %s278_s3 = inlined_call_operand.vmem [shape: f32[2,64], index: 3, kind: output, shape index: {}]  }
   0x1   :  { %168 = vmatprep.subr.bf16.mxu0 %v195_v0  ;;  %v15_v1 = vld [vmem:[%s275_s1] sm:$0xff]  ;;  %v16_v2 = vld [vmem:[%s275_s1 + $0x8] sm:$0xff]  ;;  %v17_v3 = vld [vmem:[%s275_s1 + $0x10] sm:$0xff]  ;;  %165 = vmatprep.mubr.msk.f32.mxu0 %vm196_vm0, %v197_v4 }
   0x2   :  { %v169_v5 = vpack.c.bf16 %v16_v2, %v15_v1  ;;  %v18_v6 = vld [vmem:[%s275_s1 + $0x18] sm:$0xff]  ;;  %v19_v8 = vld [vmem:[%s275_s1 + $0x20] sm:$0xff]  ;;  %v20_v9 = vld [vmem:[%s275_s1 + $0x28] sm:$0xff] }
   0x3   :  { %v172_v7 = vpack.c.bf16 %v18_v6, %v17_v3  ;;  %v175_v10 = vpack.c.bf16 %v20_v9, %v19_v8  ;;  %v21_v11 = vld [vmem:[%s275_s1 + $0x30] sm:$0xff]  ;;  %v22_v12 = vld [vmem:[%s275_s1 + $0x38] sm:$0xff]  ;;  %v23_v14 = vld [vmem:[%s275_s1 + $0x40] sm:$0xff] }
   0x4   :  { %170 = vmatpush3.bf16.msra.mxu0 %v169_v5  ;;  %v178_v13 = vpack.c.bf16 %v22_v12, %v21_v11  ;;  %v24_v15 = vld [vmem:[%s275_s1 + $0x48] sm:$0xff]  ;;  %v25_v17 = vld [vmem:[%s275_s1 + $0x50] sm:$0xff]  ;;  %v26_v18 = vld [vmem:[%s275_s1 + $0x58] sm:$0xff] }
   0x5   :  { %171 = vmatprep.subr.bf16.mxu0 %v195_v0  ;;  %v181_v16 = vpack.c.bf16 %v24_v15, %v23_v14  ;;  %v184_v19 = vpack.c.bf16 %v26_v18, %v25_v17  ;;  %v27_v20 = vld [vmem:[%s275_s1 + $0x60] sm:$0xff]  ;;  %v28_v21 = vld [vmem:[%s275_s1 + $0x68] sm:$0xff]  ;;  %v29_v23 = vld [vmem:[%s275_s1 + $0x70] sm:$0xff] }
   0x6   :  { %v187_v22 = vpack.c.bf16 %v28_v21, %v27_v20  ;;  %v30_v24 = vld [vmem:[%s275_s1 + $0x78] sm:$0xff]  ;;  %v14_v26 = vld [vmem:[%s276_s0] sm:$0x3] }
   0x7   :  { %v190_v25 = vpack.c.bf16 %v30_v24, %v29_v23  ;;  %v115_v27 = vld [vmem:[%s277_s2] ss:$0 sm:$0xff] }
   0x8   :  { %173 = vmatpush3.bf16.msra.mxu0 %v172_v7 }
   0x9   :  { %174 = vmatprep.subr.bf16.mxu0 %v195_v0 }
   0xc   :  { %176 = vmatpush3.bf16.msra.mxu0 %v175_v10 }
   0xd   :  { %177 = vmatprep.subr.bf16.mxu0 %v195_v0 }
  0x10   :  { %179 = vmatpush3.bf16.msra.mxu0 %v178_v13 }
  0x11   :  { %180 = vmatprep.subr.bf16.mxu0 %v195_v0 }
  0x14   :  { %182 = vmatpush3.bf16.msra.mxu0 %v181_v16 }
  0x15   :  { %183 = vmatprep.subr.bf16.mxu0 %v195_v0 }
  0x18   :  { %185 = vmatpush3.bf16.msra.mxu0 %v184_v19 }
  0x19   :  { %186 = vmatprep.subr.bf16.mxu0 %v195_v0 }
  0x1c   :  { %188 = vmatpush3.bf16.msra.mxu0 %v187_v22 }
  0x1d   :  { %189 = vmatprep.subr.bf16.mxu0 %v195_v0 }
  0x20   :  { %191 = vmatpush3.bf16.msra.mxu0 %v190_v25 }
  0x23   :  { %166 = vmatmul.mubr.f32.vlgmr.msra.gmra.mrb[0].mxu0 %v14_v26 }
  0xf6   :  { %v104_v28 = vpop.f32.mrb[0].mxu0 }
  0xf7   :  { %v105_v29 = vadd.f32 %v115_v27, %v104_v28  ;;  %v167_v30 = vpop.f32.mrb[1].mxu0 }
  0xf9   :  { %v108_v31 = vmax.f32 %v105_v29, 0.0 }
  0xfb   :  { %110 = vst.msk [vmem:[%s278_s3] sm:$0x3] %vm109_vm1, %v108_v31 }

// kernel: ec_cnn_dtm_forward.21
= control target key start
LH: loop header
LB: loop body
LE: loop exit
PB: predicated region body
PF: predicated region fallthrough
CT: control target
= control target key end

     0   :  { %v191_v3 = vmov 0.0|0.0   ;;  %vm192_vm0 = vmmov 0   ;;  %v193_v6 = vmov 0.0   ;;  %s257_s0 = inlined_call_operand.vmem [shape: f32[2,64], index: 0, kind: input, shape index: {}]   ;;  %s258_s1 = inlined_call_operand.vmem [shape: f32[64,5], index: 1, kind: input, shape index: {}]   ;;  %s259_s2 = inlined_call_operand.vmem [shape: f32[1,5], index: 2, kind: input, shape index: {}]   ;;  %s260_s3 = inlined_call_operand.hbm [shape: f32[2,5], index: 3, kind: output, shape index: {}]  }
   0x1   :  { %v16_v0 = vld [vmem:[%s258_s1] sm:$0xff]  ;;  %v17_v1 = vld [vmem:[%s258_s1 + $0x8] sm:$0xff]  ;;  %v18_v2 = vld [vmem:[%s258_s1 + $0x10] sm:$0xff]  ;;  %151 = vmatprep.subr.bf16.mxu0 %v191_v3  ;;  %148 = vmatprep.mubr.msk.f32.mxu0 %vm192_vm0, %v193_v6 }
   0x2   :  { %v152_v4 = vpack.c.bf16 %v17_v1, %v16_v0  ;;  %v19_v5 = vld [vmem:[%s258_s1 + $0x18] sm:$0xff] }
   0x3   :  { %v155_v7 = vpack.c.bf16 %v19_v5, %v18_v2 }
   0x4   :  { %153 = vmatpush3.bf16.msra.mxu0 %v152_v4 }
   0x5   :  { %8 = vsyncpa [#allocation3], 0  ;;  %154 = vmatprep.subr.bf16.mxu0 %v191_v3  ;;  %v20_v8 = vld [vmem:[%s258_s1 + $0x20] sm:$0xff]  ;;  %v21_v9 = vld [vmem:[%s258_s1 + $0x28] sm:$0xff]  ;;  %vm31_vm1 = vcmask 523264   ;;  %s194_s5 = smov [#allocation2]  }
   0x6   :  { %v158_v10 = vpack.c.bf16 %v21_v9, %v20_v8  ;;  %v22_v11 = vld [vmem:[%s258_s1 + $0x30] sm:$0xff]  ;;  %v23_v12 = vld [vmem:[%s258_s1 + $0x38] sm:$0xff]  ;;  %v15_v14 = vld [vmem:[%s257_s0] sm:$0x3]  ;;  %s113_s6 = sshll.u32 %s194_s5, 4  ;;  %vm105_vm2 = vcmask 33792   ;;  %s114_s6 = int_to_ptr.vmem [resolvable:$true] %s113_s6 }
   0x7   :  { %v161_v13 = vpack.c.bf16 %v23_v12, %v22_v11  ;;  %v121_v15 = vld [vmem:[%s259_s2] ss:$0 sm:$0xff]  ;;  %s167_s1 = scalar_lea.vmem %s114_s6, 32  ;;  %p172_p1 = scmp.lt.s32.totalorder %s114_s6, %s114_s6 }
   0x8   :  { %156 = vmatpush3.bf16.msra.mxu0 %v155_v7  ;;  %p168_p0 = scmp.ne.s32.totalorder %s114_s6, %s167_s1  ;;  %p173_p2 = scmp.lt.s32.totalorder %s167_s1, %s167_s1 }
   0x9   :  { %157 = vmatprep.subr.bf16.mxu0 %v191_v3 }
   0xa   :  { %p174_p3 = por %p173_p2, %p172_p1 }
   0xc   :  { %159 = vmatpush3.bf16.msra.mxu0 %v158_v10  ;;  %p175_p4 = pnand %p174_p3, %p168_p0 }
   0xd   :  { %160 = vmatprep.subr.bf16.mxu0 %v191_v3 }
  0x10   :  { %162 = vmatpush3.bf16.msra.mxu0 %v161_v13 }
  0x13   :  { %149 = vmatmul.mubr.msk.f32.vlgmr.msra.gmra.mrb[0].mxu0 %vm31_vm1, %v15_v14 }
  0xe6   :  { %v101_v16 = vpop.f32.mrb[0].mxu0 }
  0xe7   :  { %v102_v17 = vadd.f32 %v121_v15, %v101_v16  ;;  %v150_v18 = vpop.f32.mrb[1].mxu0 }
  0xe9   :  { %106 = vst.msk [vmem:[#allocation2] sm:$0x3] %vm105_vm2, %v102_v17 }
  0xea   :  { %178 = shalt.err (!%p175_p4)
}
  0xeb   :  { %s179_s8 = scalar_lea.hbm %s260_s3, 32 }
  0xec   :  { %p180_p5 = scmp.ne.s32.totalorder %s260_s3, %s179_s8  ;;  %p183_p6 = scmp.lt.u32.totalorder %s179_s8, %s260_s3 }
  0xee   :  { %p185_p7 = pnand %p183_p6, %p180_p5 }
  0xf0   :  { %188 = shalt.err (!%p185_p7)
}
  0xf1   :  { %116 = dma.vmem_to_hbm [thread:$0]  %s114_s6, 32, %s260_s3, [#allocation3]  }
  0xf2   :  { %189 = dma.done.wait [#allocation3], 32  }
  0xf3   :  { %190 = vsyncadd [#allocation3], 4294967264 }
  0xf4   :  { %120 = vsyncpa [#allocation3], 1 }

</bundles_post_ra>
